<compile_context>
chip_gen: v5e
topology: v5e:2x2
jax: 0.10.0
libtpu: 0.0.40
codegen_flags: <defaults>
</compile_context>

<pallas_src>
import functools

import jax
import jax.numpy as jnp
from jax.experimental import pallas as pl
from jax.experimental.pallas import tpu as pltpu


def _round_up(n, m):
    return ((n + m - 1) // m) * m


def _lstm_cell(g, c, H):
    """LSTM cell with gate column order (i, f, o, g): one wide sigmoid over the
    contiguous first 3H columns, one tanh over the last H."""
    s = jax.nn.sigmoid(g[:, 0:3 * H])
    gg = jnp.tanh(g[:, 3 * H:4 * H])
    c_new = s[:, H:2 * H] * c + s[:, 0:H] * gg
    h_new = s[:, 2 * H:3 * H] * jnp.tanh(c_new)
    return h_new, c_new


def _fused_kernel(xc_ref, w1_ref, b1_ref, w2_ref, b2_ref, *args,
                  hidden, num_layers, seq_len):
    H = hidden
    L = seq_len
    nl = num_layers

    lstm_refs = args[0:3 * nl]
    (wd_ref, bd_ref, wf1_ref, bf1_ref, bns_ref, bnb_ref,
     wo_ref, bo_ref) = args[3 * nl:3 * nl + 8]
    o_ref = args[3 * nl + 8]
    mp_scr, xg_scr, act_scr = args[3 * nl + 9:3 * nl + 12]

    bb = xc_ref.shape[0]
    F3 = xc_ref.shape[2]
    F = F3 // 3
    Lp2 = mp_scr.shape[1]

    # ----------------------------- CNN front end -----------------------------
    # conv1 (k=3, p=1) as im2col along K: one (bb*L, 3F) @ (3F, 32) matmul.
    xc = xc_ref[...].astype(jnp.bfloat16).reshape(bb * L, F3)
    c1 = jnp.dot(xc, w1_ref[...], preferred_element_type=jnp.float32)
    c1 = c1.reshape(bb, L, 32) + b1_ref[...]
    c1 = jnp.maximum(c1, 0.0)                                   # (bb, L, 32)

    # maxpool(k=2, s=1, p=1): -inf padding after ReLU == 0 padding.  The pooled
    # sequence is staged in scratch already left-zero-padded for conv2:
    #   mp[0] = 0, mp[1] = c1[0], mp[j] = max(c1[j-2], c1[j-1]) (2<=j<=L),
    #   mp[L+1] = c1[L-1], remaining alignment rows zeroed.
    mp_scr[:, 0:1, :] = jnp.zeros((bb, 1, 32), jnp.float32)
    mp_scr[:, 1:2, :] = c1[:, 0:1, :]
    if L > 1:
        mp_scr[:, 2:L + 1, :] = jnp.maximum(c1[:, 0:L - 1, :], c1[:, 1:L, :])
    mp_scr[:, L + 1:L + 2, :] = c1[:, L - 1:L, :]
    if Lp2 > L + 2:
        mp_scr[:, L + 2:Lp2, :] = jnp.zeros((bb, Lp2 - L - 2, 32), jnp.float32)

    # conv2 (k=3, p=1): one tap-fused (bb*Lp2, 32) @ (32, 192) matmul + shifted
    # slice adds; only the first L outputs feed the LSTM (lstm_in[:, :L, :]).
    mpp = mp_scr[...].astype(jnp.bfloat16).reshape(bb * Lp2, 32)
    y2 = jnp.dot(mpp, w2_ref[...], preferred_element_type=jnp.float32)
    y2 = y2.reshape(bb, Lp2, 192)
    c2 = (y2[:, 0:L, 0:64] + y2[:, 1:L + 1, 64:128]
          + y2[:, 2:L + 2, 128:192] + b2_ref[...])
    act_scr[:, :, 0:64] = jnp.maximum(c2, 0.0)                  # layer-0 input

    # ----------------------------- BiLSTM stack ------------------------------
    def input_proj(d_in, wih_ref, b_ref):
        # One matmul for all timesteps / both directions; result parked in
        # VMEM scratch so the serial recurrence stays vreg-light.
        a = act_scr[:, :, 0:d_in].astype(jnp.bfloat16).reshape(bb * L, d_in)
        xg = jnp.dot(a, wih_ref[...], preferred_element_type=jnp.float32)
        xg_scr[...] = (xg + b_ref[...]).reshape(bb, L, 8 * H)

    zero = jnp.zeros((bb, H), jnp.float32)

    # Intermediate layers: full bidirectional sequence written back to act_scr
    # (its previous contents are fully consumed by input_proj before the loop).
    for layer in range(nl - 1):
        d_in = 64 if layer == 0 else 2 * H
        input_proj(d_in, lstm_refs[3 * layer], lstm_refs[3 * layer + 2])
        whh = lstm_refs[3 * layer + 1][...]      # (2H, 8H) block-diagonal bf16

        h_f, c_f, h_b, c_b = zero, zero, zero, zero
        # ONE recurrent matmul per step for both directions; loop is unrolled
        # (L small & static).  TODO(synk): lax.fori_loop for long sequences.
        for t in range(L):
            tb = L - 1 - t
            h_cat = jnp.concatenate([h_f, h_b], axis=1).astype(jnp.bfloat16)
            rec = jnp.dot(h_cat, whh, preferred_element_type=jnp.float32)
            g_f = xg_scr[:, t, 0:4 * H] + rec[:, 0:4 * H]
            g_b = xg_scr[:, tb, 4 * H:8 * H] + rec[:, 4 * H:8 * H]
            h_f, c_f = _lstm_cell(g_f, c_f, H)
            h_b, c_b = _lstm_cell(g_b, c_b, H)
            act_scr[:, t, 0:H] = h_f
            act_scr[:, tb, H:2 * H] = h_b

    # Last layer fused with the head: only lstm_out[:, -1, :] is consumed, so
    # the sequence is never materialized and the backward direction is a single
    # zero-state step (no recurrent matmul needed).
    d_in = 64 if nl == 1 else 2 * H
    lw = 3 * (nl - 1)
    input_proj(d_in, lstm_refs[lw], lstm_refs[lw + 2])
    whh_f = lstm_refs[lw + 1][0:H, 0:4 * H]      # forward block of block-diag

    h_f, c_f = zero, zero
    for t in range(L):
        rec = jnp.dot(h_f.astype(jnp.bfloat16), whh_f,
                      preferred_element_type=jnp.float32)
        h_f, c_f = _lstm_cell(xg_scr[:, t, 0:4 * H] + rec, c_f, H)
    h_b, _ = _lstm_cell(xg_scr[:, L - 1, 4 * H:8 * H], zero, H)

    # ------------------------------- MLP head --------------------------------
    # fc1 on [h_f, h_b] (split matmul, no concat), ReLU, folded BatchNorm,
    # dropout = identity, residual with fc_direct(x[:, -1, :]), fc_out.
    z = (jnp.dot(h_f.astype(jnp.bfloat16), wf1_ref[0:H, :],
                 preferred_element_type=jnp.float32)
         + jnp.dot(h_b.astype(jnp.bfloat16), wf1_ref[H:2 * H, :],
                   preferred_element_type=jnp.float32)
         + bf1_ref[...])
    z = jnp.maximum(z, 0.0)
    z = z * bns_ref[...] + bnb_ref[...]
    x_last = xc_ref[:, L - 1, F:2 * F].astype(jnp.bfloat16)     # == x[:, -1, :]
    z = z + jnp.dot(x_last, wd_ref[...],
                    preferred_element_type=jnp.float32) + bd_ref[...]
    out = jnp.dot(z.astype(jnp.bfloat16), wo_ref[...],
                  preferred_element_type=jnp.float32) + bo_ref[...]
    o_ref[0] = out


def _pick_block_batch(B):
    # ~32 batch rows per grid step (fills MXU rows, amortizes per-step
    # overhead); keep >= 2 grid steps when B > 1 so both v7x TensorCores work.
    bb = min(32, B)
    if B > 1:
        bb = min(bb, -(-B // 2))
    return max(bb, 1)


def cnn_bilstm_forward(prepped, x, hidden_size, num_layers):
    B, L, F = x.shape
    H = hidden_size
    O = prepped["head"]["wo"].shape[1]

    # im2col along time for conv1 (k=3, p=1): xc[:, t, :] = [x[t-1], x[t], x[t+1]].
    z1 = jnp.zeros((B, 1, F), x.dtype)
    xc = jnp.concatenate([
        jnp.concatenate([z1, x[:, :L - 1, :]], axis=1),
        x,
        jnp.concatenate([x[:, 1:, :], z1], axis=1),
    ], axis=2)                                                   # (B, L, 3F)

    bb = _pick_block_batch(B)
    nblk = pl.cdiv(B, bb)
    Bp = nblk * bb
    if Bp != B:                                    # pad batch: no partial blocks
        xc = jnp.pad(xc, ((0, Bp - B), (0, 0), (0, 0)))

    lpad2 = _round_up(L + 2, 8)

    lstm_args, lstm_specs = [], []
    for lp in prepped["lstm"]:
        lstm_args += [lp["wih"], lp["whh"], lp["b"]]
        lstm_specs += [pl.BlockSpec(lp["wih"].shape, lambda i: (0, 0)),
                       pl.BlockSpec(lp["whh"].shape, lambda i: (0, 0)),
                       pl.BlockSpec(lp["b"].shape, lambda i: (0, 0))]

    head = prepped["head"]
    head_args = [head["wd"], head["bd"], head["wf1"], head["bf1"],
                 head["bn_scale"], head["bn_shift"], head["wo"], head["bo"]]
    head_specs = [pl.BlockSpec(a.shape, lambda i: (0, 0)) for a in head_args]

    kernel = functools.partial(_fused_kernel, hidden=H,
                               num_layers=num_layers, seq_len=L)

    out = pl.pallas_call(
        kernel,
        out_shape=jax.ShapeDtypeStruct((nblk, bb, O), jnp.float32),
        grid=(nblk,),
        in_specs=[
            pl.BlockSpec((bb, L, 3 * F), lambda i: (i, 0, 0)),
            pl.BlockSpec(prepped["conv1_w"].shape, lambda i: (0, 0)),
            pl.BlockSpec(prepped["conv1_b"].shape, lambda i: (0, 0)),
            pl.BlockSpec(prepped["conv2_w"].shape, lambda i: (0, 0)),
            pl.BlockSpec(prepped["conv2_b"].shape, lambda i: (0, 0)),
        ] + lstm_specs + head_specs,
        out_specs=pl.BlockSpec((1, bb, O), lambda i: (i, 0, 0)),
        scratch_shapes=[
            pltpu.VMEM((bb, lpad2, 32), jnp.float32),            # pooled seq
            pltpu.VMEM((bb, L, 8 * H), jnp.float32),             # xg (gates)
            pltpu.VMEM((bb, L, max(64, 2 * H)), jnp.float32),    # activations
        ],
        compiler_params=pltpu.CompilerParams(
            dimension_semantics=("parallel",)),
    )(xc, prepped["conv1_w"], prepped["conv1_b"],
      prepped["conv2_w"], prepped["conv2_b"],
      *lstm_args, *head_args)

    return out.reshape(Bp, O)[:B]


# ----------------------------------------------------------------------------
# Parameters: natural (PyTorch-transposed, channels-last) shapes, then a
# one-time preparation into the fused kernel layout.
# ----------------------------------------------------------------------------
def init_params(key, input_size, hidden_size, num_layers, output_size):
    H = hidden_size
    keys = iter(jax.random.split(key, 16 + 8 * num_layers))

    def nrm(shape, scale=0.1):
        return scale * jax.random.normal(next(keys), shape, dtype=jnp.float32)

    params = {
        "conv1_w": nrm((3, input_size, 32)),    # (tap, Cin, Cout)
        "conv1_b": nrm((1, 32)),
        "conv2_w": nrm((3, 32, 64)),
        "conv2_b": nrm((1, 64)),
        "lstm": [],
        "wd": nrm((input_size, 128)),           # fc_direct
        "bd": nrm((1, 128)),
        "wf1": nrm((2 * H, 128)),               # fc1
        "bf1": nrm((1, 128)),
        "bn_gamma": jnp.ones((1, 128), jnp.float32),
        "bn_beta": jnp.zeros((1, 128), jnp.float32),
        "bn_mean": jnp.zeros((1, 128), jnp.float32),
        "bn_var": jnp.ones((1, 128), jnp.float32),
        "wo": nrm((128, output_size)),          # fc_out
        "bo": nrm((1, output_size)),
    }
    for layer in range(num_layers):
        d_in = 64 if layer == 0 else 2 * H
        params["lstm"].append({
            "wih": nrm((2, d_in, 4 * H)),       # (dir, D, 4H), gate order i,f,g,o
            "whh": nrm((2, H, 4 * H)),
            "b": nrm((2, 1, 4 * H)),            # b_ih + b_hh combined
        })
    return params


def prepare_params(params, hidden_size):
    """Offline weight packing: im2col conv1 weight, tap-fused conv2 weight,
    gate reorder (i,f,g,o)->(i,f,o,g), direction-major wih, block-diagonal whh,
    eval-mode BN folded to scale/shift, bf16 casts for all MXU operands."""
    H = hidden_size

    def reorder_gates(w):                       # [..., 4H]: (i,f,g,o) -> (i,f,o,g)
        return jnp.concatenate(
            [w[..., 0:2 * H], w[..., 3 * H:4 * H], w[..., 2 * H:3 * H]], axis=-1)

    eps = jnp.float32(1e-5)
    scale = params["bn_gamma"] * jax.lax.rsqrt(params["bn_var"] + eps)
    shift = params["bn_beta"] - params["bn_mean"] * scale

    prepped = {
        "conv1_w": params["conv1_w"].reshape(-1, 32).astype(jnp.bfloat16),
        "conv1_b": params["conv1_b"],
        "conv2_w": jnp.concatenate([params["conv2_w"][k] for k in range(3)],
                                   axis=1).astype(jnp.bfloat16),
        "conv2_b": params["conv2_b"],
        "lstm": [],
        "head": {
            "wd": params["wd"].astype(jnp.bfloat16), "bd": params["bd"],
            "wf1": params["wf1"].astype(jnp.bfloat16), "bf1": params["bf1"],
            "bn_scale": scale, "bn_shift": shift,
            "wo": params["wo"].astype(jnp.bfloat16), "bo": params["bo"],
        },
    }
    for lp in params["lstm"]:
        wih_f, wih_b = reorder_gates(lp["wih"][0]), reorder_gates(lp["wih"][1])
        whh_f, whh_b = reorder_gates(lp["whh"][0]), reorder_gates(lp["whh"][1])
        b_f, b_b = reorder_gates(lp["b"][0]), reorder_gates(lp["b"][1])
        zz = jnp.zeros_like(whh_f)
        prepped["lstm"].append({
            # (D, 8H): direction-major [fwd | bwd], gates (i,f,o,g)
            "wih": jnp.concatenate([wih_f, wih_b], axis=1).astype(jnp.bfloat16),
            # (2H, 8H) block-diagonal -> one recurrent matmul per step
            "whh": jnp.concatenate(
                [jnp.concatenate([whh_f, zz], axis=1),
                 jnp.concatenate([zz, whh_b], axis=1)],
                axis=0).astype(jnp.bfloat16),
            "b": jnp.concatenate([b_f, b_b], axis=1),            # (1, 8H) f32
        })
    return prepped


if __name__ == "__main__":
    B, L = 2, 8
    input_size, hidden_size, num_layers, output_size = 8, 32, 2, 4

    key = jax.random.PRNGKey(0)
    k_x, k_p = jax.random.split(key)
    x = jax.random.normal(k_x, (B, L, input_size), dtype=jnp.float32)
    params = init_params(k_p, input_size, hidden_size, num_layers, output_size)
    prepped = prepare_params(params, hidden_size)

    fwd = jax.jit(functools.partial(cnn_bilstm_forward,
                                    hidden_size=hidden_size,
                                    num_layers=num_layers))
    out = fwd(prepped, x)
    out = jax.block_until_ready(out)
    assert out.shape == (B, output_size), out.shape
    assert bool(jnp.all(jnp.isfinite(out)))
    print("KERNEL_OK")
</pallas_src>

<mosaic_0001>
module attributes {stable_mosaic.version = 11 : i64} {
  func.func @_fused_kernel(%arg0: i32, %arg1: memref<1x8x24xf32, #tpu.memory_space<vmem>>, %arg2: memref<24x32xbf16, #tpu.memory_space<vmem>>, %arg3: memref<1x32xf32, #tpu.memory_space<vmem>>, %arg4: memref<32x192xbf16, #tpu.memory_space<vmem>>, %arg5: memref<1x64xf32, #tpu.memory_space<vmem>>, %arg6: memref<64x256xbf16, #tpu.memory_space<vmem>>, %arg7: memref<64x256xbf16, #tpu.memory_space<vmem>>, %arg8: memref<1x256xf32, #tpu.memory_space<vmem>>, %arg9: memref<64x256xbf16, #tpu.memory_space<vmem>>, %arg10: memref<64x256xbf16, #tpu.memory_space<vmem>>, %arg11: memref<1x256xf32, #tpu.memory_space<vmem>>, %arg12: memref<8x128xbf16, #tpu.memory_space<vmem>>, %arg13: memref<1x128xf32, #tpu.memory_space<vmem>>, %arg14: memref<64x128xbf16, #tpu.memory_space<vmem>>, %arg15: memref<1x128xf32, #tpu.memory_space<vmem>>, %arg16: memref<1x128xf32, #tpu.memory_space<vmem>>, %arg17: memref<1x128xf32, #tpu.memory_space<vmem>>, %arg18: memref<128x4xbf16, #tpu.memory_space<vmem>>, %arg19: memref<1x4xf32, #tpu.memory_space<vmem>>, %arg20: memref<1x1x4xf32, #tpu.memory_space<vmem>>, %arg21: memref<1x16x32xf32, #tpu.memory_space<vmem>>, %arg22: memref<1x8x256xf32, #tpu.memory_space<vmem>>, %arg23: memref<1x8x64xf32, #tpu.memory_space<vmem>>) attributes {dimension_semantics = [#tpu.dimension_semantics<parallel>], iteration_bounds = array<i64: 2>, scalar_prefetch = 0 : i64, scratch_operands = 3 : i64, tpu.core_type = #tpu.core_type<tc>, window_params = [{transform_indices = @transform_0, window_bounds = array<i64: 1, 8, 24>}, {pipeline_mode = #tpu.pipeline_mode<synchronous>, transform_indices = @transform_1, window_bounds = array<i64: 24, 32>}, {pipeline_mode = #tpu.pipeline_mode<synchronous>, transform_indices = @transform_2, window_bounds = array<i64: 1, 32>}, {pipeline_mode = #tpu.pipeline_mode<synchronous>, transform_indices = @transform_3, window_bounds = array<i64: 32, 192>}, {pipeline_mode = #tpu.pipeline_mode<synchronous>, transform_indices = @transform_4, window_bounds = array<i64: 1, 64>}, {pipeline_mode = #tpu.pipeline_mode<synchronous>, transform_indices = @transform_5, window_bounds = array<i64: 64, 256>}, {pipeline_mode = #tpu.pipeline_mode<synchronous>, transform_indices = @transform_6, window_bounds = array<i64: 64, 256>}, {pipeline_mode = #tpu.pipeline_mode<synchronous>, transform_indices = @transform_7, window_bounds = array<i64: 1, 256>}, {pipeline_mode = #tpu.pipeline_mode<synchronous>, transform_indices = @transform_8, window_bounds = array<i64: 64, 256>}, {pipeline_mode = #tpu.pipeline_mode<synchronous>, transform_indices = @transform_9, window_bounds = array<i64: 64, 256>}, {pipeline_mode = #tpu.pipeline_mode<synchronous>, transform_indices = @transform_10, window_bounds = array<i64: 1, 256>}, {pipeline_mode = #tpu.pipeline_mode<synchronous>, transform_indices = @transform_11, window_bounds = array<i64: 8, 128>}, {pipeline_mode = #tpu.pipeline_mode<synchronous>, transform_indices = @transform_12, window_bounds = array<i64: 1, 128>}, {pipeline_mode = #tpu.pipeline_mode<synchronous>, transform_indices = @transform_13, window_bounds = array<i64: 64, 128>}, {pipeline_mode = #tpu.pipeline_mode<synchronous>, transform_indices = @transform_14, window_bounds = array<i64: 1, 128>}, {pipeline_mode = #tpu.pipeline_mode<synchronous>, transform_indices = @transform_15, window_bounds = array<i64: 1, 128>}, {pipeline_mode = #tpu.pipeline_mode<synchronous>, transform_indices = @transform_16, window_bounds = array<i64: 1, 128>}, {pipeline_mode = #tpu.pipeline_mode<synchronous>, transform_indices = @transform_17, window_bounds = array<i64: 128, 4>}, {pipeline_mode = #tpu.pipeline_mode<synchronous>, transform_indices = @transform_18, window_bounds = array<i64: 1, 4>}, {transform_indices = @transform_19, window_bounds = array<i64: 1, 1, 4>}]} {
    %c0 = arith.constant 0 : index
    %c0_0 = arith.constant 0 : index
    %c0_1 = arith.constant 0 : index
    %0 = vector.load %arg1[%c0, %c0_0, %c0_1] : memref<1x8x24xf32, #tpu.memory_space<vmem>>, vector<1x8x24xf32>
    %1 = arith.truncf %0 : vector<1x8x24xf32> to vector<1x8x24xbf16>
    %2 = vector.shape_cast %1 : vector<1x8x24xbf16> to vector<8x24xbf16>
    %c0_2 = arith.constant 0 : index
    %c0_3 = arith.constant 0 : index
    %3 = vector.load %arg2[%c0_2, %c0_3] : memref<24x32xbf16, #tpu.memory_space<vmem>>, vector<24x32xbf16>
    %cst = arith.constant dense<0.000000e+00> : vector<8x32xf32>
    %4 = tpu.matmul %2, %3, %cst {dimension_numbers = #tpu.dot_dimension_numbers<[1], [0], [0], [1], [0, 0, 1, 1], [], []>} : vector<8x24xbf16>, vector<24x32xbf16>, vector<8x32xf32> -> vector<8x32xf32>
    %5 = vector.shape_cast %4 : vector<8x32xf32> to vector<1x8x32xf32>
    %c0_4 = arith.constant 0 : index
    %c0_5 = arith.constant 0 : index
    %6 = vector.load %arg3[%c0_4, %c0_5] : memref<1x32xf32, #tpu.memory_space<vmem>>, vector<1x32xf32>
    %7 = vector.shape_cast %6 : vector<1x32xf32> to vector<1x1x32xf32>
    %8 = vector.broadcast %7 : vector<1x1x32xf32> to vector<1x8x32xf32>
    %9 = arith.addf %5, %8 : vector<1x8x32xf32>
    %cst_6 = arith.constant 0.000000e+00 : f32
    %10 = vector.broadcast %cst_6 : f32 to vector<1x8x32xf32>
    %11 = arith.maximumf %9, %10 : vector<1x8x32xf32>
    %cst_7 = arith.constant 0.000000e+00 : f32
    %12 = vector.broadcast %cst_7 : f32 to vector<1x1x32xf32>
    %c0_8 = arith.constant 0 : index
    %c0_9 = arith.constant 0 : index
    %c0_10 = arith.constant 0 : index
    %13 = vector.load %arg21[%c0_8, %c0_9, %c0_10] : memref<1x16x32xf32, #tpu.memory_space<vmem>>, vector<1x1x32xf32>
    tpu.vector_store %arg21[%c0_8, %c0_9, %c0_10], %12 {strides = array<i32>} : memref<1x16x32xf32, #tpu.memory_space<vmem>>, vector<1x1x32xf32>,
    %14 = vector.extract_strided_slice %11 {offsets = [0, 0, 0], sizes = [1, 1, 32], strides = [1, 1, 1]} : vector<1x8x32xf32> to vector<1x1x32xf32>
    %c0_11 = arith.constant 0 : index
    %c1 = arith.constant 1 : index
    %c0_12 = arith.constant 0 : index
    %15 = vector.load %arg21[%c0_11, %c1, %c0_12] : memref<1x16x32xf32, #tpu.memory_space<vmem>>, vector<1x1x32xf32>
    tpu.vector_store %arg21[%c0_11, %c1, %c0_12], %14 {strides = array<i32>} : memref<1x16x32xf32, #tpu.memory_space<vmem>>, vector<1x1x32xf32>,
    %16 = vector.extract_strided_slice %11 {offsets = [0, 0, 0], sizes = [1, 7, 32], strides = [1, 1, 1]} : vector<1x8x32xf32> to vector<1x7x32xf32>
    %17 = vector.extract_strided_slice %11 {offsets = [0, 1, 0], sizes = [1, 7, 32], strides = [1, 1, 1]} : vector<1x8x32xf32> to vector<1x7x32xf32>
    %18 = arith.maximumf %16, %17 : vector<1x7x32xf32>
    %c0_13 = arith.constant 0 : index
    %c2 = arith.constant 2 : index
    %c0_14 = arith.constant 0 : index
    %19 = vector.load %arg21[%c0_13, %c2, %c0_14] : memref<1x16x32xf32, #tpu.memory_space<vmem>>, vector<1x7x32xf32>
    tpu.vector_store %arg21[%c0_13, %c2, %c0_14], %18 {strides = array<i32>} : memref<1x16x32xf32, #tpu.memory_space<vmem>>, vector<1x7x32xf32>,
    %20 = vector.extract_strided_slice %11 {offsets = [0, 7, 0], sizes = [1, 1, 32], strides = [1, 1, 1]} : vector<1x8x32xf32> to vector<1x1x32xf32>
    %c0_15 = arith.constant 0 : index
    %c9 = arith.constant 9 : index
    %c0_16 = arith.constant 0 : index
    %21 = vector.load %arg21[%c0_15, %c9, %c0_16] : memref<1x16x32xf32, #tpu.memory_space<vmem>>, vector<1x1x32xf32>
    tpu.vector_store %arg21[%c0_15, %c9, %c0_16], %20 {strides = array<i32>} : memref<1x16x32xf32, #tpu.memory_space<vmem>>, vector<1x1x32xf32>,
    %cst_17 = arith.constant 0.000000e+00 : f32
    %22 = vector.broadcast %cst_17 : f32 to vector<1x6x32xf32>
    %c0_18 = arith.constant 0 : index
    %c10 = arith.constant 10 : index
    %c0_19 = arith.constant 0 : index
    %23 = vector.load %arg21[%c0_18, %c10, %c0_19] : memref<1x16x32xf32, #tpu.memory_space<vmem>>, vector<1x6x32xf32>
    tpu.vector_store %arg21[%c0_18, %c10, %c0_19], %22 {strides = array<i32>} : memref<1x16x32xf32, #tpu.memory_space<vmem>>, vector<1x6x32xf32>,
    %c0_20 = arith.constant 0 : index
    %c0_21 = arith.constant 0 : index
    %c0_22 = arith.constant 0 : index
    %24 = vector.load %arg21[%c0_20, %c0_21, %c0_22] : memref<1x16x32xf32, #tpu.memory_space<vmem>>, vector<1x16x32xf32>
    %25 = arith.truncf %24 : vector<1x16x32xf32> to vector<1x16x32xbf16>
    %26 = vector.shape_cast %25 : vector<1x16x32xbf16> to vector<16x32xbf16>
    %c0_23 = arith.constant 0 : index
    %c0_24 = arith.constant 0 : index
    %27 = vector.load %arg4[%c0_23, %c0_24] : memref<32x192xbf16, #tpu.memory_space<vmem>>, vector<32x192xbf16>
    %cst_25 = arith.constant dense<0.000000e+00> : vector<16x192xf32>
    %28 = tpu.matmul %26, %27, %cst_25 {dimension_numbers = #tpu.dot_dimension_numbers<[1], [0], [0], [1], [0, 0, 1, 1], [], []>} : vector<16x32xbf16>, vector<32x192xbf16>, vector<16x192xf32> -> vector<16x192xf32>
    %29 = vector.shape_cast %28 : vector<16x192xf32> to vector<1x16x192xf32>
    %30 = vector.extract_strided_slice %29 {offsets = [0, 0, 0], sizes = [1, 8, 64], strides = [1, 1, 1]} : vector<1x16x192xf32> to vector<1x8x64xf32>
    %31 = vector.extract_strided_slice %29 {offsets = [0, 1, 64], sizes = [1, 8, 64], strides = [1, 1, 1]} : vector<1x16x192xf32> to vector<1x8x64xf32>
    %32 = arith.addf %30, %31 : vector<1x8x64xf32>
    %33 = vector.extract_strided_slice %29 {offsets = [0, 2, 128], sizes = [1, 8, 64], strides = [1, 1, 1]} : vector<1x16x192xf32> to vector<1x8x64xf32>
    %34 = arith.addf %32, %33 : vector<1x8x64xf32>
    %c0_26 = arith.constant 0 : index
    %c0_27 = arith.constant 0 : index
    %35 = vector.load %arg5[%c0_26, %c0_27] : memref<1x64xf32, #tpu.memory_space<vmem>>, vector<1x64xf32>
    %36 = vector.shape_cast %35 : vector<1x64xf32> to vector<1x1x64xf32>
    %37 = vector.broadcast %36 : vector<1x1x64xf32> to vector<1x8x64xf32>
    %38 = arith.addf %34, %37 : vector<1x8x64xf32>
    %cst_28 = arith.constant 0.000000e+00 : f32
    %39 = vector.broadcast %cst_28 : f32 to vector<1x8x64xf32>
    %40 = arith.maximumf %38, %39 : vector<1x8x64xf32>
    %c0_29 = arith.constant 0 : index
    %c0_30 = arith.constant 0 : index
    %c0_31 = arith.constant 0 : index
    %41 = vector.load %arg23[%c0_29, %c0_30, %c0_31] : memref<1x8x64xf32, #tpu.memory_space<vmem>>, vector<1x8x64xf32>
    tpu.vector_store %arg23[%c0_29, %c0_30, %c0_31], %40 {strides = array<i32>} : memref<1x8x64xf32, #tpu.memory_space<vmem>>, vector<1x8x64xf32>,
    %cst_32 = arith.constant 0.000000e+00 : f32
    %42 = vector.broadcast %cst_32 : f32 to vector<1x32xf32>
    %c0_33 = arith.constant 0 : index
    %c0_34 = arith.constant 0 : index
    %c0_35 = arith.constant 0 : index
    %43 = vector.load %arg23[%c0_33, %c0_34, %c0_35] : memref<1x8x64xf32, #tpu.memory_space<vmem>>, vector<1x8x64xf32>
    %44 = arith.truncf %43 : vector<1x8x64xf32> to vector<1x8x64xbf16>
    %45 = vector.shape_cast %44 : vector<1x8x64xbf16> to vector<8x64xbf16>
    %c0_36 = arith.constant 0 : index
    %c0_37 = arith.constant 0 : index
    %46 = vector.load %arg6[%c0_36, %c0_37] : memref<64x256xbf16, #tpu.memory_space<vmem>>, vector<64x256xbf16>
    %cst_38 = arith.constant dense<0.000000e+00> : vector<8x256xf32>
    %47 = tpu.matmul %45, %46, %cst_38 {dimension_numbers = #tpu.dot_dimension_numbers<[1], [0], [0], [1], [0, 0, 1, 1], [], []>} : vector<8x64xbf16>, vector<64x256xbf16>, vector<8x256xf32> -> vector<8x256xf32>
    %c0_39 = arith.constant 0 : index
    %c0_40 = arith.constant 0 : index
    %48 = vector.load %arg8[%c0_39, %c0_40] : memref<1x256xf32, #tpu.memory_space<vmem>>, vector<1x256xf32>
    %49 = vector.broadcast %48 : vector<1x256xf32> to vector<8x256xf32>
    %50 = arith.addf %47, %49 : vector<8x256xf32>
    %51 = vector.shape_cast %50 : vector<8x256xf32> to vector<1x8x256xf32>
    %c0_41 = arith.constant 0 : index
    %c0_42 = arith.constant 0 : index
    %c0_43 = arith.constant 0 : index
    %52 = vector.load %arg22[%c0_41, %c0_42, %c0_43] : memref<1x8x256xf32, #tpu.memory_space<vmem>>, vector<1x8x256xf32>
    tpu.vector_store %arg22[%c0_41, %c0_42, %c0_43], %51 {strides = array<i32>} : memref<1x8x256xf32, #tpu.memory_space<vmem>>, vector<1x8x256xf32>,
    %c0_44 = arith.constant 0 : index
    %c0_45 = arith.constant 0 : index
    %53 = vector.load %arg7[%c0_44, %c0_45] : memref<64x256xbf16, #tpu.memory_space<vmem>>, vector<64x256xbf16>
    %54 = tpu.concatenate %42, %42 in 1 : vector<1x32xf32>, vector<1x32xf32> -> vector<1x64xf32>
    %55 = arith.truncf %54 : vector<1x64xf32> to vector<1x64xbf16>
    %cst_46 = arith.constant dense<0.000000e+00> : vector<1x256xf32>
    %56 = tpu.matmul %55, %53, %cst_46 {dimension_numbers = #tpu.dot_dimension_numbers<[1], [0], [0], [1], [0, 0, 1, 1], [], []>} : vector<1x64xbf16>, vector<64x256xbf16>, vector<1x256xf32> -> vector<1x256xf32>
    %c0_47 = arith.constant 0 : index
    %c0_48 = arith.constant 0 : index
    %c0_49 = arith.constant 0 : index
    %57 = vector.load %arg22[%c0_47, %c0_48, %c0_49] : memref<1x8x256xf32, #tpu.memory_space<vmem>>, vector<1x1x128xf32>
    %58 = vector.shape_cast %57 : vector<1x1x128xf32> to vector<1x128xf32>
    %59 = vector.extract_strided_slice %56 {offsets = [0, 0], sizes = [1, 128], strides = [1, 1]} : vector<1x256xf32> to vector<1x128xf32>
    %60 = arith.addf %58, %59 : vector<1x128xf32>
    %c0_50 = arith.constant 0 : index
    %c7 = arith.constant 7 : index
    %c128 = arith.constant 128 : index
    %61 = vector.load %arg22[%c0_50, %c7, %c128] : memref<1x8x256xf32, #tpu.memory_space<vmem>>, vector<1x1x128xf32>
    %62 = vector.shape_cast %61 : vector<1x1x128xf32> to vector<1x128xf32>
    %63 = vector.extract_strided_slice %56 {offsets = [0, 128], sizes = [1, 128], strides = [1, 1]} : vector<1x256xf32> to vector<1x128xf32>
    %64 = arith.addf %62, %63 : vector<1x128xf32>
    %65 = vector.extract_strided_slice %60 {offsets = [0, 0], sizes = [1, 96], strides = [1, 1]} : vector<1x128xf32> to vector<1x96xf32>
    %66 = arith.negf %65 : vector<1x96xf32>
    %67 = math.exp %66 : vector<1x96xf32>
    %cst_51 = arith.constant 1.000000e+00 : f32
    %68 = vector.broadcast %cst_51 : f32 to vector<1x96xf32>
    %69 = arith.addf %68, %67 : vector<1x96xf32>
    %70 = arith.divf %68, %69 : vector<1x96xf32>
    %71 = vector.extract_strided_slice %60 {offsets = [0, 96], sizes = [1, 32], strides = [1, 1]} : vector<1x128xf32> to vector<1x32xf32>
    %72 = math.tanh %71 : vector<1x32xf32>
    %73 = vector.extract_strided_slice %70 {offsets = [0, 32], sizes = [1, 32], strides = [1, 1]} : vector<1x96xf32> to vector<1x32xf32>
    %74 = arith.mulf %73, %42 : vector<1x32xf32>
    %75 = vector.extract_strided_slice %70 {offsets = [0, 0], sizes = [1, 32], strides = [1, 1]} : vector<1x96xf32> to vector<1x32xf32>
    %76 = arith.mulf %75, %72 : vector<1x32xf32>
    %77 = arith.addf %74, %76 : vector<1x32xf32>
    %78 = vector.extract_strided_slice %70 {offsets = [0, 64], sizes = [1, 32], strides = [1, 1]} : vector<1x96xf32> to vector<1x32xf32>
    %79 = math.tanh %77 : vector<1x32xf32>
    %80 = arith.mulf %78, %79 : vector<1x32xf32>
    %81 = vector.extract_strided_slice %64 {offsets = [0, 0], sizes = [1, 96], strides = [1, 1]} : vector<1x128xf32> to vector<1x96xf32>
    %82 = arith.negf %81 : vector<1x96xf32>
    %83 = math.exp %82 : vector<1x96xf32>
    %cst_52 = arith.constant 1.000000e+00 : f32
    %84 = vector.broadcast %cst_52 : f32 to vector<1x96xf32>
    %85 = arith.addf %84, %83 : vector<1x96xf32>
    %86 = arith.divf %84, %85 : vector<1x96xf32>
    %87 = vector.extract_strided_slice %64 {offsets = [0, 96], sizes = [1, 32], strides = [1, 1]} : vector<1x128xf32> to vector<1x32xf32>
    %88 = math.tanh %87 : vector<1x32xf32>
    %89 = vector.extract_strided_slice %86 {offsets = [0, 32], sizes = [1, 32], strides = [1, 1]} : vector<1x96xf32> to vector<1x32xf32>
    %90 = arith.mulf %89, %42 : vector<1x32xf32>
    %91 = vector.extract_strided_slice %86 {offsets = [0, 0], sizes = [1, 32], strides = [1, 1]} : vector<1x96xf32> to vector<1x32xf32>
    %92 = arith.mulf %91, %88 : vector<1x32xf32>
    %93 = arith.addf %90, %92 : vector<1x32xf32>
    %94 = vector.extract_strided_slice %86 {offsets = [0, 64], sizes = [1, 32], strides = [1, 1]} : vector<1x96xf32> to vector<1x32xf32>
    %95 = math.tanh %93 : vector<1x32xf32>
    %96 = arith.mulf %94, %95 : vector<1x32xf32>
    %c0_53 = arith.constant 0 : index
    %c0_54 = arith.constant 0 : index
    %c0_55 = arith.constant 0 : index
    %97 = vector.load %arg23[%c0_53, %c0_54, %c0_55] : memref<1x8x64xf32, #tpu.memory_space<vmem>>, vector<1x1x32xf32>
    %98 = vector.shape_cast %97 : vector<1x1x32xf32> to vector<1x32xf32>
    %99 = vector.shape_cast %80 : vector<1x32xf32> to vector<1x1x32xf32>
    tpu.vector_store %arg23[%c0_53, %c0_54, %c0_55], %99 {strides = array<i32>} : memref<1x8x64xf32, #tpu.memory_space<vmem>>, vector<1x1x32xf32>,
    %c0_56 = arith.constant 0 : index
    %c7_57 = arith.constant 7 : index
    %c32 = arith.constant 32 : index
    %100 = vector.load %arg23[%c0_56, %c7_57, %c32] : memref<1x8x64xf32, #tpu.memory_space<vmem>>, vector<1x1x32xf32>
    %101 = vector.shape_cast %100 : vector<1x1x32xf32> to vector<1x32xf32>
    %102 = vector.shape_cast %96 : vector<1x32xf32> to vector<1x1x32xf32>
    tpu.vector_store %arg23[%c0_56, %c7_57, %c32], %102 {strides = array<i32>} : memref<1x8x64xf32, #tpu.memory_space<vmem>>, vector<1x1x32xf32>,
    %103 = tpu.concatenate %80, %96 in 1 : vector<1x32xf32>, vector<1x32xf32> -> vector<1x64xf32>
    %104 = arith.truncf %103 : vector<1x64xf32> to vector<1x64xbf16>
    %cst_58 = arith.constant dense<0.000000e+00> : vector<1x256xf32>
    %105 = tpu.matmul %104, %53, %cst_58 {dimension_numbers = #tpu.dot_dimension_numbers<[1], [0], [0], [1], [0, 0, 1, 1], [], []>} : vector<1x64xbf16>, vector<64x256xbf16>, vector<1x256xf32> -> vector<1x256xf32>
    %c0_59 = arith.constant 0 : index
    %c1_60 = arith.constant 1 : index
    %c0_61 = arith.constant 0 : index
    %106 = vector.load %arg22[%c0_59, %c1_60, %c0_61] : memref<1x8x256xf32, #tpu.memory_space<vmem>>, vector<1x1x128xf32>
    %107 = vector.shape_cast %106 : vector<1x1x128xf32> to vector<1x128xf32>
    %108 = vector.extract_strided_slice %105 {offsets = [0, 0], sizes = [1, 128], strides = [1, 1]} : vector<1x256xf32> to vector<1x128xf32>
    %109 = arith.addf %107, %108 : vector<1x128xf32>
    %c0_62 = arith.constant 0 : index
    %c6 = arith.constant 6 : index
    %c128_63 = arith.constant 128 : index
    %110 = vector.load %arg22[%c0_62, %c6, %c128_63] : memref<1x8x256xf32, #tpu.memory_space<vmem>>, vector<1x1x128xf32>
    %111 = vector.shape_cast %110 : vector<1x1x128xf32> to vector<1x128xf32>
    %112 = vector.extract_strided_slice %105 {offsets = [0, 128], sizes = [1, 128], strides = [1, 1]} : vector<1x256xf32> to vector<1x128xf32>
    %113 = arith.addf %111, %112 : vector<1x128xf32>
    %114 = vector.extract_strided_slice %109 {offsets = [0, 0], sizes = [1, 96], strides = [1, 1]} : vector<1x128xf32> to vector<1x96xf32>
    %115 = arith.negf %114 : vector<1x96xf32>
    %116 = math.exp %115 : vector<1x96xf32>
    %cst_64 = arith.constant 1.000000e+00 : f32
    %117 = vector.broadcast %cst_64 : f32 to vector<1x96xf32>
    %118 = arith.addf %117, %116 : vector<1x96xf32>
    %119 = arith.divf %117, %118 : vector<1x96xf32>
    %120 = vector.extract_strided_slice %109 {offsets = [0, 96], sizes = [1, 32], strides = [1, 1]} : vector<1x128xf32> to vector<1x32xf32>
    %121 = math.tanh %120 : vector<1x32xf32>
    %122 = vector.extract_strided_slice %119 {offsets = [0, 32], sizes = [1, 32], strides = [1, 1]} : vector<1x96xf32> to vector<1x32xf32>
    %123 = arith.mulf %122, %77 : vector<1x32xf32>
    %124 = vector.extract_strided_slice %119 {offsets = [0, 0], sizes = [1, 32], strides = [1, 1]} : vector<1x96xf32> to vector<1x32xf32>
    %125 = arith.mulf %124, %121 : vector<1x32xf32>
    %126 = arith.addf %123, %125 : vector<1x32xf32>
    %127 = vector.extract_strided_slice %119 {offsets = [0, 64], sizes = [1, 32], strides = [1, 1]} : vector<1x96xf32> to vector<1x32xf32>
    %128 = math.tanh %126 : vector<1x32xf32>
    %129 = arith.mulf %127, %128 : vector<1x32xf32>
    %130 = vector.extract_strided_slice %113 {offsets = [0, 0], sizes = [1, 96], strides = [1, 1]} : vector<1x128xf32> to vector<1x96xf32>
    %131 = arith.negf %130 : vector<1x96xf32>
    %132 = math.exp %131 : vector<1x96xf32>
    %cst_65 = arith.constant 1.000000e+00 : f32
    %133 = vector.broadcast %cst_65 : f32 to vector<1x96xf32>
    %134 = arith.addf %133, %132 : vector<1x96xf32>
    %135 = arith.divf %133, %134 : vector<1x96xf32>
    %136 = vector.extract_strided_slice %113 {offsets = [0, 96], sizes = [1, 32], strides = [1, 1]} : vector<1x128xf32> to vector<1x32xf32>
    %137 = math.tanh %136 : vector<1x32xf32>
    %138 = vector.extract_strided_slice %135 {offsets = [0, 32], sizes = [1, 32], strides = [1, 1]} : vector<1x96xf32> to vector<1x32xf32>
    %139 = arith.mulf %138, %93 : vector<1x32xf32>
    %140 = vector.extract_strided_slice %135 {offsets = [0, 0], sizes = [1, 32], strides = [1, 1]} : vector<1x96xf32> to vector<1x32xf32>
    %141 = arith.mulf %140, %137 : vector<1x32xf32>
    %142 = arith.addf %139, %141 : vector<1x32xf32>
    %143 = vector.extract_strided_slice %135 {offsets = [0, 64], sizes = [1, 32], strides = [1, 1]} : vector<1x96xf32> to vector<1x32xf32>
    %144 = math.tanh %142 : vector<1x32xf32>
    %145 = arith.mulf %143, %144 : vector<1x32xf32>
    %c0_66 = arith.constant 0 : index
    %c1_67 = arith.constant 1 : index
    %c0_68 = arith.constant 0 : index
    %146 = vector.load %arg23[%c0_66, %c1_67, %c0_68] : memref<1x8x64xf32, #tpu.memory_space<vmem>>, vector<1x1x32xf32>
    %147 = vector.shape_cast %146 : vector<1x1x32xf32> to vector<1x32xf32>
    %148 = vector.shape_cast %129 : vector<1x32xf32> to vector<1x1x32xf32>
    tpu.vector_store %arg23[%c0_66, %c1_67, %c0_68], %148 {strides = array<i32>} : memref<1x8x64xf32, #tpu.memory_space<vmem>>, vector<1x1x32xf32>,
    %c0_69 = arith.constant 0 : index
    %c6_70 = arith.constant 6 : index
    %c32_71 = arith.constant 32 : index
    %149 = vector.load %arg23[%c0_69, %c6_70, %c32_71] : memref<1x8x64xf32, #tpu.memory_space<vmem>>, vector<1x1x32xf32>
    %150 = vector.shape_cast %149 : vector<1x1x32xf32> to vector<1x32xf32>
    %151 = vector.shape_cast %145 : vector<1x32xf32> to vector<1x1x32xf32>
    tpu.vector_store %arg23[%c0_69, %c6_70, %c32_71], %151 {strides = array<i32>} : memref<1x8x64xf32, #tpu.memory_space<vmem>>, vector<1x1x32xf32>,
    %152 = tpu.concatenate %129, %145 in 1 : vector<1x32xf32>, vector<1x32xf32> -> vector<1x64xf32>
    %153 = arith.truncf %152 : vector<1x64xf32> to vector<1x64xbf16>
    %cst_72 = arith.constant dense<0.000000e+00> : vector<1x256xf32>
    %154 = tpu.matmul %153, %53, %cst_72 {dimension_numbers = #tpu.dot_dimension_numbers<[1], [0], [0], [1], [0, 0, 1, 1], [], []>} : vector<1x64xbf16>, vector<64x256xbf16>, vector<1x256xf32> -> vector<1x256xf32>
    %c0_73 = arith.constant 0 : index
    %c2_74 = arith.constant 2 : index
    %c0_75 = arith.constant 0 : index
    %155 = vector.load %arg22[%c0_73, %c2_74, %c0_75] : memref<1x8x256xf32, #tpu.memory_space<vmem>>, vector<1x1x128xf32>
    %156 = vector.shape_cast %155 : vector<1x1x128xf32> to vector<1x128xf32>
    %157 = vector.extract_strided_slice %154 {offsets = [0, 0], sizes = [1, 128], strides = [1, 1]} : vector<1x256xf32> to vector<1x128xf32>
    %158 = arith.addf %156, %157 : vector<1x128xf32>
    %c0_76 = arith.constant 0 : index
    %c5 = arith.constant 5 : index
    %c128_77 = arith.constant 128 : index
    %159 = vector.load %arg22[%c0_76, %c5, %c128_77] : memref<1x8x256xf32, #tpu.memory_space<vmem>>, vector<1x1x128xf32>
    %160 = vector.shape_cast %159 : vector<1x1x128xf32> to vector<1x128xf32>
    %161 = vector.extract_strided_slice %154 {offsets = [0, 128], sizes = [1, 128], strides = [1, 1]} : vector<1x256xf32> to vector<1x128xf32>
    %162 = arith.addf %160, %161 : vector<1x128xf32>
    %163 = vector.extract_strided_slice %158 {offsets = [0, 0], sizes = [1, 96], strides = [1, 1]} : vector<1x128xf32> to vector<1x96xf32>
    %164 = arith.negf %163 : vector<1x96xf32>
    %165 = math.exp %164 : vector<1x96xf32>
    %cst_78 = arith.constant 1.000000e+00 : f32
    %166 = vector.broadcast %cst_78 : f32 to vector<1x96xf32>
    %167 = arith.addf %166, %165 : vector<1x96xf32>
    %168 = arith.divf %166, %167 : vector<1x96xf32>
    %169 = vector.extract_strided_slice %158 {offsets = [0, 96], sizes = [1, 32], strides = [1, 1]} : vector<1x128xf32> to vector<1x32xf32>
    %170 = math.tanh %169 : vector<1x32xf32>
    %171 = vector.extract_strided_slice %168 {offsets = [0, 32], sizes = [1, 32], strides = [1, 1]} : vector<1x96xf32> to vector<1x32xf32>
    %172 = arith.mulf %171, %126 : vector<1x32xf32>
    %173 = vector.extract_strided_slice %168 {offsets = [0, 0], sizes = [1, 32], strides = [1, 1]} : vector<1x96xf32> to vector<1x32xf32>
    %174 = arith.mulf %173, %170 : vector<1x32xf32>
    %175 = arith.addf %172, %174 : vector<1x32xf32>
    %176 = vector.extract_strided_slice %168 {offsets = [0, 64], sizes = [1, 32], strides = [1, 1]} : vector<1x96xf32> to vector<1x32xf32>
    %177 = math.tanh %175 : vector<1x32xf32>
    %178 = arith.mulf %176, %177 : vector<1x32xf32>
    %179 = vector.extract_strided_slice %162 {offsets = [0, 0], sizes = [1, 96], strides = [1, 1]} : vector<1x128xf32> to vector<1x96xf32>
    %180 = arith.negf %179 : vector<1x96xf32>
    %181 = math.exp %180 : vector<1x96xf32>
    %cst_79 = arith.constant 1.000000e+00 : f32
    %182 = vector.broadcast %cst_79 : f32 to vector<1x96xf32>
    %183 = arith.addf %182, %181 : vector<1x96xf32>
    %184 = arith.divf %182, %183 : vector<1x96xf32>
    %185 = vector.extract_strided_slice %162 {offsets = [0, 96], sizes = [1, 32], strides = [1, 1]} : vector<1x128xf32> to vector<1x32xf32>
    %186 = math.tanh %185 : vector<1x32xf32>
    %187 = vector.extract_strided_slice %184 {offsets = [0, 32], sizes = [1, 32], strides = [1, 1]} : vector<1x96xf32> to vector<1x32xf32>
    %188 = arith.mulf %187, %142 : vector<1x32xf32>
    %189 = vector.extract_strided_slice %184 {offsets = [0, 0], sizes = [1, 32], strides = [1, 1]} : vector<1x96xf32> to vector<1x32xf32>
    %190 = arith.mulf %189, %186 : vector<1x32xf32>
    %191 = arith.addf %188, %190 : vector<1x32xf32>
    %192 = vector.extract_strided_slice %184 {offsets = [0, 64], sizes = [1, 32], strides = [1, 1]} : vector<1x96xf32> to vector<1x32xf32>
    %193 = math.tanh %191 : vector<1x32xf32>
    %194 = arith.mulf %192, %193 : vector<1x32xf32>
    %c0_80 = arith.constant 0 : index
    %c2_81 = arith.constant 2 : index
    %c0_82 = arith.constant 0 : index
    %195 = vector.load %arg23[%c0_80, %c2_81, %c0_82] : memref<1x8x64xf32, #tpu.memory_space<vmem>>, vector<1x1x32xf32>
    %196 = vector.shape_cast %195 : vector<1x1x32xf32> to vector<1x32xf32>
    %197 = vector.shape_cast %178 : vector<1x32xf32> to vector<1x1x32xf32>
    tpu.vector_store %arg23[%c0_80, %c2_81, %c0_82], %197 {strides = array<i32>} : memref<1x8x64xf32, #tpu.memory_space<vmem>>, vector<1x1x32xf32>,
    %c0_83 = arith.constant 0 : index
    %c5_84 = arith.constant 5 : index
    %c32_85 = arith.constant 32 : index
    %198 = vector.load %arg23[%c0_83, %c5_84, %c32_85] : memref<1x8x64xf32, #tpu.memory_space<vmem>>, vector<1x1x32xf32>
    %199 = vector.shape_cast %198 : vector<1x1x32xf32> to vector<1x32xf32>
    %200 = vector.shape_cast %194 : vector<1x32xf32> to vector<1x1x32xf32>
    tpu.vector_store %arg23[%c0_83, %c5_84, %c32_85], %200 {strides = array<i32>} : memref<1x8x64xf32, #tpu.memory_space<vmem>>, vector<1x1x32xf32>,
    %201 = tpu.concatenate %178, %194 in 1 : vector<1x32xf32>, vector<1x32xf32> -> vector<1x64xf32>
    %202 = arith.truncf %201 : vector<1x64xf32> to vector<1x64xbf16>
    %cst_86 = arith.constant dense<0.000000e+00> : vector<1x256xf32>
    %203 = tpu.matmul %202, %53, %cst_86 {dimension_numbers = #tpu.dot_dimension_numbers<[1], [0], [0], [1], [0, 0, 1, 1], [], []>} : vector<1x64xbf16>, vector<64x256xbf16>, vector<1x256xf32> -> vector<1x256xf32>
    %c0_87 = arith.constant 0 : index
    %c3 = arith.constant 3 : index
    %c0_88 = arith.constant 0 : index
    %204 = vector.load %arg22[%c0_87, %c3, %c0_88] : memref<1x8x256xf32, #tpu.memory_space<vmem>>, vector<1x1x128xf32>
    %205 = vector.shape_cast %204 : vector<1x1x128xf32> to vector<1x128xf32>
    %206 = vector.extract_strided_slice %203 {offsets = [0, 0], sizes = [1, 128], strides = [1, 1]} : vector<1x256xf32> to vector<1x128xf32>
    %207 = arith.addf %205, %206 : vector<1x128xf32>
    %c0_89 = arith.constant 0 : index
    %c4 = arith.constant 4 : index
    %c128_90 = arith.constant 128 : index
    %208 = vector.load %arg22[%c0_89, %c4, %c128_90] : memref<1x8x256xf32, #tpu.memory_space<vmem>>, vector<1x1x128xf32>
    %209 = vector.shape_cast %208 : vector<1x1x128xf32> to vector<1x128xf32>
    %210 = vector.extract_strided_slice %203 {offsets = [0, 128], sizes = [1, 128], strides = [1, 1]} : vector<1x256xf32> to vector<1x128xf32>
    %211 = arith.addf %209, %210 : vector<1x128xf32>
    %212 = vector.extract_strided_slice %207 {offsets = [0, 0], sizes = [1, 96], strides = [1, 1]} : vector<1x128xf32> to vector<1x96xf32>
    %213 = arith.negf %212 : vector<1x96xf32>
    %214 = math.exp %213 : vector<1x96xf32>
    %cst_91 = arith.constant 1.000000e+00 : f32
    %215 = vector.broadcast %cst_91 : f32 to vector<1x96xf32>
    %216 = arith.addf %215, %214 : vector<1x96xf32>
    %217 = arith.divf %215, %216 : vector<1x96xf32>
    %218 = vector.extract_strided_slice %207 {offsets = [0, 96], sizes = [1, 32], strides = [1, 1]} : vector<1x128xf32> to vector<1x32xf32>
    %219 = math.tanh %218 : vector<1x32xf32>
    %220 = vector.extract_strided_slice %217 {offsets = [0, 32], sizes = [1, 32], strides = [1, 1]} : vector<1x96xf32> to vector<1x32xf32>
    %221 = arith.mulf %220, %175 : vector<1x32xf32>
    %222 = vector.extract_strided_slice %217 {offsets = [0, 0], sizes = [1, 32], strides = [1, 1]} : vector<1x96xf32> to vector<1x32xf32>
    %223 = arith.mulf %222, %219 : vector<1x32xf32>
    %224 = arith.addf %221, %223 : vector<1x32xf32>
    %225 = vector.extract_strided_slice %217 {offsets = [0, 64], sizes = [1, 32], strides = [1, 1]} : vector<1x96xf32> to vector<1x32xf32>
    %226 = math.tanh %224 : vector<1x32xf32>
    %227 = arith.mulf %225, %226 : vector<1x32xf32>
    %228 = vector.extract_strided_slice %211 {offsets = [0, 0], sizes = [1, 96], strides = [1, 1]} : vector<1x128xf32> to vector<1x96xf32>
    %229 = arith.negf %228 : vector<1x96xf32>
    %230 = math.exp %229 : vector<1x96xf32>
    %cst_92 = arith.constant 1.000000e+00 : f32
    %231 = vector.broadcast %cst_92 : f32 to vector<1x96xf32>
    %232 = arith.addf %231, %230 : vector<1x96xf32>
    %233 = arith.divf %231, %232 : vector<1x96xf32>
    %234 = vector.extract_strided_slice %211 {offsets = [0, 96], sizes = [1, 32], strides = [1, 1]} : vector<1x128xf32> to vector<1x32xf32>
    %235 = math.tanh %234 : vector<1x32xf32>
    %236 = vector.extract_strided_slice %233 {offsets = [0, 32], sizes = [1, 32], strides = [1, 1]} : vector<1x96xf32> to vector<1x32xf32>
    %237 = arith.mulf %236, %191 : vector<1x32xf32>
    %238 = vector.extract_strided_slice %233 {offsets = [0, 0], sizes = [1, 32], strides = [1, 1]} : vector<1x96xf32> to vector<1x32xf32>
    %239 = arith.mulf %238, %235 : vector<1x32xf32>
    %240 = arith.addf %237, %239 : vector<1x32xf32>
    %241 = vector.extract_strided_slice %233 {offsets = [0, 64], sizes = [1, 32], strides = [1, 1]} : vector<1x96xf32> to vector<1x32xf32>
    %242 = math.tanh %240 : vector<1x32xf32>
    %243 = arith.mulf %241, %242 : vector<1x32xf32>
    %c0_93 = arith.constant 0 : index
    %c3_94 = arith.constant 3 : index
    %c0_95 = arith.constant 0 : index
    %244 = vector.load %arg23[%c0_93, %c3_94, %c0_95] : memref<1x8x64xf32, #tpu.memory_space<vmem>>, vector<1x1x32xf32>
    %245 = vector.shape_cast %244 : vector<1x1x32xf32> to vector<1x32xf32>
    %246 = vector.shape_cast %227 : vector<1x32xf32> to vector<1x1x32xf32>
    tpu.vector_store %arg23[%c0_93, %c3_94, %c0_95], %246 {strides = array<i32>} : memref<1x8x64xf32, #tpu.memory_space<vmem>>, vector<1x1x32xf32>,
    %c0_96 = arith.constant 0 : index
    %c4_97 = arith.constant 4 : index
    %c32_98 = arith.constant 32 : index
    %247 = vector.load %arg23[%c0_96, %c4_97, %c32_98] : memref<1x8x64xf32, #tpu.memory_space<vmem>>, vector<1x1x32xf32>
    %248 = vector.shape_cast %247 : vector<1x1x32xf32> to vector<1x32xf32>
    %249 = vector.shape_cast %243 : vector<1x32xf32> to vector<1x1x32xf32>
    tpu.vector_store %arg23[%c0_96, %c4_97, %c32_98], %249 {strides = array<i32>} : memref<1x8x64xf32, #tpu.memory_space<vmem>>, vector<1x1x32xf32>,
    %250 = tpu.concatenate %227, %243 in 1 : vector<1x32xf32>, vector<1x32xf32> -> vector<1x64xf32>
    %251 = arith.truncf %250 : vector<1x64xf32> to vector<1x64xbf16>
    %cst_99 = arith.constant dense<0.000000e+00> : vector<1x256xf32>
    %252 = tpu.matmul %251, %53, %cst_99 {dimension_numbers = #tpu.dot_dimension_numbers<[1], [0], [0], [1], [0, 0, 1, 1], [], []>} : vector<1x64xbf16>, vector<64x256xbf16>, vector<1x256xf32> -> vector<1x256xf32>
    %c0_100 = arith.constant 0 : index
    %c4_101 = arith.constant 4 : index
    %c0_102 = arith.constant 0 : index
    %253 = vector.load %arg22[%c0_100, %c4_101, %c0_102] : memref<1x8x256xf32, #tpu.memory_space<vmem>>, vector<1x1x128xf32>
    %254 = vector.shape_cast %253 : vector<1x1x128xf32> to vector<1x128xf32>
    %255 = vector.extract_strided_slice %252 {offsets = [0, 0], sizes = [1, 128], strides = [1, 1]} : vector<1x256xf32> to vector<1x128xf32>
    %256 = arith.addf %254, %255 : vector<1x128xf32>
    %c0_103 = arith.constant 0 : index
    %c3_104 = arith.constant 3 : index
    %c128_105 = arith.constant 128 : index
    %257 = vector.load %arg22[%c0_103, %c3_104, %c128_105] : memref<1x8x256xf32, #tpu.memory_space<vmem>>, vector<1x1x128xf32>
    %258 = vector.shape_cast %257 : vector<1x1x128xf32> to vector<1x128xf32>
    %259 = vector.extract_strided_slice %252 {offsets = [0, 128], sizes = [1, 128], strides = [1, 1]} : vector<1x256xf32> to vector<1x128xf32>
    %260 = arith.addf %258, %259 : vector<1x128xf32>
    %261 = vector.extract_strided_slice %256 {offsets = [0, 0], sizes = [1, 96], strides = [1, 1]} : vector<1x128xf32> to vector<1x96xf32>
    %262 = arith.negf %261 : vector<1x96xf32>
    %263 = math.exp %262 : vector<1x96xf32>
    %cst_106 = arith.constant 1.000000e+00 : f32
    %264 = vector.broadcast %cst_106 : f32 to vector<1x96xf32>
    %265 = arith.addf %264, %263 : vector<1x96xf32>
    %266 = arith.divf %264, %265 : vector<1x96xf32>
    %267 = vector.extract_strided_slice %256 {offsets = [0, 96], sizes = [1, 32], strides = [1, 1]} : vector<1x128xf32> to vector<1x32xf32>
    %268 = math.tanh %267 : vector<1x32xf32>
    %269 = vector.extract_strided_slice %266 {offsets = [0, 32], sizes = [1, 32], strides = [1, 1]} : vector<1x96xf32> to vector<1x32xf32>
    %270 = arith.mulf %269, %224 : vector<1x32xf32>
    %271 = vector.extract_strided_slice %266 {offsets = [0, 0], sizes = [1, 32], strides = [1, 1]} : vector<1x96xf32> to vector<1x32xf32>
    %272 = arith.mulf %271, %268 : vector<1x32xf32>
    %273 = arith.addf %270, %272 : vector<1x32xf32>
    %274 = vector.extract_strided_slice %266 {offsets = [0, 64], sizes = [1, 32], strides = [1, 1]} : vector<1x96xf32> to vector<1x32xf32>
    %275 = math.tanh %273 : vector<1x32xf32>
    %276 = arith.mulf %274, %275 : vector<1x32xf32>
    %277 = vector.extract_strided_slice %260 {offsets = [0, 0], sizes = [1, 96], strides = [1, 1]} : vector<1x128xf32> to vector<1x96xf32>
    %278 = arith.negf %277 : vector<1x96xf32>
    %279 = math.exp %278 : vector<1x96xf32>
    %cst_107 = arith.constant 1.000000e+00 : f32
    %280 = vector.broadcast %cst_107 : f32 to vector<1x96xf32>
    %281 = arith.addf %280, %279 : vector<1x96xf32>
    %282 = arith.divf %280, %281 : vector<1x96xf32>
    %283 = vector.extract_strided_slice %260 {offsets = [0, 96], sizes = [1, 32], strides = [1, 1]} : vector<1x128xf32> to vector<1x32xf32>
    %284 = math.tanh %283 : vector<1x32xf32>
    %285 = vector.extract_strided_slice %282 {offsets = [0, 32], sizes = [1, 32], strides = [1, 1]} : vector<1x96xf32> to vector<1x32xf32>
    %286 = arith.mulf %285, %240 : vector<1x32xf32>
    %287 = vector.extract_strided_slice %282 {offsets = [0, 0], sizes = [1, 32], strides = [1, 1]} : vector<1x96xf32> to vector<1x32xf32>
    %288 = arith.mulf %287, %284 : vector<1x32xf32>
    %289 = arith.addf %286, %288 : vector<1x32xf32>
    %290 = vector.extract_strided_slice %282 {offsets = [0, 64], sizes = [1, 32], strides = [1, 1]} : vector<1x96xf32> to vector<1x32xf32>
    %291 = math.tanh %289 : vector<1x32xf32>
    %292 = arith.mulf %290, %291 : vector<1x32xf32>
    %c0_108 = arith.constant 0 : index
    %c4_109 = arith.constant 4 : index
    %c0_110 = arith.constant 0 : index
    %293 = vector.load %arg23[%c0_108, %c4_109, %c0_110] : memref<1x8x64xf32, #tpu.memory_space<vmem>>, vector<1x1x32xf32>
    %294 = vector.shape_cast %293 : vector<1x1x32xf32> to vector<1x32xf32>
    %295 = vector.shape_cast %276 : vector<1x32xf32> to vector<1x1x32xf32>
    tpu.vector_store %arg23[%c0_108, %c4_109, %c0_110], %295 {strides = array<i32>} : memref<1x8x64xf32, #tpu.memory_space<vmem>>, vector<1x1x32xf32>,
    %c0_111 = arith.constant 0 : index
    %c3_112 = arith.constant 3 : index
    %c32_113 = arith.constant 32 : index
    %296 = vector.load %arg23[%c0_111, %c3_112, %c32_113] : memref<1x8x64xf32, #tpu.memory_space<vmem>>, vector<1x1x32xf32>
    %297 = vector.shape_cast %296 : vector<1x1x32xf32> to vector<1x32xf32>
    %298 = vector.shape_cast %292 : vector<1x32xf32> to vector<1x1x32xf32>
    tpu.vector_store %arg23[%c0_111, %c3_112, %c32_113], %298 {strides = array<i32>} : memref<1x8x64xf32, #tpu.memory_space<vmem>>, vector<1x1x32xf32>,
    %299 = tpu.concatenate %276, %292 in 1 : vector<1x32xf32>, vector<1x32xf32> -> vector<1x64xf32>
    %300 = arith.truncf %299 : vector<1x64xf32> to vector<1x64xbf16>
    %cst_114 = arith.constant dense<0.000000e+00> : vector<1x256xf32>
    %301 = tpu.matmul %300, %53, %cst_114 {dimension_numbers = #tpu.dot_dimension_numbers<[1], [0], [0], [1], [0, 0, 1, 1], [], []>} : vector<1x64xbf16>, vector<64x256xbf16>, vector<1x256xf32> -> vector<1x256xf32>
    %c0_115 = arith.constant 0 : index
    %c5_116 = arith.constant 5 : index
    %c0_117 = arith.constant 0 : index
    %302 = vector.load %arg22[%c0_115, %c5_116, %c0_117] : memref<1x8x256xf32, #tpu.memory_space<vmem>>, vector<1x1x128xf32>
    %303 = vector.shape_cast %302 : vector<1x1x128xf32> to vector<1x128xf32>
    %304 = vector.extract_strided_slice %301 {offsets = [0, 0], sizes = [1, 128], strides = [1, 1]} : vector<1x256xf32> to vector<1x128xf32>
    %305 = arith.addf %303, %304 : vector<1x128xf32>
    %c0_118 = arith.constant 0 : index
    %c2_119 = arith.constant 2 : index
    %c128_120 = arith.constant 128 : index
    %306 = vector.load %arg22[%c0_118, %c2_119, %c128_120] : memref<1x8x256xf32, #tpu.memory_space<vmem>>, vector<1x1x128xf32>
    %307 = vector.shape_cast %306 : vector<1x1x128xf32> to vector<1x128xf32>
    %308 = vector.extract_strided_slice %301 {offsets = [0, 128], sizes = [1, 128], strides = [1, 1]} : vector<1x256xf32> to vector<1x128xf32>
    %309 = arith.addf %307, %308 : vector<1x128xf32>
    %310 = vector.extract_strided_slice %305 {offsets = [0, 0], sizes = [1, 96], strides = [1, 1]} : vector<1x128xf32> to vector<1x96xf32>
    %311 = arith.negf %310 : vector<1x96xf32>
    %312 = math.exp %311 : vector<1x96xf32>
    %cst_121 = arith.constant 1.000000e+00 : f32
    %313 = vector.broadcast %cst_121 : f32 to vector<1x96xf32>
    %314 = arith.addf %313, %312 : vector<1x96xf32>
    %315 = arith.divf %313, %314 : vector<1x96xf32>
    %316 = vector.extract_strided_slice %305 {offsets = [0, 96], sizes = [1, 32], strides = [1, 1]} : vector<1x128xf32> to vector<1x32xf32>
    %317 = math.tanh %316 : vector<1x32xf32>
    %318 = vector.extract_strided_slice %315 {offsets = [0, 32], sizes = [1, 32], strides = [1, 1]} : vector<1x96xf32> to vector<1x32xf32>
    %319 = arith.mulf %318, %273 : vector<1x32xf32>
    %320 = vector.extract_strided_slice %315 {offsets = [0, 0], sizes = [1, 32], strides = [1, 1]} : vector<1x96xf32> to vector<1x32xf32>
    %321 = arith.mulf %320, %317 : vector<1x32xf32>
    %322 = arith.addf %319, %321 : vector<1x32xf32>
    %323 = vector.extract_strided_slice %315 {offsets = [0, 64], sizes = [1, 32], strides = [1, 1]} : vector<1x96xf32> to vector<1x32xf32>
    %324 = math.tanh %322 : vector<1x32xf32>
    %325 = arith.mulf %323, %324 : vector<1x32xf32>
    %326 = vector.extract_strided_slice %309 {offsets = [0, 0], sizes = [1, 96], strides = [1, 1]} : vector<1x128xf32> to vector<1x96xf32>
    %327 = arith.negf %326 : vector<1x96xf32>
    %328 = math.exp %327 : vector<1x96xf32>
    %cst_122 = arith.constant 1.000000e+00 : f32
    %329 = vector.broadcast %cst_122 : f32 to vector<1x96xf32>
    %330 = arith.addf %329, %328 : vector<1x96xf32>
    %331 = arith.divf %329, %330 : vector<1x96xf32>
    %332 = vector.extract_strided_slice %309 {offsets = [0, 96], sizes = [1, 32], strides = [1, 1]} : vector<1x128xf32> to vector<1x32xf32>
    %333 = math.tanh %332 : vector<1x32xf32>
    %334 = vector.extract_strided_slice %331 {offsets = [0, 32], sizes = [1, 32], strides = [1, 1]} : vector<1x96xf32> to vector<1x32xf32>
    %335 = arith.mulf %334, %289 : vector<1x32xf32>
    %336 = vector.extract_strided_slice %331 {offsets = [0, 0], sizes = [1, 32], strides = [1, 1]} : vector<1x96xf32> to vector<1x32xf32>
    %337 = arith.mulf %336, %333 : vector<1x32xf32>
    %338 = arith.addf %335, %337 : vector<1x32xf32>
    %339 = vector.extract_strided_slice %331 {offsets = [0, 64], sizes = [1, 32], strides = [1, 1]} : vector<1x96xf32> to vector<1x32xf32>
    %340 = math.tanh %338 : vector<1x32xf32>
    %341 = arith.mulf %339, %340 : vector<1x32xf32>
    %c0_123 = arith.constant 0 : index
    %c5_124 = arith.constant 5 : index
    %c0_125 = arith.constant 0 : index
    %342 = vector.load %arg23[%c0_123, %c5_124, %c0_125] : memref<1x8x64xf32, #tpu.memory_space<vmem>>, vector<1x1x32xf32>
    %343 = vector.shape_cast %342 : vector<1x1x32xf32> to vector<1x32xf32>
    %344 = vector.shape_cast %325 : vector<1x32xf32> to vector<1x1x32xf32>
    tpu.vector_store %arg23[%c0_123, %c5_124, %c0_125], %344 {strides = array<i32>} : memref<1x8x64xf32, #tpu.memory_space<vmem>>, vector<1x1x32xf32>,
    %c0_126 = arith.constant 0 : index
    %c2_127 = arith.constant 2 : index
    %c32_128 = arith.constant 32 : index
    %345 = vector.load %arg23[%c0_126, %c2_127, %c32_128] : memref<1x8x64xf32, #tpu.memory_space<vmem>>, vector<1x1x32xf32>
    %346 = vector.shape_cast %345 : vector<1x1x32xf32> to vector<1x32xf32>
    %347 = vector.shape_cast %341 : vector<1x32xf32> to vector<1x1x32xf32>
    tpu.vector_store %arg23[%c0_126, %c2_127, %c32_128], %347 {strides = array<i32>} : memref<1x8x64xf32, #tpu.memory_space<vmem>>, vector<1x1x32xf32>,
    %348 = tpu.concatenate %325, %341 in 1 : vector<1x32xf32>, vector<1x32xf32> -> vector<1x64xf32>
    %349 = arith.truncf %348 : vector<1x64xf32> to vector<1x64xbf16>
    %cst_129 = arith.constant dense<0.000000e+00> : vector<1x256xf32>
    %350 = tpu.matmul %349, %53, %cst_129 {dimension_numbers = #tpu.dot_dimension_numbers<[1], [0], [0], [1], [0, 0, 1, 1], [], []>} : vector<1x64xbf16>, vector<64x256xbf16>, vector<1x256xf32> -> vector<1x256xf32>
    %c0_130 = arith.constant 0 : index
    %c6_131 = arith.constant 6 : index
    %c0_132 = arith.constant 0 : index
    %351 = vector.load %arg22[%c0_130, %c6_131, %c0_132] : memref<1x8x256xf32, #tpu.memory_space<vmem>>, vector<1x1x128xf32>
    %352 = vector.shape_cast %351 : vector<1x1x128xf32> to vector<1x128xf32>
    %353 = vector.extract_strided_slice %350 {offsets = [0, 0], sizes = [1, 128], strides = [1, 1]} : vector<1x256xf32> to vector<1x128xf32>
    %354 = arith.addf %352, %353 : vector<1x128xf32>
    %c0_133 = arith.constant 0 : index
    %c1_134 = arith.constant 1 : index
    %c128_135 = arith.constant 128 : index
    %355 = vector.load %arg22[%c0_133, %c1_134, %c128_135] : memref<1x8x256xf32, #tpu.memory_space<vmem>>, vector<1x1x128xf32>
    %356 = vector.shape_cast %355 : vector<1x1x128xf32> to vector<1x128xf32>
    %357 = vector.extract_strided_slice %350 {offsets = [0, 128], sizes = [1, 128], strides = [1, 1]} : vector<1x256xf32> to vector<1x128xf32>
    %358 = arith.addf %356, %357 : vector<1x128xf32>
    %359 = vector.extract_strided_slice %354 {offsets = [0, 0], sizes = [1, 96], strides = [1, 1]} : vector<1x128xf32> to vector<1x96xf32>
    %360 = arith.negf %359 : vector<1x96xf32>
    %361 = math.exp %360 : vector<1x96xf32>
    %cst_136 = arith.constant 1.000000e+00 : f32
    %362 = vector.broadcast %cst_136 : f32 to vector<1x96xf32>
    %363 = arith.addf %362, %361 : vector<1x96xf32>
    %364 = arith.divf %362, %363 : vector<1x96xf32>
    %365 = vector.extract_strided_slice %354 {offsets = [0, 96], sizes = [1, 32], strides = [1, 1]} : vector<1x128xf32> to vector<1x32xf32>
    %366 = math.tanh %365 : vector<1x32xf32>
    %367 = vector.extract_strided_slice %364 {offsets = [0, 32], sizes = [1, 32], strides = [1, 1]} : vector<1x96xf32> to vector<1x32xf32>
    %368 = arith.mulf %367, %322 : vector<1x32xf32>
    %369 = vector.extract_strided_slice %364 {offsets = [0, 0], sizes = [1, 32], strides = [1, 1]} : vector<1x96xf32> to vector<1x32xf32>
    %370 = arith.mulf %369, %366 : vector<1x32xf32>
    %371 = arith.addf %368, %370 : vector<1x32xf32>
    %372 = vector.extract_strided_slice %364 {offsets = [0, 64], sizes = [1, 32], strides = [1, 1]} : vector<1x96xf32> to vector<1x32xf32>
    %373 = math.tanh %371 : vector<1x32xf32>
    %374 = arith.mulf %372, %373 : vector<1x32xf32>
    %375 = vector.extract_strided_slice %358 {offsets = [0, 0], sizes = [1, 96], strides = [1, 1]} : vector<1x128xf32> to vector<1x96xf32>
    %376 = arith.negf %375 : vector<1x96xf32>
    %377 = math.exp %376 : vector<1x96xf32>
    %cst_137 = arith.constant 1.000000e+00 : f32
    %378 = vector.broadcast %cst_137 : f32 to vector<1x96xf32>
    %379 = arith.addf %378, %377 : vector<1x96xf32>
    %380 = arith.divf %378, %379 : vector<1x96xf32>
    %381 = vector.extract_strided_slice %358 {offsets = [0, 96], sizes = [1, 32], strides = [1, 1]} : vector<1x128xf32> to vector<1x32xf32>
    %382 = math.tanh %381 : vector<1x32xf32>
    %383 = vector.extract_strided_slice %380 {offsets = [0, 32], sizes = [1, 32], strides = [1, 1]} : vector<1x96xf32> to vector<1x32xf32>
    %384 = arith.mulf %383, %338 : vector<1x32xf32>
    %385 = vector.extract_strided_slice %380 {offsets = [0, 0], sizes = [1, 32], strides = [1, 1]} : vector<1x96xf32> to vector<1x32xf32>
    %386 = arith.mulf %385, %382 : vector<1x32xf32>
    %387 = arith.addf %384, %386 : vector<1x32xf32>
    %388 = vector.extract_strided_slice %380 {offsets = [0, 64], sizes = [1, 32], strides = [1, 1]} : vector<1x96xf32> to vector<1x32xf32>
    %389 = math.tanh %387 : vector<1x32xf32>
    %390 = arith.mulf %388, %389 : vector<1x32xf32>
    %c0_138 = arith.constant 0 : index
    %c6_139 = arith.constant 6 : index
    %c0_140 = arith.constant 0 : index
    %391 = vector.load %arg23[%c0_138, %c6_139, %c0_140] : memref<1x8x64xf32, #tpu.memory_space<vmem>>, vector<1x1x32xf32>
    %392 = vector.shape_cast %391 : vector<1x1x32xf32> to vector<1x32xf32>
    %393 = vector.shape_cast %374 : vector<1x32xf32> to vector<1x1x32xf32>
    tpu.vector_store %arg23[%c0_138, %c6_139, %c0_140], %393 {strides = array<i32>} : memref<1x8x64xf32, #tpu.memory_space<vmem>>, vector<1x1x32xf32>,
    %c0_141 = arith.constant 0 : index
    %c1_142 = arith.constant 1 : index
    %c32_143 = arith.constant 32 : index
    %394 = vector.load %arg23[%c0_141, %c1_142, %c32_143] : memref<1x8x64xf32, #tpu.memory_space<vmem>>, vector<1x1x32xf32>
    %395 = vector.shape_cast %394 : vector<1x1x32xf32> to vector<1x32xf32>
    %396 = vector.shape_cast %390 : vector<1x32xf32> to vector<1x1x32xf32>
    tpu.vector_store %arg23[%c0_141, %c1_142, %c32_143], %396 {strides = array<i32>} : memref<1x8x64xf32, #tpu.memory_space<vmem>>, vector<1x1x32xf32>,
    %397 = tpu.concatenate %374, %390 in 1 : vector<1x32xf32>, vector<1x32xf32> -> vector<1x64xf32>
    %398 = arith.truncf %397 : vector<1x64xf32> to vector<1x64xbf16>
    %cst_144 = arith.constant dense<0.000000e+00> : vector<1x256xf32>
    %399 = tpu.matmul %398, %53, %cst_144 {dimension_numbers = #tpu.dot_dimension_numbers<[1], [0], [0], [1], [0, 0, 1, 1], [], []>} : vector<1x64xbf16>, vector<64x256xbf16>, vector<1x256xf32> -> vector<1x256xf32>
    %c0_145 = arith.constant 0 : index
    %c7_146 = arith.constant 7 : index
    %c0_147 = arith.constant 0 : index
    %400 = vector.load %arg22[%c0_145, %c7_146, %c0_147] : memref<1x8x256xf32, #tpu.memory_space<vmem>>, vector<1x1x128xf32>
    %401 = vector.shape_cast %400 : vector<1x1x128xf32> to vector<1x128xf32>
    %402 = vector.extract_strided_slice %399 {offsets = [0, 0], sizes = [1, 128], strides = [1, 1]} : vector<1x256xf32> to vector<1x128xf32>
    %403 = arith.addf %401, %402 : vector<1x128xf32>
    %c0_148 = arith.constant 0 : index
    %c0_149 = arith.constant 0 : index
    %c128_150 = arith.constant 128 : index
    %404 = vector.load %arg22[%c0_148, %c0_149, %c128_150] : memref<1x8x256xf32, #tpu.memory_space<vmem>>, vector<1x1x128xf32>
    %405 = vector.shape_cast %404 : vector<1x1x128xf32> to vector<1x128xf32>
    %406 = vector.extract_strided_slice %399 {offsets = [0, 128], sizes = [1, 128], strides = [1, 1]} : vector<1x256xf32> to vector<1x128xf32>
    %407 = arith.addf %405, %406 : vector<1x128xf32>
    %408 = vector.extract_strided_slice %403 {offsets = [0, 0], sizes = [1, 96], strides = [1, 1]} : vector<1x128xf32> to vector<1x96xf32>
    %409 = arith.negf %408 : vector<1x96xf32>
    %410 = math.exp %409 : vector<1x96xf32>
    %cst_151 = arith.constant 1.000000e+00 : f32
    %411 = vector.broadcast %cst_151 : f32 to vector<1x96xf32>
    %412 = arith.addf %411, %410 : vector<1x96xf32>
    %413 = arith.divf %411, %412 : vector<1x96xf32>
    %414 = vector.extract_strided_slice %403 {offsets = [0, 96], sizes = [1, 32], strides = [1, 1]} : vector<1x128xf32> to vector<1x32xf32>
    %415 = math.tanh %414 : vector<1x32xf32>
    %416 = vector.extract_strided_slice %413 {offsets = [0, 32], sizes = [1, 32], strides = [1, 1]} : vector<1x96xf32> to vector<1x32xf32>
    %417 = arith.mulf %416, %371 : vector<1x32xf32>
    %418 = vector.extract_strided_slice %413 {offsets = [0, 0], sizes = [1, 32], strides = [1, 1]} : vector<1x96xf32> to vector<1x32xf32>
    %419 = arith.mulf %418, %415 : vector<1x32xf32>
    %420 = arith.addf %417, %419 : vector<1x32xf32>
    %421 = vector.extract_strided_slice %413 {offsets = [0, 64], sizes = [1, 32], strides = [1, 1]} : vector<1x96xf32> to vector<1x32xf32>
    %422 = math.tanh %420 : vector<1x32xf32>
    %423 = arith.mulf %421, %422 : vector<1x32xf32>
    %424 = vector.extract_strided_slice %407 {offsets = [0, 0], sizes = [1, 96], strides = [1, 1]} : vector<1x128xf32> to vector<1x96xf32>
    %425 = arith.negf %424 : vector<1x96xf32>
    %426 = math.exp %425 : vector<1x96xf32>
    %cst_152 = arith.constant 1.000000e+00 : f32
    %427 = vector.broadcast %cst_152 : f32 to vector<1x96xf32>
    %428 = arith.addf %427, %426 : vector<1x96xf32>
    %429 = arith.divf %427, %428 : vector<1x96xf32>
    %430 = vector.extract_strided_slice %407 {offsets = [0, 96], sizes = [1, 32], strides = [1, 1]} : vector<1x128xf32> to vector<1x32xf32>
    %431 = math.tanh %430 : vector<1x32xf32>
    %432 = vector.extract_strided_slice %429 {offsets = [0, 32], sizes = [1, 32], strides = [1, 1]} : vector<1x96xf32> to vector<1x32xf32>
    %433 = arith.mulf %432, %387 : vector<1x32xf32>
    %434 = vector.extract_strided_slice %429 {offsets = [0, 0], sizes = [1, 32], strides = [1, 1]} : vector<1x96xf32> to vector<1x32xf32>
    %435 = arith.mulf %434, %431 : vector<1x32xf32>
    %436 = arith.addf %433, %435 : vector<1x32xf32>
    %437 = vector.extract_strided_slice %429 {offsets = [0, 64], sizes = [1, 32], strides = [1, 1]} : vector<1x96xf32> to vector<1x32xf32>
    %438 = math.tanh %436 : vector<1x32xf32>
    %439 = arith.mulf %437, %438 : vector<1x32xf32>
    %c0_153 = arith.constant 0 : index
    %c7_154 = arith.constant 7 : index
    %c0_155 = arith.constant 0 : index
    %440 = vector.load %arg23[%c0_153, %c7_154, %c0_155] : memref<1x8x64xf32, #tpu.memory_space<vmem>>, vector<1x1x32xf32>
    %441 = vector.shape_cast %440 : vector<1x1x32xf32> to vector<1x32xf32>
    %442 = vector.shape_cast %423 : vector<1x32xf32> to vector<1x1x32xf32>
    tpu.vector_store %arg23[%c0_153, %c7_154, %c0_155], %442 {strides = array<i32>} : memref<1x8x64xf32, #tpu.memory_space<vmem>>, vector<1x1x32xf32>,
    %c0_156 = arith.constant 0 : index
    %c0_157 = arith.constant 0 : index
    %c32_158 = arith.constant 32 : index
    %443 = vector.load %arg23[%c0_156, %c0_157, %c32_158] : memref<1x8x64xf32, #tpu.memory_space<vmem>>, vector<1x1x32xf32>
    %444 = vector.shape_cast %443 : vector<1x1x32xf32> to vector<1x32xf32>
    %445 = vector.shape_cast %439 : vector<1x32xf32> to vector<1x1x32xf32>
    tpu.vector_store %arg23[%c0_156, %c0_157, %c32_158], %445 {strides = array<i32>} : memref<1x8x64xf32, #tpu.memory_space<vmem>>, vector<1x1x32xf32>,
    %c0_159 = arith.constant 0 : index
    %c0_160 = arith.constant 0 : index
    %c0_161 = arith.constant 0 : index
    %446 = vector.load %arg23[%c0_159, %c0_160, %c0_161] : memref<1x8x64xf32, #tpu.memory_space<vmem>>, vector<1x8x64xf32>
    %447 = arith.truncf %446 : vector<1x8x64xf32> to vector<1x8x64xbf16>
    %448 = vector.shape_cast %447 : vector<1x8x64xbf16> to vector<8x64xbf16>
    %c0_162 = arith.constant 0 : index
    %c0_163 = arith.constant 0 : index
    %449 = vector.load %arg9[%c0_162, %c0_163] : memref<64x256xbf16, #tpu.memory_space<vmem>>, vector<64x256xbf16>
    %cst_164 = arith.constant dense<0.000000e+00> : vector<8x256xf32>
    %450 = tpu.matmul %448, %449, %cst_164 {dimension_numbers = #tpu.dot_dimension_numbers<[1], [0], [0], [1], [0, 0, 1, 1], [], []>} : vector<8x64xbf16>, vector<64x256xbf16>, vector<8x256xf32> -> vector<8x256xf32>
    %c0_165 = arith.constant 0 : index
    %c0_166 = arith.constant 0 : index
    %451 = vector.load %arg11[%c0_165, %c0_166] : memref<1x256xf32, #tpu.memory_space<vmem>>, vector<1x256xf32>
    %452 = vector.broadcast %451 : vector<1x256xf32> to vector<8x256xf32>
    %453 = arith.addf %450, %452 : vector<8x256xf32>
    %454 = vector.shape_cast %453 : vector<8x256xf32> to vector<1x8x256xf32>
    %c0_167 = arith.constant 0 : index
    %c0_168 = arith.constant 0 : index
    %c0_169 = arith.constant 0 : index
    %455 = vector.load %arg22[%c0_167, %c0_168, %c0_169] : memref<1x8x256xf32, #tpu.memory_space<vmem>>, vector<1x8x256xf32>
    tpu.vector_store %arg22[%c0_167, %c0_168, %c0_169], %454 {strides = array<i32>} : memref<1x8x256xf32, #tpu.memory_space<vmem>>, vector<1x8x256xf32>,
    %c0_170 = arith.constant 0 : index
    %c0_171 = arith.constant 0 : index
    %456 = vector.load %arg10[%c0_170, %c0_171] : memref<64x256xbf16, #tpu.memory_space<vmem>>, vector<32x128xbf16>
    %457 = arith.truncf %42 : vector<1x32xf32> to vector<1x32xbf16>
    %cst_172 = arith.constant dense<0.000000e+00> : vector<1x128xf32>
    %458 = tpu.matmul %457, %456, %cst_172 {dimension_numbers = #tpu.dot_dimension_numbers<[1], [0], [0], [1], [0, 0, 1, 1], [], []>} : vector<1x32xbf16>, vector<32x128xbf16>, vector<1x128xf32> -> vector<1x128xf32>
    %c0_173 = arith.constant 0 : index
    %c0_174 = arith.constant 0 : index
    %c0_175 = arith.constant 0 : index
    %459 = vector.load %arg22[%c0_173, %c0_174, %c0_175] : memref<1x8x256xf32, #tpu.memory_space<vmem>>, vector<1x1x128xf32>
    %460 = vector.shape_cast %459 : vector<1x1x128xf32> to vector<1x128xf32>
    %461 = arith.addf %460, %458 : vector<1x128xf32>
    %462 = vector.extract_strided_slice %461 {offsets = [0, 0], sizes = [1, 96], strides = [1, 1]} : vector<1x128xf32> to vector<1x96xf32>
    %463 = arith.negf %462 : vector<1x96xf32>
    %464 = math.exp %463 : vector<1x96xf32>
    %cst_176 = arith.constant 1.000000e+00 : f32
    %465 = vector.broadcast %cst_176 : f32 to vector<1x96xf32>
    %466 = arith.addf %465, %464 : vector<1x96xf32>
    %467 = arith.divf %465, %466 : vector<1x96xf32>
    %468 = vector.extract_strided_slice %461 {offsets = [0, 96], sizes = [1, 32], strides = [1, 1]} : vector<1x128xf32> to vector<1x32xf32>
    %469 = math.tanh %468 : vector<1x32xf32>
    %470 = vector.extract_strided_slice %467 {offsets = [0, 32], sizes = [1, 32], strides = [1, 1]} : vector<1x96xf32> to vector<1x32xf32>
    %471 = arith.mulf %470, %42 : vector<1x32xf32>
    %472 = vector.extract_strided_slice %467 {offsets = [0, 0], sizes = [1, 32], strides = [1, 1]} : vector<1x96xf32> to vector<1x32xf32>
    %473 = arith.mulf %472, %469 : vector<1x32xf32>
    %474 = arith.addf %471, %473 : vector<1x32xf32>
    %475 = vector.extract_strided_slice %467 {offsets = [0, 64], sizes = [1, 32], strides = [1, 1]} : vector<1x96xf32> to vector<1x32xf32>
    %476 = math.tanh %474 : vector<1x32xf32>
    %477 = arith.mulf %475, %476 : vector<1x32xf32>
    %478 = arith.truncf %477 : vector<1x32xf32> to vector<1x32xbf16>
    %cst_177 = arith.constant dense<0.000000e+00> : vector<1x128xf32>
    %479 = tpu.matmul %478, %456, %cst_177 {dimension_numbers = #tpu.dot_dimension_numbers<[1], [0], [0], [1], [0, 0, 1, 1], [], []>} : vector<1x32xbf16>, vector<32x128xbf16>, vector<1x128xf32> -> vector<1x128xf32>
    %c0_178 = arith.constant 0 : index
    %c1_179 = arith.constant 1 : index
    %c0_180 = arith.constant 0 : index
    %480 = vector.load %arg22[%c0_178, %c1_179, %c0_180] : memref<1x8x256xf32, #tpu.memory_space<vmem>>, vector<1x1x128xf32>
    %481 = vector.shape_cast %480 : vector<1x1x128xf32> to vector<1x128xf32>
    %482 = arith.addf %481, %479 : vector<1x128xf32>
    %483 = vector.extract_strided_slice %482 {offsets = [0, 0], sizes = [1, 96], strides = [1, 1]} : vector<1x128xf32> to vector<1x96xf32>
    %484 = arith.negf %483 : vector<1x96xf32>
    %485 = math.exp %484 : vector<1x96xf32>
    %cst_181 = arith.constant 1.000000e+00 : f32
    %486 = vector.broadcast %cst_181 : f32 to vector<1x96xf32>
    %487 = arith.addf %486, %485 : vector<1x96xf32>
    %488 = arith.divf %486, %487 : vector<1x96xf32>
    %489 = vector.extract_strided_slice %482 {offsets = [0, 96], sizes = [1, 32], strides = [1, 1]} : vector<1x128xf32> to vector<1x32xf32>
    %490 = math.tanh %489 : vector<1x32xf32>
    %491 = vector.extract_strided_slice %488 {offsets = [0, 32], sizes = [1, 32], strides = [1, 1]} : vector<1x96xf32> to vector<1x32xf32>
    %492 = arith.mulf %491, %474 : vector<1x32xf32>
    %493 = vector.extract_strided_slice %488 {offsets = [0, 0], sizes = [1, 32], strides = [1, 1]} : vector<1x96xf32> to vector<1x32xf32>
    %494 = arith.mulf %493, %490 : vector<1x32xf32>
    %495 = arith.addf %492, %494 : vector<1x32xf32>
    %496 = vector.extract_strided_slice %488 {offsets = [0, 64], sizes = [1, 32], strides = [1, 1]} : vector<1x96xf32> to vector<1x32xf32>
    %497 = math.tanh %495 : vector<1x32xf32>
    %498 = arith.mulf %496, %497 : vector<1x32xf32>
    %499 = arith.truncf %498 : vector<1x32xf32> to vector<1x32xbf16>
    %cst_182 = arith.constant dense<0.000000e+00> : vector<1x128xf32>
    %500 = tpu.matmul %499, %456, %cst_182 {dimension_numbers = #tpu.dot_dimension_numbers<[1], [0], [0], [1], [0, 0, 1, 1], [], []>} : vector<1x32xbf16>, vector<32x128xbf16>, vector<1x128xf32> -> vector<1x128xf32>
    %c0_183 = arith.constant 0 : index
    %c2_184 = arith.constant 2 : index
    %c0_185 = arith.constant 0 : index
    %501 = vector.load %arg22[%c0_183, %c2_184, %c0_185] : memref<1x8x256xf32, #tpu.memory_space<vmem>>, vector<1x1x128xf32>
    %502 = vector.shape_cast %501 : vector<1x1x128xf32> to vector<1x128xf32>
    %503 = arith.addf %502, %500 : vector<1x128xf32>
    %504 = vector.extract_strided_slice %503 {offsets = [0, 0], sizes = [1, 96], strides = [1, 1]} : vector<1x128xf32> to vector<1x96xf32>
    %505 = arith.negf %504 : vector<1x96xf32>
    %506 = math.exp %505 : vector<1x96xf32>
    %cst_186 = arith.constant 1.000000e+00 : f32
    %507 = vector.broadcast %cst_186 : f32 to vector<1x96xf32>
    %508 = arith.addf %507, %506 : vector<1x96xf32>
    %509 = arith.divf %507, %508 : vector<1x96xf32>
    %510 = vector.extract_strided_slice %503 {offsets = [0, 96], sizes = [1, 32], strides = [1, 1]} : vector<1x128xf32> to vector<1x32xf32>
    %511 = math.tanh %510 : vector<1x32xf32>
    %512 = vector.extract_strided_slice %509 {offsets = [0, 32], sizes = [1, 32], strides = [1, 1]} : vector<1x96xf32> to vector<1x32xf32>
    %513 = arith.mulf %512, %495 : vector<1x32xf32>
    %514 = vector.extract_strided_slice %509 {offsets = [0, 0], sizes = [1, 32], strides = [1, 1]} : vector<1x96xf32> to vector<1x32xf32>
    %515 = arith.mulf %514, %511 : vector<1x32xf32>
    %516 = arith.addf %513, %515 : vector<1x32xf32>
    %517 = vector.extract_strided_slice %509 {offsets = [0, 64], sizes = [1, 32], strides = [1, 1]} : vector<1x96xf32> to vector<1x32xf32>
    %518 = math.tanh %516 : vector<1x32xf32>
    %519 = arith.mulf %517, %518 : vector<1x32xf32>
    %520 = arith.truncf %519 : vector<1x32xf32> to vector<1x32xbf16>
    %cst_187 = arith.constant dense<0.000000e+00> : vector<1x128xf32>
    %521 = tpu.matmul %520, %456, %cst_187 {dimension_numbers = #tpu.dot_dimension_numbers<[1], [0], [0], [1], [0, 0, 1, 1], [], []>} : vector<1x32xbf16>, vector<32x128xbf16>, vector<1x128xf32> -> vector<1x128xf32>
    %c0_188 = arith.constant 0 : index
    %c3_189 = arith.constant 3 : index
    %c0_190 = arith.constant 0 : index
    %522 = vector.load %arg22[%c0_188, %c3_189, %c0_190] : memref<1x8x256xf32, #tpu.memory_space<vmem>>, vector<1x1x128xf32>
    %523 = vector.shape_cast %522 : vector<1x1x128xf32> to vector<1x128xf32>
    %524 = arith.addf %523, %521 : vector<1x128xf32>
    %525 = vector.extract_strided_slice %524 {offsets = [0, 0], sizes = [1, 96], strides = [1, 1]} : vector<1x128xf32> to vector<1x96xf32>
    %526 = arith.negf %525 : vector<1x96xf32>
    %527 = math.exp %526 : vector<1x96xf32>
    %cst_191 = arith.constant 1.000000e+00 : f32
    %528 = vector.broadcast %cst_191 : f32 to vector<1x96xf32>
    %529 = arith.addf %528, %527 : vector<1x96xf32>
    %530 = arith.divf %528, %529 : vector<1x96xf32>
    %531 = vector.extract_strided_slice %524 {offsets = [0, 96], sizes = [1, 32], strides = [1, 1]} : vector<1x128xf32> to vector<1x32xf32>
    %532 = math.tanh %531 : vector<1x32xf32>
    %533 = vector.extract_strided_slice %530 {offsets = [0, 32], sizes = [1, 32], strides = [1, 1]} : vector<1x96xf32> to vector<1x32xf32>
    %534 = arith.mulf %533, %516 : vector<1x32xf32>
    %535 = vector.extract_strided_slice %530 {offsets = [0, 0], sizes = [1, 32], strides = [1, 1]} : vector<1x96xf32> to vector<1x32xf32>
    %536 = arith.mulf %535, %532 : vector<1x32xf32>
    %537 = arith.addf %534, %536 : vector<1x32xf32>
    %538 = vector.extract_strided_slice %530 {offsets = [0, 64], sizes = [1, 32], strides = [1, 1]} : vector<1x96xf32> to vector<1x32xf32>
    %539 = math.tanh %537 : vector<1x32xf32>
    %540 = arith.mulf %538, %539 : vector<1x32xf32>
    %541 = arith.truncf %540 : vector<1x32xf32> to vector<1x32xbf16>
    %cst_192 = arith.constant dense<0.000000e+00> : vector<1x128xf32>
    %542 = tpu.matmul %541, %456, %cst_192 {dimension_numbers = #tpu.dot_dimension_numbers<[1], [0], [0], [1], [0, 0, 1, 1], [], []>} : vector<1x32xbf16>, vector<32x128xbf16>, vector<1x128xf32> -> vector<1x128xf32>
    %c0_193 = arith.constant 0 : index
    %c4_194 = arith.constant 4 : index
    %c0_195 = arith.constant 0 : index
    %543 = vector.load %arg22[%c0_193, %c4_194, %c0_195] : memref<1x8x256xf32, #tpu.memory_space<vmem>>, vector<1x1x128xf32>
    %544 = vector.shape_cast %543 : vector<1x1x128xf32> to vector<1x128xf32>
    %545 = arith.addf %544, %542 : vector<1x128xf32>
    %546 = vector.extract_strided_slice %545 {offsets = [0, 0], sizes = [1, 96], strides = [1, 1]} : vector<1x128xf32> to vector<1x96xf32>
    %547 = arith.negf %546 : vector<1x96xf32>
    %548 = math.exp %547 : vector<1x96xf32>
    %cst_196 = arith.constant 1.000000e+00 : f32
    %549 = vector.broadcast %cst_196 : f32 to vector<1x96xf32>
    %550 = arith.addf %549, %548 : vector<1x96xf32>
    %551 = arith.divf %549, %550 : vector<1x96xf32>
    %552 = vector.extract_strided_slice %545 {offsets = [0, 96], sizes = [1, 32], strides = [1, 1]} : vector<1x128xf32> to vector<1x32xf32>
    %553 = math.tanh %552 : vector<1x32xf32>
    %554 = vector.extract_strided_slice %551 {offsets = [0, 32], sizes = [1, 32], strides = [1, 1]} : vector<1x96xf32> to vector<1x32xf32>
    %555 = arith.mulf %554, %537 : vector<1x32xf32>
    %556 = vector.extract_strided_slice %551 {offsets = [0, 0], sizes = [1, 32], strides = [1, 1]} : vector<1x96xf32> to vector<1x32xf32>
    %557 = arith.mulf %556, %553 : vector<1x32xf32>
    %558 = arith.addf %555, %557 : vector<1x32xf32>
    %559 = vector.extract_strided_slice %551 {offsets = [0, 64], sizes = [1, 32], strides = [1, 1]} : vector<1x96xf32> to vector<1x32xf32>
    %560 = math.tanh %558 : vector<1x32xf32>
    %561 = arith.mulf %559, %560 : vector<1x32xf32>
    %562 = arith.truncf %561 : vector<1x32xf32> to vector<1x32xbf16>
    %cst_197 = arith.constant dense<0.000000e+00> : vector<1x128xf32>
    %563 = tpu.matmul %562, %456, %cst_197 {dimension_numbers = #tpu.dot_dimension_numbers<[1], [0], [0], [1], [0, 0, 1, 1], [], []>} : vector<1x32xbf16>, vector<32x128xbf16>, vector<1x128xf32> -> vector<1x128xf32>
    %c0_198 = arith.constant 0 : index
    %c5_199 = arith.constant 5 : index
    %c0_200 = arith.constant 0 : index
    %564 = vector.load %arg22[%c0_198, %c5_199, %c0_200] : memref<1x8x256xf32, #tpu.memory_space<vmem>>, vector<1x1x128xf32>
    %565 = vector.shape_cast %564 : vector<1x1x128xf32> to vector<1x128xf32>
    %566 = arith.addf %565, %563 : vector<1x128xf32>
    %567 = vector.extract_strided_slice %566 {offsets = [0, 0], sizes = [1, 96], strides = [1, 1]} : vector<1x128xf32> to vector<1x96xf32>
    %568 = arith.negf %567 : vector<1x96xf32>
    %569 = math.exp %568 : vector<1x96xf32>
    %cst_201 = arith.constant 1.000000e+00 : f32
    %570 = vector.broadcast %cst_201 : f32 to vector<1x96xf32>
    %571 = arith.addf %570, %569 : vector<1x96xf32>
    %572 = arith.divf %570, %571 : vector<1x96xf32>
    %573 = vector.extract_strided_slice %566 {offsets = [0, 96], sizes = [1, 32], strides = [1, 1]} : vector<1x128xf32> to vector<1x32xf32>
    %574 = math.tanh %573 : vector<1x32xf32>
    %575 = vector.extract_strided_slice %572 {offsets = [0, 32], sizes = [1, 32], strides = [1, 1]} : vector<1x96xf32> to vector<1x32xf32>
    %576 = arith.mulf %575, %558 : vector<1x32xf32>
    %577 = vector.extract_strided_slice %572 {offsets = [0, 0], sizes = [1, 32], strides = [1, 1]} : vector<1x96xf32> to vector<1x32xf32>
    %578 = arith.mulf %577, %574 : vector<1x32xf32>
    %579 = arith.addf %576, %578 : vector<1x32xf32>
    %580 = vector.extract_strided_slice %572 {offsets = [0, 64], sizes = [1, 32], strides = [1, 1]} : vector<1x96xf32> to vector<1x32xf32>
    %581 = math.tanh %579 : vector<1x32xf32>
    %582 = arith.mulf %580, %581 : vector<1x32xf32>
    %583 = arith.truncf %582 : vector<1x32xf32> to vector<1x32xbf16>
    %cst_202 = arith.constant dense<0.000000e+00> : vector<1x128xf32>
    %584 = tpu.matmul %583, %456, %cst_202 {dimension_numbers = #tpu.dot_dimension_numbers<[1], [0], [0], [1], [0, 0, 1, 1], [], []>} : vector<1x32xbf16>, vector<32x128xbf16>, vector<1x128xf32> -> vector<1x128xf32>
    %c0_203 = arith.constant 0 : index
    %c6_204 = arith.constant 6 : index
    %c0_205 = arith.constant 0 : index
    %585 = vector.load %arg22[%c0_203, %c6_204, %c0_205] : memref<1x8x256xf32, #tpu.memory_space<vmem>>, vector<1x1x128xf32>
    %586 = vector.shape_cast %585 : vector<1x1x128xf32> to vector<1x128xf32>
    %587 = arith.addf %586, %584 : vector<1x128xf32>
    %588 = vector.extract_strided_slice %587 {offsets = [0, 0], sizes = [1, 96], strides = [1, 1]} : vector<1x128xf32> to vector<1x96xf32>
    %589 = arith.negf %588 : vector<1x96xf32>
    %590 = math.exp %589 : vector<1x96xf32>
    %cst_206 = arith.constant 1.000000e+00 : f32
    %591 = vector.broadcast %cst_206 : f32 to vector<1x96xf32>
    %592 = arith.addf %591, %590 : vector<1x96xf32>
    %593 = arith.divf %591, %592 : vector<1x96xf32>
    %594 = vector.extract_strided_slice %587 {offsets = [0, 96], sizes = [1, 32], strides = [1, 1]} : vector<1x128xf32> to vector<1x32xf32>
    %595 = math.tanh %594 : vector<1x32xf32>
    %596 = vector.extract_strided_slice %593 {offsets = [0, 32], sizes = [1, 32], strides = [1, 1]} : vector<1x96xf32> to vector<1x32xf32>
    %597 = arith.mulf %596, %579 : vector<1x32xf32>
    %598 = vector.extract_strided_slice %593 {offsets = [0, 0], sizes = [1, 32], strides = [1, 1]} : vector<1x96xf32> to vector<1x32xf32>
    %599 = arith.mulf %598, %595 : vector<1x32xf32>
    %600 = arith.addf %597, %599 : vector<1x32xf32>
    %601 = vector.extract_strided_slice %593 {offsets = [0, 64], sizes = [1, 32], strides = [1, 1]} : vector<1x96xf32> to vector<1x32xf32>
    %602 = math.tanh %600 : vector<1x32xf32>
    %603 = arith.mulf %601, %602 : vector<1x32xf32>
    %604 = arith.truncf %603 : vector<1x32xf32> to vector<1x32xbf16>
    %cst_207 = arith.constant dense<0.000000e+00> : vector<1x128xf32>
    %605 = tpu.matmul %604, %456, %cst_207 {dimension_numbers = #tpu.dot_dimension_numbers<[1], [0], [0], [1], [0, 0, 1, 1], [], []>} : vector<1x32xbf16>, vector<32x128xbf16>, vector<1x128xf32> -> vector<1x128xf32>
    %c0_208 = arith.constant 0 : index
    %c7_209 = arith.constant 7 : index
    %c0_210 = arith.constant 0 : index
    %606 = vector.load %arg22[%c0_208, %c7_209, %c0_210] : memref<1x8x256xf32, #tpu.memory_space<vmem>>, vector<1x1x128xf32>
    %607 = vector.shape_cast %606 : vector<1x1x128xf32> to vector<1x128xf32>
    %608 = arith.addf %607, %605 : vector<1x128xf32>
    %609 = vector.extract_strided_slice %608 {offsets = [0, 0], sizes = [1, 96], strides = [1, 1]} : vector<1x128xf32> to vector<1x96xf32>
    %610 = arith.negf %609 : vector<1x96xf32>
    %611 = math.exp %610 : vector<1x96xf32>
    %cst_211 = arith.constant 1.000000e+00 : f32
    %612 = vector.broadcast %cst_211 : f32 to vector<1x96xf32>
    %613 = arith.addf %612, %611 : vector<1x96xf32>
    %614 = arith.divf %612, %613 : vector<1x96xf32>
    %615 = vector.extract_strided_slice %608 {offsets = [0, 96], sizes = [1, 32], strides = [1, 1]} : vector<1x128xf32> to vector<1x32xf32>
    %616 = math.tanh %615 : vector<1x32xf32>
    %617 = vector.extract_strided_slice %614 {offsets = [0, 32], sizes = [1, 32], strides = [1, 1]} : vector<1x96xf32> to vector<1x32xf32>
    %618 = arith.mulf %617, %600 : vector<1x32xf32>
    %619 = vector.extract_strided_slice %614 {offsets = [0, 0], sizes = [1, 32], strides = [1, 1]} : vector<1x96xf32> to vector<1x32xf32>
    %620 = arith.mulf %619, %616 : vector<1x32xf32>
    %621 = arith.addf %618, %620 : vector<1x32xf32>
    %622 = vector.extract_strided_slice %614 {offsets = [0, 64], sizes = [1, 32], strides = [1, 1]} : vector<1x96xf32> to vector<1x32xf32>
    %623 = math.tanh %621 : vector<1x32xf32>
    %624 = arith.mulf %622, %623 : vector<1x32xf32>
    %c0_212 = arith.constant 0 : index
    %c7_213 = arith.constant 7 : index
    %c128_214 = arith.constant 128 : index
    %625 = vector.load %arg22[%c0_212, %c7_213, %c128_214] : memref<1x8x256xf32, #tpu.memory_space<vmem>>, vector<1x1x128xf32>
    %626 = vector.shape_cast %625 : vector<1x1x128xf32> to vector<1x128xf32>
    %627 = vector.extract_strided_slice %626 {offsets = [0, 0], sizes = [1, 96], strides = [1, 1]} : vector<1x128xf32> to vector<1x96xf32>
    %628 = arith.negf %627 : vector<1x96xf32>
    %629 = math.exp %628 : vector<1x96xf32>
    %cst_215 = arith.constant 1.000000e+00 : f32
    %630 = vector.broadcast %cst_215 : f32 to vector<1x96xf32>
    %631 = arith.addf %630, %629 : vector<1x96xf32>
    %632 = arith.divf %630, %631 : vector<1x96xf32>
    %633 = vector.extract_strided_slice %626 {offsets = [0, 96], sizes = [1, 32], strides = [1, 1]} : vector<1x128xf32> to vector<1x32xf32>
    %634 = math.tanh %633 : vector<1x32xf32>
    %635 = vector.extract_strided_slice %632 {offsets = [0, 32], sizes = [1, 32], strides = [1, 1]} : vector<1x96xf32> to vector<1x32xf32>
    %636 = arith.mulf %635, %42 : vector<1x32xf32>
    %637 = vector.extract_strided_slice %632 {offsets = [0, 0], sizes = [1, 32], strides = [1, 1]} : vector<1x96xf32> to vector<1x32xf32>
    %638 = arith.mulf %637, %634 : vector<1x32xf32>
    %639 = arith.addf %636, %638 : vector<1x32xf32>
    %640 = vector.extract_strided_slice %632 {offsets = [0, 64], sizes = [1, 32], strides = [1, 1]} : vector<1x96xf32> to vector<1x32xf32>
    %641 = math.tanh %639 : vector<1x32xf32>
    %642 = arith.mulf %640, %641 : vector<1x32xf32>
    %643 = arith.truncf %624 : vector<1x32xf32> to vector<1x32xbf16>
    %c0_216 = arith.constant 0 : index
    %c0_217 = arith.constant 0 : index
    %644 = vector.load %arg14[%c0_216, %c0_217] : memref<64x128xbf16, #tpu.memory_space<vmem>>, vector<32x128xbf16>
    %cst_218 = arith.constant dense<0.000000e+00> : vector<1x128xf32>
    %645 = tpu.matmul %643, %644, %cst_218 {dimension_numbers = #tpu.dot_dimension_numbers<[1], [0], [0], [1], [0, 0, 1, 1], [], []>} : vector<1x32xbf16>, vector<32x128xbf16>, vector<1x128xf32> -> vector<1x128xf32>
    %646 = arith.truncf %642 : vector<1x32xf32> to vector<1x32xbf16>
    %c32_219 = arith.constant 32 : index
    %c0_220 = arith.constant 0 : index
    %647 = vector.load %arg14[%c32_219, %c0_220] : memref<64x128xbf16, #tpu.memory_space<vmem>>, vector<32x128xbf16>
    %cst_221 = arith.constant dense<0.000000e+00> : vector<1x128xf32>
    %648 = tpu.matmul %646, %647, %cst_221 {dimension_numbers = #tpu.dot_dimension_numbers<[1], [0], [0], [1], [0, 0, 1, 1], [], []>} : vector<1x32xbf16>, vector<32x128xbf16>, vector<1x128xf32> -> vector<1x128xf32>
    %649 = arith.addf %645, %648 : vector<1x128xf32>
    %c0_222 = arith.constant 0 : index
    %c0_223 = arith.constant 0 : index
    %650 = vector.load %arg15[%c0_222, %c0_223] : memref<1x128xf32, #tpu.memory_space<vmem>>, vector<1x128xf32>
    %651 = arith.addf %649, %650 : vector<1x128xf32>
    %cst_224 = arith.constant 0.000000e+00 : f32
    %652 = vector.broadcast %cst_224 : f32 to vector<1x128xf32>
    %653 = arith.maximumf %651, %652 : vector<1x128xf32>
    %c0_225 = arith.constant 0 : index
    %c0_226 = arith.constant 0 : index
    %654 = vector.load %arg16[%c0_225, %c0_226] : memref<1x128xf32, #tpu.memory_space<vmem>>, vector<1x128xf32>
    %655 = arith.mulf %653, %654 : vector<1x128xf32>
    %c0_227 = arith.constant 0 : index
    %c0_228 = arith.constant 0 : index
    %656 = vector.load %arg17[%c0_227, %c0_228] : memref<1x128xf32, #tpu.memory_space<vmem>>, vector<1x128xf32>
    %657 = arith.addf %655, %656 : vector<1x128xf32>
    %c0_229 = arith.constant 0 : index
    %c7_230 = arith.constant 7 : index
    %c8 = arith.constant 8 : index
    %658 = vector.load %arg1[%c0_229, %c7_230, %c8] : memref<1x8x24xf32, #tpu.memory_space<vmem>>, vector<1x1x8xf32>
    %659 = vector.shape_cast %658 : vector<1x1x8xf32> to vector<1x8xf32>
    %660 = arith.truncf %659 : vector<1x8xf32> to vector<1x8xbf16>
    %c0_231 = arith.constant 0 : index
    %c0_232 = arith.constant 0 : index
    %661 = vector.load %arg12[%c0_231, %c0_232] : memref<8x128xbf16, #tpu.memory_space<vmem>>, vector<8x128xbf16>
    %cst_233 = arith.constant dense<0.000000e+00> : vector<1x128xf32>
    %662 = tpu.matmul %660, %661, %cst_233 {dimension_numbers = #tpu.dot_dimension_numbers<[1], [0], [0], [1], [0, 0, 1, 1], [], []>} : vector<1x8xbf16>, vector<8x128xbf16>, vector<1x128xf32> -> vector<1x128xf32>
    %663 = arith.addf %657, %662 : vector<1x128xf32>
    %c0_234 = arith.constant 0 : index
    %c0_235 = arith.constant 0 : index
    %664 = vector.load %arg13[%c0_234, %c0_235] : memref<1x128xf32, #tpu.memory_space<vmem>>, vector<1x128xf32>
    %665 = arith.addf %663, %664 : vector<1x128xf32>
    %666 = arith.truncf %665 : vector<1x128xf32> to vector<1x128xbf16>
    %c0_236 = arith.constant 0 : index
    %c0_237 = arith.constant 0 : index
    %667 = vector.load %arg18[%c0_236, %c0_237] : memref<128x4xbf16, #tpu.memory_space<vmem>>, vector<128x4xbf16>
    %cst_238 = arith.constant dense<0.000000e+00> : vector<1x4xf32>
    %668 = tpu.matmul %666, %667, %cst_238 {dimension_numbers = #tpu.dot_dimension_numbers<[1], [0], [0], [1], [0, 0, 1, 1], [], []>} : vector<1x128xbf16>, vector<128x4xbf16>, vector<1x4xf32> -> vector<1x4xf32>
    %c0_239 = arith.constant 0 : index
    %c0_240 = arith.constant 0 : index
    %669 = vector.load %arg19[%c0_239, %c0_240] : memref<1x4xf32, #tpu.memory_space<vmem>>, vector<1x4xf32>
    %670 = arith.addf %668, %669 : vector<1x4xf32>
    %c0_241 = arith.constant 0 : index
    %c0_242 = arith.constant 0 : index
    %c0_243 = arith.constant 0 : index
    %671 = vector.load %arg20[%c0_241, %c0_242, %c0_243] : memref<1x1x4xf32, #tpu.memory_space<vmem>>, vector<1x1x4xf32>
    %672 = vector.shape_cast %671 : vector<1x1x4xf32> to vector<1x4xf32>
    %673 = vector.shape_cast %670 : vector<1x4xf32> to vector<1x1x4xf32>
    tpu.vector_store %arg20[%c0_241, %c0_242, %c0_243], %673 {strides = array<i32>} : memref<1x1x4xf32, #tpu.memory_space<vmem>>, vector<1x1x4xf32>,
    return
  }
  func.func @transform_0(%arg0: i32) -> (i32, i32, i32) {
    %c0_i32 = arith.constant 0 : i32
    %c0_i32_0 = arith.constant 0 : i32
    %c0_i32_1 = arith.constant 0 : i32
    return %arg0, %c0_i32, %c0_i32_0 : i32, i32, i32
  }
  func.func @transform_1(%arg0: i32) -> (i32, i32) {
    %c0_i32 = arith.constant 0 : i32
    %c0_i32_0 = arith.constant 0 : i32
    %c0_i32_1 = arith.constant 0 : i32
    return %c0_i32, %c0_i32_0 : i32, i32
  }
  func.func @transform_2(%arg0: i32) -> (i32, i32) {
    %c0_i32 = arith.constant 0 : i32
    %c0_i32_0 = arith.constant 0 : i32
    %c0_i32_1 = arith.constant 0 : i32
    return %c0_i32, %c0_i32_0 : i32, i32
  }
  func.func @transform_3(%arg0: i32) -> (i32, i32) {
    %c0_i32 = arith.constant 0 : i32
    %c0_i32_0 = arith.constant 0 : i32
    %c0_i32_1 = arith.constant 0 : i32
    return %c0_i32, %c0_i32_0 : i32, i32
  }
  func.func @transform_4(%arg0: i32) -> (i32, i32) {
    %c0_i32 = arith.constant 0 : i32
    %c0_i32_0 = arith.constant 0 : i32
    %c0_i32_1 = arith.constant 0 : i32
    return %c0_i32, %c0_i32_0 : i32, i32
  }
  func.func @transform_5(%arg0: i32) -> (i32, i32) {
    %c0_i32 = arith.constant 0 : i32
    %c0_i32_0 = arith.constant 0 : i32
    %c0_i32_1 = arith.constant 0 : i32
    return %c0_i32, %c0_i32_0 : i32, i32
  }
  func.func @transform_6(%arg0: i32) -> (i32, i32) {
    %c0_i32 = arith.constant 0 : i32
    %c0_i32_0 = arith.constant 0 : i32
    %c0_i32_1 = arith.constant 0 : i32
    return %c0_i32, %c0_i32_0 : i32, i32
  }
  func.func @transform_7(%arg0: i32) -> (i32, i32) {
    %c0_i32 = arith.constant 0 : i32
    %c0_i32_0 = arith.constant 0 : i32
    %c0_i32_1 = arith.constant 0 : i32
    return %c0_i32, %c0_i32_0 : i32, i32
  }
  func.func @transform_8(%arg0: i32) -> (i32, i32) {
    %c0_i32 = arith.constant 0 : i32
    %c0_i32_0 = arith.constant 0 : i32
    %c0_i32_1 = arith.constant 0 : i32
    return %c0_i32, %c0_i32_0 : i32, i32
  }
  func.func @transform_9(%arg0: i32) -> (i32, i32) {
    %c0_i32 = arith.constant 0 : i32
    %c0_i32_0 = arith.constant 0 : i32
    %c0_i32_1 = arith.constant 0 : i32
    return %c0_i32, %c0_i32_0 : i32, i32
  }
  func.func @transform_10(%arg0: i32) -> (i32, i32) {
    %c0_i32 = arith.constant 0 : i32
    %c0_i32_0 = arith.constant 0 : i32
    %c0_i32_1 = arith.constant 0 : i32
    return %c0_i32, %c0_i32_0 : i32, i32
  }
  func.func @transform_11(%arg0: i32) -> (i32, i32) {
    %c0_i32 = arith.constant 0 : i32
    %c0_i32_0 = arith.constant 0 : i32
    %c0_i32_1 = arith.constant 0 : i32
    return %c0_i32, %c0_i32_0 : i32, i32
  }
  func.func @transform_12(%arg0: i32) -> (i32, i32) {
    %c0_i32 = arith.constant 0 : i32
    %c0_i32_0 = arith.constant 0 : i32
    %c0_i32_1 = arith.constant 0 : i32
    return %c0_i32, %c0_i32_0 : i32, i32
  }
  func.func @transform_13(%arg0: i32) -> (i32, i32) {
    %c0_i32 = arith.constant 0 : i32
    %c0_i32_0 = arith.constant 0 : i32
    %c0_i32_1 = arith.constant 0 : i32
    return %c0_i32, %c0_i32_0 : i32, i32
  }
  func.func @transform_14(%arg0: i32) -> (i32, i32) {
    %c0_i32 = arith.constant 0 : i32
    %c0_i32_0 = arith.constant 0 : i32
    %c0_i32_1 = arith.constant 0 : i32
    return %c0_i32, %c0_i32_0 : i32, i32
  }
  func.func @transform_15(%arg0: i32) -> (i32, i32) {
    %c0_i32 = arith.constant 0 : i32
    %c0_i32_0 = arith.constant 0 : i32
    %c0_i32_1 = arith.constant 0 : i32
    return %c0_i32, %c0_i32_0 : i32, i32
  }
  func.func @transform_16(%arg0: i32) -> (i32, i32) {
    %c0_i32 = arith.constant 0 : i32
    %c0_i32_0 = arith.constant 0 : i32
    %c0_i32_1 = arith.constant 0 : i32
    return %c0_i32, %c0_i32_0 : i32, i32
  }
  func.func @transform_17(%arg0: i32) -> (i32, i32) {
    %c0_i32 = arith.constant 0 : i32
    %c0_i32_0 = arith.constant 0 : i32
    %c0_i32_1 = arith.constant 0 : i32
    return %c0_i32, %c0_i32_0 : i32, i32
  }
  func.func @transform_18(%arg0: i32) -> (i32, i32) {
    %c0_i32 = arith.constant 0 : i32
    %c0_i32_0 = arith.constant 0 : i32
    %c0_i32_1 = arith.constant 0 : i32
    return %c0_i32, %c0_i32_0 : i32, i32
  }
  func.func @transform_19(%arg0: i32) -> (i32, i32, i32) {
    %c0_i32 = arith.constant 0 : i32
    %c0_i32_0 = arith.constant 0 : i32
    %c0_i32_1 = arith.constant 0 : i32
    return %arg0, %c0_i32, %c0_i32_0 : i32, i32, i32
  }
}

</mosaic_0001>

<bundles_post_ra>
// kernel: cnn_bilstm_forward.1
= control target key start
LH: loop header
LB: loop body
LE: loop exit
PB: predicated region body
PF: predicated region fallthrough
CT: control target
= control target key end

     0   :  { %s4914_s0 = inlined_call_operand.vmem [shape: f32[2,8,24], index: 0, kind: input, shape index: {}]   ;;  %s4915_s1 = inlined_call_operand.hbm [shape: bf16[24,32], index: 1, kind: input, shape index: {}]   ;;  %s4916_s2 = inlined_call_operand.vmem [shape: f32[1,32], index: 2, kind: input, shape index: {}]   ;;  %s4917_s3 = inlined_call_operand.hbm [shape: bf16[32,192], index: 3, kind: input, shape index: {}]   ;;  %s4918_s4 = inlined_call_operand.hbm [shape: f32[1,64], index: 4, kind: input, shape index: {}]   ;;  %s4919_s5 = inlined_call_operand.vmem [shape: bf16[64,256], index: 5, kind: input, shape index: {}]   ;;  %s4920_s6 = inlined_call_operand.vmem [shape: bf16[64,256], index: 6, kind: input, shape index: {}]   ;;  %s4921_s7 = inlined_call_operand.vmem [shape: f32[1,256], index: 7, kind: input, shape index: {}]   ;;  %s4922_s8 = inlined_call_operand.vmem [shape: bf16[64,256], index: 8, kind: input, shape index: {}]   ;;  %s4923_s9 = inlined_call_operand.hbm [shape: bf16[64,256], index: 9, kind: input, shape index: {}]   ;;  %s4924_s10 = inlined_call_operand.hbm [shape: f32[1,256], index: 10, kind: input, shape index: {}]   ;;  %s4925_s11 = inlined_call_operand.hbm [shape: bf16[8,128], index: 11, kind: input, shape index: {}]   ;;  %s4926_s12 = inlined_call_operand.hbm [shape: f32[1,128], index: 12, kind: input, shape index: {}]   ;;  %s4927_s13 = inlined_call_operand.hbm [shape: bf16[64,128], index: 13, kind: input, shape index: {}]   ;;  %s4928_s14 = inlined_call_operand.hbm [shape: f32[1,128], index: 14, kind: input, shape index: {}]   ;;  %s4929_s15 = inlined_call_operand.hbm [shape: f32[1,128], index: 15, kind: input, shape index: {}]   ;;  %s4930_s16 = inlined_call_operand.hbm [shape: f32[1,128], index: 16, kind: input, shape index: {}]   ;;  %s4931_s17 = inlined_call_operand.vmem [shape: bf16[128,4], index: 17, kind: input, shape index: {}]   ;;  %s4932_s18 = inlined_call_operand.hbm [shape: f32[1,4], index: 18, kind: input, shape index: {}]   ;;  %s4933_s19 = inlined_call_operand.hbm [shape: f32[2,1,4], index: 19, kind: output, shape index: {}]  }
   0x1   :  { %4945 = sst [smem:[#allocation42_spill]] %s4914_s0 }
   0x2   :  { %4946 = sst [smem:[#allocation43_spill]] %s4915_s1 }
   0x3   :  { %4947 = sst [smem:[#allocation44_spill]] %s4916_s2 }
   0x4   :  { %4948 = sst [smem:[#allocation45_spill]] %s4917_s3 }
   0x5   :  { %4949 = sst [smem:[#allocation46_spill]] %s4923_s9 }
   0x6   :  { %4950 = sst [smem:[#allocation47_spill]] %s4925_s11 }
   0x7   :  { %4951 = sst [smem:[#allocation48_spill]] %s4931_s17 }
   0x8   :  { %4952 = sst [smem:[#allocation49_spill]] %s4933_s19 }
   0x9   :  { %24 = vsyncpa [#allocation6], 0 }
   0xa   :  { %25 = vsyncpa [#allocation9], 0 }
   0xb   :  { %26 = vsyncpa [#allocation12], 0 }
   0xc   :  { %27 = vsyncpa [#allocation15], 0 }
   0xd   :  { %28 = vsyncpa [#allocation18], 0 }
   0xe   :  { %29 = vsyncpa [#allocation21], 0 }
   0xf   :  { %30 = vsyncpa [#allocation24], 0 }
  0x10   :  { %31 = vsyncpa [#allocation7], 0 }
  0x11   :  { %33 = vsyncpa [#allocation7 + $0x1], 0  ;;  %s4246_s0 = smov 0   ;;  %s4248_s30 = smov 0  }
  0x12   :  { %s4250_s20 = smov 0   ;;  %s4252_s21 = smov 0  }
  0x13 LB: > { %4953 = sst [smem:[#allocation34_spill]] %s4109_s0  ;;  %s4267_s1 = sadd.s32 4294967295, %s4121_s21   ;;  %s4121_s21 = sphi %s4252_s21, %s4979_s21   ;;  %s4117_s20 = sphi %s4250_s20, %s4982_s20   ;;  %s4113_s30 = sphi %s4248_s30, %s4981_s30   ;;  %s4109_s0 = sphi %s4246_s0, %s4980_s0  }
  0x14   : > { %4954 = sst [smem:[#allocation35_spill]] %s4113_s30  ;;  %s2996_s22 = sadd.s32 4294967294, %s4121_s21  }
  0x15   : > { %4955 = sst [smem:[#allocation36_spill]] %s4117_s20  ;;  %s4271_s2 = sadd.s32 1, %s4121_s21  }
  0x16   : > { %4956 = sst [smem:[#allocation37_spill]] %s4121_s21  ;;  %s450_s23 = sadd.s32 1, %s4117_s20 }
  0x17   : > { %4957 = sst [smem:[#allocation38_spill]] %s4271_s2  ;;  %s447_s24 = ssub.s32 %s4121_s21, %s4271_s2 }
  0x18   : > { %p460_p0 = scmp.ne.s32.totalorder %s4117_s20, %s4113_s30  ;;  %p448_p1 = scmp.eq.s32.totalorder %s447_s24, 0 }
  0x19   : > { %p461_p2 = scmp.eq.s32.totalorder %s4267_s1, 1  ;;  %p466_p3 = scmp.ne.s32.totalorder %s4113_s30, %s4109_s0 }
  0x1a   : > { %p467_p4 = scmp.eq.s32.totalorder %s2996_s22, 1  ;;  %p2997_p7 = scmp.ge.s32.totalorder %s4121_s21, 1 }
  0x1b   : > { %s4282_s25 = scalar_select %p448_p1, %s4117_s20, %s450_s23  }
  0x1c   : > { %p4284_p5 = por %p461_p2, %p460_p0  ;;  %p4288_p6 = por %p467_p4, %p466_p3 }
  0x1d   : > { %4958 = sst [smem:[#allocation39_spill]] %s4282_s25  ;;  %p474_p8 = scmp.lt.s32.totalorder %s4121_s21, 3 }
  0x1e   : > { %s4959_s3 = scalar_select %p4284_p5, 1, 0 }
  0x1f   : > { %s4961_s26 = scalar_select %p4288_p6, 1, 0 }
  0x20   : > { %4960 = sst [smem:[#allocation40_spill]] %s4959_s3  ;;  %p3389_p9 = scmp.eq.s32.totalorder %s4267_s1, 0 }
  0x21   : > { %4962 = sst [smem:[#allocation41_spill]] %s4961_s26  ;;  %p4295_p10 = pnand %p2997_p7, %p474_p8 }
  0x22   : > { %s4964_s22 = sld [smem:[#allocation45_spill]]  ;;  %s4123_s24 = smov [#allocation8]  }
  0x23   : > { %p3348_p11 = pneg %p4295_p10  ;;  %s504_s25 = sshll.u32 %s4123_s24, 4  ;;  %s505_s25 = int_to_ptr.vmem [resolvable:$true] %s504_s25 }
  0x24   : > { %s4966_s9 = sld [smem:[#allocation46_spill]]  ;;  %s4124_s29 = smov 128  }
  0x25   : > { %p4306_p12 = pnand %p3389_p9, %p3348_p11  ;;  %s4126_s0 = smov [#allocation11]  }
  0x26   : > { %s542_s24 = sshll.u32 %s4126_s0, 4  ;;  %s4967_s11 = sld [smem:[#allocation47_spill]]  ;;  %s543_s24 = int_to_ptr.vmem [resolvable:$true] %s542_s24 }
  0x27   : > { %s4127_s2 = smov [#allocation14]   ;;  %s590_s17 = sshll.u32 %s4927_s13, 4  ;;  %s591_s17 = int_to_ptr.hbm [resolvable:$true] %s590_s17 }
  0x28   : > { %s502_s23 = sshll.u32 %s4964_s22, 4  ;;  %s4125_s22 = smov 8   ;;  %s503_s23 = int_to_ptr.hbm [resolvable:$true] %s502_s23 }
  0x29   : > { %3354 = dma.hbm_to_vmem [thread:$0]  (!%p4306_p12), %s503_s23, 512, %s505_s25, [#allocation9], %s4124_s29, %s4124_s29, %s4125_s22  }
  0x2a   : > { %s540_s28 = sshll.u32 %s4966_s9, 4  ;;  %s569_s26 = sshll.u32 %s4127_s2, 4  ;;  %s541_s28 = int_to_ptr.hbm [resolvable:$true] %s540_s28  ;;  %s570_s26 = int_to_ptr.vmem [resolvable:$true] %s569_s26 }
  0x2b   : > { %3360 = dma.hbm_to_vmem [thread:$0]  (!%p4306_p12), %s541_s28, 1024, %s543_s24, [#allocation12], %s4124_s29, %s4124_s29, %s4125_s22  }
  0x2c   : > { %s567_s19 = sshll.u32 %s4967_s11, 4  ;;  %s4128_s0 = smov [#allocation17]   ;;  %s568_s19 = int_to_ptr.hbm [resolvable:$true] %s567_s19 }
  0x2d   : > { %3366 = dma.hbm_to_vmem [thread:$0]  (!%p4306_p12), %s568_s19, 64, %s570_s26, [#allocation15]  }
  0x2e   : > { %s592_s25 = sshll.u32 %s4128_s0, 4  ;;  %s617_s23 = sshll.u32 %s4929_s15, 4  ;;  %s593_s25 = int_to_ptr.vmem [resolvable:$true] %s592_s25  ;;  %s618_s23 = int_to_ptr.hbm [resolvable:$true] %s617_s23 }
  0x2f   : > { %s4129_s28 = smov 64   ;;  %s4130_s29 = smov 4  }
  0x30   : > { %3372 = dma.hbm_to_vmem [thread:$0]  (!%p4306_p12), %s591_s17, 512, %s593_s25, [#allocation18], %s4129_s28, %s4129_s28, %s4130_s29  }
  0x31   : > { %s4968_s30 = sld [smem:[#allocation43_spill]]  ;;  %s4131_s2 = smov [#allocation20]  }
  0x32   : > { %s619_s19 = sshll.u32 %s4131_s2, 4  ;;  %s4132_s26 = smov [#allocation5]   ;;  %s620_s19 = int_to_ptr.vmem [resolvable:$true] %s619_s19 }
  0x33   : > { %3378 = dma.hbm_to_vmem [thread:$0]  (!%p4306_p12), %s618_s23, 16, %s620_s19, [#allocation21]  }
  0x34   : > { %s487_s0 = sshll.u32 %s4132_s26, 4  ;;  %s517_s11 = sshll.u32 %s4918_s4, 4  ;;  %s488_s0 = int_to_ptr.vmem [resolvable:$true] %s487_s0  ;;  %s518_s11 = int_to_ptr.hbm [resolvable:$true] %s517_s11 }
  0x35   : > { %s555_s22 = sshll.u32 %s4924_s10, 4  ;;  %s4133_s9 = smov [#allocation10]   ;;  %s556_s22 = int_to_ptr.hbm [resolvable:$true] %s555_s22 }
  0x36   : > { %s4134_s23 = smov [#allocation13]   ;;  %s579_s21 = sshll.u32 %s4926_s12, 4  ;;  %s580_s21 = int_to_ptr.hbm [resolvable:$true] %s579_s21 }
  0x37   : > { %s485_s24 = sshll.u32 %s4968_s30, 4  ;;  %s519_s30 = sshll.u32 %s4133_s9, 4  ;;  %s486_s24 = int_to_ptr.hbm [resolvable:$true] %s485_s24  ;;  %s520_s30 = int_to_ptr.vmem [resolvable:$true] %s519_s30 }
  0x38   : > { %3351 = dma.hbm_to_vmem [thread:$0]  (!%p4306_p12), %s486_s24, 192, %s488_s0, [#allocation6], %s4129_s28, %s4129_s28, %s4130_s29  }
  0x39   : > { %3357 = dma.hbm_to_vmem [thread:$0]  (!%p4306_p12), %s518_s11, 16, %s520_s30, [#allocation9]  }
  0x3a   : > { %s557_s2 = sshll.u32 %s4134_s23, 4  ;;  %s605_s24 = sshll.u32 %s4928_s14, 4  ;;  %s558_s2 = int_to_ptr.vmem [resolvable:$true] %s557_s2  ;;  %s606_s24 = int_to_ptr.hbm [resolvable:$true] %s605_s24 }
  0x3b   : > { %3363 = dma.hbm_to_vmem [thread:$0]  (!%p4306_p12), %s556_s22, 32, %s558_s2, [#allocation12]  }
  0x3c   : > { %s4135_s0 = smov [#allocation16]   ;;  %s4136_s11 = smov [#allocation19]  }
  0x3d   : > { %s581_s3 = sshll.u32 %s4135_s0, 4  ;;  %s607_s17 = sshll.u32 %s4136_s11, 4  ;;  %s582_s3 = int_to_ptr.vmem [resolvable:$true] %s581_s3  ;;  %s608_s17 = int_to_ptr.vmem [resolvable:$true] %s607_s17 }
  0x3e   : > { %3369 = dma.hbm_to_vmem [thread:$0]  (!%p4306_p12), %s580_s21, 16, %s582_s3, [#allocation15]  }
  0x3f   : > { %s629_s30 = sshll.u32 %s4930_s16, 4  ;;  %s644_s2 = sshll.u32 %s4932_s18, 4  ;;  %s630_s30 = int_to_ptr.hbm [resolvable:$true] %s629_s30  ;;  %s645_s2 = int_to_ptr.hbm [resolvable:$true] %s644_s2 }
  0x40   : > { %3375 = dma.hbm_to_vmem [thread:$0]  (!%p4306_p12), %s606_s24, 16, %s608_s17, [#allocation18]  }
  0x41   : > { %s4137_s19 = smov [#allocation22]   ;;  %s4138_s21 = smov [#allocation23]  }
  0x42   : > { %s631_s26 = sshll.u32 %s4137_s19, 4  ;;  %s646_s28 = sshll.u32 %s4138_s21, 4  ;;  %s632_s26 = int_to_ptr.vmem [resolvable:$true] %s631_s26  ;;  %s647_s28 = int_to_ptr.vmem [resolvable:$true] %s646_s28 }
  0x43   : > { %3381 = dma.hbm_to_vmem [thread:$0]  (!%p4306_p12), %s630_s30, 16, %s632_s26, [#allocation21]  }
  0x44   : > { %3384 = dma.hbm_to_vmem [thread:$0]  (!%p4306_p12), %s645_s2, 16, %s647_s28, [#allocation24]  }
  0x45   : > { %666 = sbr.rel (%p4295_p10) target bundleno = 10193 (0x27d1), region = 96 }
  0x4a   : > { %4076 = dma.done.wait (%p3389_p9), [#allocation6], 192  }
  0x4b   : > { %4078 = vsyncadd (%p3389_p9), [#allocation6], 4294967104 }
  0x4c   : > { %4080 = dma.done.wait (%p3389_p9), [#allocation9], 528  }
  0x4d   : > { %4082 = vsyncadd (%p3389_p9), [#allocation9], 4294966768 }
  0x4e   : > { %4084 = dma.done.wait (%p3389_p9), [#allocation12], 1056  }
  0x4f   : > { %4086 = vsyncadd (%p3389_p9), [#allocation12], 4294966240 }
  0x50   : > { %4088 = dma.done.wait (%p3389_p9), [#allocation15], 80  }
  0x51   : > { %4090 = vsyncadd (%p3389_p9), [#allocation15], 4294967216 }
  0x52   : > { %4092 = dma.done.wait (%p3389_p9), [#allocation18], 528  }
  0x53   : > { %4094 = vsyncadd (%p3389_p9), [#allocation18], 4294966768 }
  0x54   : > { %4096 = dma.done.wait (%p3389_p9), [#allocation21], 32  }
  0x55   : > { %4098 = vsyncadd (%p3389_p9), [#allocation21], 4294967264 }
  0x56   : > { %4100 = dma.done.wait (%p3389_p9), [#allocation24], 16  }
  0x57   : > { %4102 = vsyncadd (%p3389_p9), [#allocation24], 4294967280  ;;  %p776_p13 = scmp.lt.s32.totalorder %s4267_s1, 1  ;;  %v785_v0 = vld [vmem:[#allocation5 + $0x8] sm:$0xf]  ;;  %vm799_vm0 = vcmask 1043456  }
  0x58   : > { %v791_v1 = vunpack.c.l.b16 %v785_v0  ;;  %s4969_s0 = sld [smem:[#allocation42_spill]]  ;;  %v3255_v4 = vld [vmem:[#allocation5] sm:$0xff]  ;;  %vm795_vm1 = vcmask 195584   ;;  %vm822_vm2 = vcmask 253952   ;;  %v3040_v7 = vld [vmem:[#allocation8 + $0x10] sm:$0xf] }
  0x59   : > { %s777_s20 = scalar_select %p776_p13, %s4267_s1, 1  ;;  %v3259_v8 = vld [vmem:[#allocation8 + $0x14] sm:$0xf0]  ;;  %v3258_v9 = vld [vmem:[#allocation8 + $0x14] sm:$0xf]  ;;  %vm833_vm3 = vcmask 259072  }
  0x5a   : > { %v793_v2 = vpack.c.b16 %v791_v1, %v791_v1  ;;  %v3041_v10 = vor.u32 %v3259_v8, %v3040_v7  ;;  %v3042_v11 = vld [vmem:[#allocation8 + $0x18] sm:$0xf0]  ;;  %v3032_v12 = vld [vmem:[#allocation8] sm:$0xf]  ;;  %v3257_v13 = vld [vmem:[#allocation8 + $0x4] sm:$0xf0] }
  0x5b   : > { %s3024_s27 = sshll.u32 %s777_s20, 3  ;;  %v3045_v14 = vor.u32 %v3258_v9, %v3042_v11  ;;  %v3256_v15 = vld [vmem:[#allocation8 + $0x4] sm:$0xf]  ;;  %v3034_v16 = vld [vmem:[#allocation8 + $0x8] sm:$0xf0]  ;;  %v3033_v17 = vor.u32 %v3257_v13, %v3032_v12  ;;  %v4139_v18 = vmov 0.0  }
  0x5c   : > { %v801_v3 = vsel %vm799_vm0, %v793_v2, 0  ;;  %878 = vmatpush.bf16.msra.mxu1 %v3041_v10  ;;  %823 = vst.msk [vmem:[#allocation2] sm:$0x1] %vm822_vm2, %v4139_v18  ;;  %v3037_v19 = vor.u32 %v3256_v15, %v3034_v16  ;;  %s4970_s25 = sld [smem:[#allocation44_spill]]  ;;  %vm831_vm4 = vcmask 261127   ;;  %vm829_vm5 = vcmask 260096  }
  0x5d   : > { %809 = vmatpush.bf16.msra.mxu0 %v801_v3  ;;  %892 = vmatpush.bf16.msra.mxu3 %v3045_v14  ;;  %834 = vst.msk [vmem:[#allocation2 + $0xa] sm:$0x3f] %vm833_vm3, %v4139_v18  ;;  %vm868_vm6 = vcmask 261120   ;;  %vm902_vm7 = vcmask 1046528   ;;  %s4140_s9 = smov 64   ;;  %vm912_vm8 = vcmask 1045504  }
  0x5e   : > { %s4402_s3 = scalar_lea.vmem %s4969_s0, %s3024_s27  ;;  %v3074_v39 = vld [vmem:[%s4919_s5 + $0x30] sm:$0xf]  ;;  %v3267_v40 = vld [vmem:[%s4919_s5 + $0x34] sm:$0xf0]  ;;  %v3266_v41 = vld [vmem:[%s4919_s5 + $0x34] sm:$0xf] }
  0x5f   : > { %v781_v5 = vld [vmem:[%s4402_s3] sm:$0xff]  ;;  %v3075_v42 = vor.u32 %v3267_v40, %v3074_v39  ;;  %v3076_v43 = vld [vmem:[%s4919_s5 + $0x38] sm:$0xf0]  ;;  %v3265_v46 = vld [vmem:[%s4919_s5 + $0x24] sm:$0xf0]  ;;  %vm924_vm9 = vcmask 523264  }
  0x60   : > { %v782_v6 = vpack.c.bf16 %v781_v5, %v781_v5  ;;  %879 = vmatpush.bf16.msra.mxu1 %v3033_v17  ;;  %v3079_v44 = vor.u32 %v3266_v41, %v3076_v43  ;;  %v3066_v45 = vld [vmem:[%s4919_s5 + $0x20] sm:$0xf]  ;;  %v3264_v47 = vld [vmem:[%s4919_s5 + $0x24] sm:$0xf]  ;;  %v3068_v49 = vld [vmem:[%s4919_s5 + $0x28] sm:$0xf0] }
  0x61   : > { %810 = vmatpush.bf16.msra.mxu0 %v3255_v4  ;;  %893 = vmatpush.bf16.msra.mxu3 %v3037_v19  ;;  %v3067_v48 = vor.u32 %v3265_v46, %v3066_v45  ;;  %v3274_v50 = vld [vmem:[%s4920_s6 + $0x34] sm:$0xf]  ;;  %v3110_v51 = vld [vmem:[%s4920_s6 + $0x38] sm:$0xf0]  ;;  %v3071_v52 = vor.u32 %v3264_v47, %v3068_v49  ;;  %v3058_v54 = vld [vmem:[%s4919_s5 + $0x10] sm:$0xf] }
  0x62   : > { %v3469_v20 = vld [vmem:[%s4970_s25] ss:$0 sm:$0xff]  ;;  %v4447_v53 = vor.u32 %v3274_v50, %v3110_v51  ;;  %v3263_v55 = vld [vmem:[%s4919_s5 + $0x14] sm:$0xf0]  ;;  %v3262_v56 = vld [vmem:[%s4919_s5 + $0x14] sm:$0xf] }
  0x63   : > { %v3059_v57 = vor.u32 %v3263_v55, %v3058_v54  ;;  %v3060_v58 = vld [vmem:[%s4919_s5 + $0x18] sm:$0xf0]  ;;  %v3108_v59 = vld [vmem:[%s4920_s6 + $0x30] sm:$0xf]  ;;  %v3275_v60 = vld [vmem:[%s4920_s6 + $0x34] sm:$0xf0] }
  0x64   : > { %3029 = vmatmul.msk.bf16.vlgmr.msra.gmra.mxu0 %vm795_vm1, %v782_v6  ;;  %1082 = vmatpush.bf16.msra.mxu2 %v4447_v53  ;;  %v3063_v61 = vor.u32 %v3262_v56, %v3060_v58  ;;  %v4468_v62 = vor.u32 %v3275_v60, %v3108_v59  ;;  %v3272_v63 = vld [vmem:[%s4920_s6 + $0x24] sm:$0xf]  ;;  %v3102_v0 = vld [vmem:[%s4920_s6 + $0x28] sm:$0xf0]  ;;  %v3050_v2 = vld [vmem:[%s4919_s5] sm:$0xf] }
  0x65   : > { %989 = vmatpush.bf16.msrb.mxu3 %v3075_v42  ;;  %1002 = vmatpush.bf16.msrb.mxu0 %v3079_v44  ;;  %v4476_v1 = vor.u32 %v3272_v63, %v3102_v0  ;;  %v3261_v3 = vld [vmem:[%s4919_s5 + $0x4] sm:$0xf0]  ;;  %v3260_v4 = vld [vmem:[%s4919_s5 + $0x4] sm:$0xf]  ;;  %v3052_v6 = vld [vmem:[%s4919_s5 + $0x8] sm:$0xf0] }
  0x66   : > { %1069 = vmatpush.bf16.msrb.mxu1 %v4468_v62  ;;  %v3051_v5 = vor.u32 %v3261_v3, %v3050_v2  ;;  %v3100_v7 = vld [vmem:[%s4920_s6 + $0x20] sm:$0xf]  ;;  %v3273_v8 = vld [vmem:[%s4920_s6 + $0x24] sm:$0xf0]  ;;  %v3055_v9 = vor.u32 %v3260_v4, %v3052_v6  ;;  %v3270_v11 = vld [vmem:[%s4920_s6 + $0x14] sm:$0xf] }
  0x67   : > { %v4498_v10 = vor.u32 %v3273_v8, %v3100_v7  ;;  %v3094_v12 = vld [vmem:[%s4920_s6 + $0x18] sm:$0xf0]  ;;  %v3092_v15 = vld [vmem:[%s4920_s6 + $0x10] sm:$0xf]  ;;  %v3271_v16 = vld [vmem:[%s4920_s6 + $0x14] sm:$0xf0] }
  0x68   : > { %1083 = vmatpush.bf16.msra.mxu2 %v4476_v1  ;;  %v4506_v14 = vor.u32 %v3270_v11, %v3094_v12  ;;  %v3268_v17 = vld [vmem:[%s4920_s6 + $0x4] sm:$0xf]  ;;  %v4519_v18 = vor.u32 %v3271_v16, %v3092_v15  ;;  %v3086_v19 = vld [vmem:[%s4920_s6 + $0x8] sm:$0xf0]  ;;  %v936_v41 = vld [vmem:[%s4921_s7] sm:$0x3] }
  0x69   : > { %990 = vmatpush.bf16.msrb.mxu3 %v3067_v48  ;;  %1003 = vmatpush.bf16.msrb.mxu0 %v3071_v52  ;;  %v939_v42 = vperm.slane %v936_v41, 1  ;;  %v938_v45 = vperm.slane %v936_v41, 0  ;;  %s4142_s23 = smov 32   ;;  %s4143_s2 = smov 96  }
  0x6a   : > { %1070 = vmatpush.bf16.msrb.mxu1 %v4498_v10  ;;  %s4145_s21 = smov 120   ;;  %s4971_s20 = sld [smem:[#allocation48_spill]] }
  0x6b   : > { %s4974_s29 = sld [smem:[#allocation49_spill]] }
  0x6c   : > { %1084 = vmatpush.bf16.msra.mxu2 %v4506_v14 }
  0x6d   : > { %991 = vmatpush.bf16.msrb.mxu3 %v3059_v57  ;;  %1004 = vmatpush.bf16.msrb.mxu0 %v3063_v61 }
  0x6e   : > { %1071 = vmatpush.bf16.msrb.mxu1 %v4519_v18 }
  0x70   : > { %s4972_s27 = smov %s4971_s20 }
  0x71   : > { %992 = vmatpush.bf16.msrb.mxu3 %v3051_v5  ;;  %1005 = vmatpush.bf16.msrb.mxu0 %v3055_v9  ;;  %s4051_s19 = scalar_lea.hbm %s4974_s29, 2 }
  0x75   : > { %1202 = vmatpush.bf16.msra.mxu0 %v4447_v53 }
  0x79   : > { %1203 = vmatpush.bf16.msra.mxu0 %v4476_v1 }
  0x7d   : > { %1204 = vmatpush.bf16.msra.mxu0 %v4506_v14 }
  0xe1   : > { %v812_v21 = vpop.f32.mrf.mxu0 }
  0xe2   : > { %v820_v22 = vadd.f32 %v3469_v20, %v812_v21  ;;  %v3084_v20 = vld [vmem:[%s4920_s6] sm:$0xf]  ;;  %v4528_v21 = vor.u32 %v3268_v17, %v3086_v19 }
  0xe4   : > { %v821_v23 = vmax.f32 %v820_v22, 0.0  ;;  %v3269_v22 = vld [vmem:[%s4920_s6 + $0x4] sm:$0xf0]  ;;  %1085 = vmatpush.bf16.msra.mxu2 %v4528_v21  ;;  %1205 = vmatpush.bf16.msra.mxu0 %v4528_v21 }
  0xe6   : > { %824 = vst.msk [vmem:[#allocation2 + $0x1] sm:$0x1] %vm822_vm2, %v821_v23  ;;  %v826_v24 = vrot.slane %v821_v23, 1 }
  0xe7   : > { %832 = vst.msk [vmem:[#allocation2 + $0x2] sm:$0x80] %vm831_vm4, %v821_v23  ;;  %vm1178_vm4 = vcmask 516352  }
  0xe8   : > { %v828_v25 = vmax.f32 %v821_v23, %v826_v24  ;;  %v4535_v23 = vor.u32 %v3269_v22, %v3084_v20  ;;  %1321 = vmatpush.bf16.msrb.mxu2 %v4447_v53  ;;  %v4141_v24 = vmov 0.0|0.0  }
  0xe9   : > { %v814_v26 = vpop.f32.mrf.mxu0  ;;  %1086 = vmatmul.bf16.vlgmr.msra.gmra.mxu2 %v4141_v24 }
  0xea   : > { %830 = vst.msk [vmem:[#allocation2 + $0x2] sm:$0x7f] %vm829_vm5, %v828_v25  ;;  %1072 = vmatpush.bf16.msrb.mxu1 %v4535_v23 }
  0xec   : > { %1322 = vmatpush.bf16.msrb.mxu2 %v4476_v1 }
  0xf0   : > { %1323 = vmatpush.bf16.msrb.mxu2 %v4506_v14 }
  0xf1   : > { %v835_v27 = vld [vmem:[#allocation2] sm:$0xff]  ;;  %v836_v28 = vld [vmem:[#allocation2 + $0x8] sm:$0xff] }
  0xf2   : > { %v837_v29 = vpack.c.bf16 %v835_v27, %v835_v27  ;;  %v838_v30 = vpack.c.bf16 %v836_v28, %v836_v28 }
  0xf4   : > { %v845_v31 = vunpack.c.l.b16 %v837_v29  ;;  %v846_v32 = vunpack.c.l.b16 %v838_v30  ;;  %v3470_v29 = vld [vmem:[#allocation10] ss:$0 sm:$0xff]  ;;  %1324 = vmatpush.bf16.msrb.mxu2 %v4528_v21 }
  0xf6   : > { %v847_v33 = vpack.c.b16 %v846_v32, %v845_v31 }
  0xf8   : > { %3046 = vmatmul.msk.bf16.vlgmr.msra.gmra.mxu1 %vm868_vm6, %v847_v33  ;;  %3047 = vmatmul.msk.bf16.vlgmr.msra.gmra.mxu3 %vm868_vm6, %v847_v33 }
  0xf9   : > { %1189 = vmatpush.bf16.msra.mxu3 %v4468_v62  ;;  %1308 = vmatpush.bf16.msra.mxu1 %v4468_v62 }
  0xfa   : > { %1559 = vmatpush.bf16.msra.mxu2 %v4447_v53 }
  0xfd   : > { %1190 = vmatpush.bf16.msra.mxu3 %v4498_v10  ;;  %1309 = vmatpush.bf16.msra.mxu1 %v4498_v10 }
  0xfe   : > { %1560 = vmatpush.bf16.msra.mxu2 %v4476_v1 }
 0x101   : > { %1191 = vmatpush.bf16.msra.mxu3 %v4519_v18  ;;  %1310 = vmatpush.bf16.msra.mxu1 %v4519_v18 }
 0x102   : > { %1561 = vmatpush.bf16.msra.mxu2 %v4506_v14 }
 0x105   : > { %1192 = vmatpush.bf16.msra.mxu3 %v4535_v23  ;;  %1311 = vmatpush.bf16.msra.mxu1 %v4535_v23 }
 0x106   : > { %1562 = vmatpush.bf16.msra.mxu2 %v4528_v21 }
 0x108   : > { %1073 = vmatmul.bf16.vlgmr.msrb.gmra.mxu1 %v4141_v24 }
 0x109   : > { %1546 = vmatpush.bf16.msrb.mxu1 %v4468_v62 }
 0x10d   : > { %1547 = vmatpush.bf16.msrb.mxu1 %v4498_v10 }
 0x111   : > { %1548 = vmatpush.bf16.msrb.mxu1 %v4519_v18 }
 0x115   : > { %1549 = vmatpush.bf16.msrb.mxu1 %v4535_v23 }
 0x175   : > { %v4413_v34 = vpop.f32.mrf.mxu1 }
 0x176   : > { %v903_v36 = vrot.slane %v4413_v34, 1 }
 0x17b   : > { %v895_v13 = vpop.f32.mrf.mxu3 }
 0x17c   : > { %v913_v27 = vrot.slane %v895_v13, 2 }
 0x17d   : > { %v883_v35 = vpop.f32.mrf.mxu1 }
 0x17e   : > { %v904_v37 = vrot.slane %v883_v35, 1 }
 0x180   : > { %v905_v38 = vsel %vm902_vm7, %v903_v36, %v904_v37 }
 0x181   : > { %906 = vrot.lane.b32.xlu0 %v905_v38, %s4140_s9  ;;  %v1087_v38 = vpop.f32.mrf.mxu2 }
 0x183   : > { %v897_v25 = vpop.f32.mrf.mxu3 }
 0x184   : > { %v914_v26 = vrot.slane %v897_v25, 2 }
 0x185   : > { %v1074_v37 = vpop.f32.mrf.mxu1 }
 0x186   : > { %v915_v31 = vsel %vm912_vm8, %v913_v27, %v914_v26 }
 0x189   : > { %v1089_v40 = vpop.f32.mrf.mxu2 }
 0x18d   : > { %v1076_v39 = vpop.f32.mrf.mxu1 }
 0x1f3   : > { %v907_v28 = vpop.permute.xlu0 %906 }
 0x1f4   : > { %v909_v30 = vadd.f32 %v907_v28, %v4413_v34 }
 0x1f6   : > { %v917_v32 = vadd.f32 %v915_v31, %v909_v30 }
 0x1f8   : > { %v922_v33 = vadd.f32 %v3470_v29, %v917_v32 }
 0x1fa   : > { %v923_v35 = vmax.f32 %v922_v33, 0.0 }
 0x1fc   : > { %925 = vst.msk [vmem:[#allocation4] sm:$0xff] %vm924_vm9, %v923_v35 }
 0x203   : > { %v926_v34 = vld [vmem:[#allocation4] sm:$0xff] }
 0x204   : > { %v927_v36 = vpack.c.bf16 %v926_v34, %v926_v34 }
 0x206   : > { %3080 = vmatmul.msk.bf16.vlgmr.msrb.gmra.mxu3 %vm924_vm9, %v927_v36  ;;  %3081 = vmatmul.msk.bf16.vlgmr.msrb.gmra.mxu0 %vm924_vm9, %v927_v36 }
 0x207   : > { %1427 = vmatpush.bf16.msrb.mxu3 %v4468_v62  ;;  %1440 = vmatpush.bf16.msrb.mxu0 %v4447_v53 }
 0x20b   : > { %1428 = vmatpush.bf16.msrb.mxu3 %v4498_v10  ;;  %1441 = vmatpush.bf16.msrb.mxu0 %v4476_v1 }
 0x20f   : > { %1429 = vmatpush.bf16.msrb.mxu3 %v4519_v18  ;;  %1442 = vmatpush.bf16.msrb.mxu0 %v4506_v14 }
 0x213   : > { %1430 = vmatpush.bf16.msrb.mxu3 %v4535_v23  ;;  %1443 = vmatpush.bf16.msrb.mxu0 %v4528_v21 }
 0x283   : > { %v1007_v43 = vpop.f32.mrf.mxu0 }
 0x284   : > { %v1008_v44 = vadd.f32 %v1007_v43, %v939_v42 }
 0x286   : > { %1012 = vst [vmem:[#allocation3 + $0x8] sm:$0xff] %v1008_v44 }
 0x289   : > { %v994_v46 = vpop.f32.mrf.mxu3 }
 0x28a   : > { %v995_v47 = vadd.f32 %v994_v46, %v938_v45 }
 0x28b   : > { %v1009_v48 = vpop.f32.mrf.mxu0 }
 0x28c   : > { %1011 = vst [vmem:[#allocation3] sm:$0xff] %v995_v47 }
 0x28d   : > { %v1093_v49 = vld [vmem:[#allocation3 + $0xf] ss:$0 sm:$0xff]  ;;  %v1213_v47 = vld [vmem:[#allocation3 + $0xe] ss:$0 sm:$0xff] }
 0x28e   : > { %v1094_v50 = vadd.f32 %v1093_v49, %v1087_v38 }
 0x290   : > { %3471 = vtanh.f32 %v1094_v50  ;;  %v3115_v57 = vmul.f32 -1.442695, %v1094_v50 }
 0x291   : > { %v996_v51 = vpop.f32.mrf.mxu3 }
 0x293   : > { %v1091_v52 = vld [vmem:[#allocation3] ss:$0 sm:$0xff]  ;;  %v1211_v50 = vld [vmem:[#allocation3 + $0x1] ss:$0 sm:$0xff] }
 0x294   : > { %v1092_v54 = vadd.f32 %v1091_v52, %v1074_v37 }
 0x296   : > { %v3472_v55 = vpop.eup %3471  ;;  %3473 = vtanh.f32 %v1092_v54  ;;  %v3114_v58 = vmul.f32 -1.442695, %v1092_v54 }
 0x297   : > { %1154 = vrot.lane.b32.xlu1 %v3472_v55, %s4142_s23  ;;  %3475 = vpow2.f32 %v3115_v57 }
 0x298   : > { %3477 = vpow2.f32 %v3114_v58 }
 0x29c   : > { %v3474_v56 = vpop.eup %3473 }
 0x29d   : > { %1117 = vrot.lane.b32.xlu0 %v3474_v56, %s4142_s23  ;;  %v3476_v59 = vpop.eup %3475 }
 0x29e   : > { %v1135_v60 = vadd.f32 1.0, %v3476_v59  ;;  %v3478_v61 = vpop.eup %3477 }
 0x29f   : > { %v1098_v63 = vadd.f32 1.0, %v3478_v61 }
 0x2a0   : > { %3479 = vrcp.f32 %v1135_v60  ;;  %v1147_v9 = vand.u32 2147483648, %v1135_v60  ;;  %vm1141_vm11 = vweird.f32 %v1135_v60  ;;  %v1145_v11 = vand.u32 2147483647, %v1135_v60 }
 0x2a1   : > { %3481 = vrcp.f32 %v1098_v63  ;;  %v1110_v20 = vand.u32 2147483648, %v1098_v63  ;;  %vm1104_vm15 = vweird.f32 %v1098_v63  ;;  %v1108_v24 = vand.u32 2147483647, %v1098_v63 }
 0x2a2   : > { %v1148_v15 = vor.u32 1.1754944e-38, %v1147_v9  ;;  %vm1146_vm13 = vcmp.eq.f32.partialorder %v1145_v11, 8.507059e+37 }
 0x2a3   : > { %v1111_v26 = vor.u32 1.1754944e-38, %v1110_v20  ;;  %vm1109_vm3 = vcmp.eq.f32.partialorder %v1108_v24, 8.507059e+37 }
 0x2a6   : > { %v3480_v0 = vpop.eup %3479 }
 0x2a7   : > { %v1137_v2 = vmul.f32 %v3480_v0, %v1135_v60  ;;  %v3482_v3 = vpop.eup %3481  ;;  %vm1142_vm10 = vweird.f32 %v3480_v0 }
 0x2a8   : > { %v1100_v5 = vmul.f32 %v3482_v3, %v1098_v63  ;;  %vm1143_vm12 = vmor %vm1141_vm11, %vm1142_vm10  ;;  %vm1105_vm14 = vweird.f32 %v3482_v3 }
 0x2a9   : > { %v1138_v4 = vsub.f32 1.0, %v1137_v2  ;;  %vm1106_vm1 = vmor %vm1104_vm15, %vm1105_vm14 }
 0x2aa   : > { %v1101_v7 = vsub.f32 1.0, %v1100_v5 }
 0x2ab   : > { %v1139_v6 = vmul.f32 %v3480_v0, %v1138_v4 }
 0x2ac   : > { %v1102_v12 = vmul.f32 %v3482_v3, %v1101_v7 }
 0x2ad   : > { %v1140_v8 = vadd.f32 %v3480_v0, %v1139_v6 }
 0x2ae   : > { %v1103_v16 = vadd.f32 %v3482_v3, %v1102_v12 }
 0x2af   : > { %v1144_v13 = vsel %vm1143_vm12, %v3480_v0, %v1140_v8 }
 0x2b0   : > { %v1149_v19 = vsel %vm1146_vm13, %v1148_v15, %v1144_v13  ;;  %v1107_v25 = vsel %vm1106_vm1, %v3482_v3, %v1103_v16 }
 0x2b1   : > { %v1112_v28 = vsel %vm1109_vm3, %v1111_v26, %v1107_v25  ;;  %v1152_v30 = vmul.f32 0.0, %v1149_v19 }
 0x2b2   : > { %v1115_v35 = vmul.f32 0.0, %v1112_v28 }
 0x309   : > { %v1155_v17 = vpop.permute.xlu1 %1154 }
 0x30a   : > { %v1157_v22 = vmul.f32 %v1155_v17, %v1149_v19 }
 0x30c   : > { %1159 = vrot.lane.b32.xlu2 %v1157_v22, %s4142_s23 }
 0x30f   : > { %v1118_v27 = vpop.permute.xlu0 %1117 }
 0x310   : > { %v1120_v29 = vmul.f32 %v1118_v27, %v1112_v28 }
 0x312   : > { %1122 = vrot.lane.b32.xlu1 %v1120_v29, %s4142_s23 }
 0x366   : > { %v1160_v31 = vpop.permute.xlu2 %1159 }
 0x367   : > { %v4580_v32 = vadd.f32 %v1160_v31, %v1152_v30 }
 0x369   : > { %3483 = vtanh.f32 %v4580_v32 }
 0x36f   : > { %v3484_v33 = vpop.eup %3483 }
 0x370   : > { %1165 = vrot.lane.b32.xlu0 %v3484_v33, %s4142_s23 }
 0x384   : > { %v1123_v34 = vpop.permute.xlu1 %1122 }
 0x385   : > { %v4584_v36 = vadd.f32 %v1123_v34, %v1115_v35 }
 0x387   : > { %3485 = vtanh.f32 %v4584_v36 }
 0x38d   : > { %v3486_v37 = vpop.eup %3485 }
 0x38e   : > { %1128 = vrot.lane.b32.xlu2 %v3486_v37, %s4142_s23 }
 0x3e2   : > { %v1166_v38 = vpop.permute.xlu0 %1165 }
 0x3e3   : > { %v1168_v39 = vmul.f32 %v1166_v38, %v1149_v19 }
 0x3e5   : > { %1175 = vrot.lane.b32.xlu2 %v1168_v39, %s4143_s2 }
 0x3e8   : > { %v1129_v40 = vpop.permute.xlu2 %1128 }
 0x3e9   : > { %v1131_v41 = vmul.f32 %v1129_v40, %v1112_v28 }
 0x3eb   : > { %1170 = vrot.lane.b32.xlu1 %v1131_v41, %s4140_s9 }
 0x43f   : > { %v1176_v42 = vpop.permute.xlu2 %1175 }
 0x440   : > { %1179 = vst.msk [vmem:[#allocation4 + $0x7] sm:$0x1] %vm1178_vm4, %v1176_v42 }
 0x45d   : > { %v1171_v43 = vpop.permute.xlu1 %1170 }
 0x45e   : > { %1173 = vst.msk [vmem:[#allocation4] sm:$0x1] %vm822_vm2, %v1171_v43  ;;  %v1180_v44 = vsel %vm868_vm6, %v1171_v43, %v1176_v42 }
 0x45f   : > { %v1181_v45 = vpack.c.bf16 %v1180_v44, %v1180_v44 }
 0x461   : > { %3116 = vmatmul.msk.bf16.vlgmr.msra.gmra.mxu3 %vm924_vm9, %v1181_v45  ;;  %3117 = vmatmul.msk.bf16.vlgmr.msra.gmra.mxu0 %vm924_vm9, %v1181_v45 }
 0x462   : > { %1678 = vmatpush.bf16.msra.mxu0 %v4447_v53  ;;  %1665 = vmatpush.bf16.msra.mxu3 %v4468_v62 }
 0x466   : > { %1679 = vmatpush.bf16.msra.mxu0 %v4476_v1  ;;  %1666 = vmatpush.bf16.msra.mxu3 %v4498_v10 }
 0x46a   : > { %1680 = vmatpush.bf16.msra.mxu0 %v4506_v14  ;;  %1667 = vmatpush.bf16.msra.mxu3 %v4519_v18 }
 0x46e   : > { %1681 = vmatpush.bf16.msra.mxu0 %v4528_v21  ;;  %1668 = vmatpush.bf16.msra.mxu3 %v4535_v23 }
 0x4de   : > { %v1207_v46 = vpop.f32.mrf.mxu0 }
 0x4df   : > { %v1214_v48 = vadd.f32 %v1213_v47, %v1207_v46  ;;  %v1330_v47 = vld [vmem:[#allocation3 + $0x2] ss:$0 sm:$0xff] }
 0x4e1   : > { %3487 = vtanh.f32 %v1214_v48  ;;  %v3119_v57 = vmul.f32 -1.442695, %v1214_v48 }
 0x4e4   : > { %v1194_v49 = vpop.f32.mrf.mxu3 }
 0x4e5   : > { %v1212_v51 = vadd.f32 %v1211_v50, %v1194_v49  ;;  %v1332_v50 = vld [vmem:[#allocation3 + $0xd] ss:$0 sm:$0xff] }
 0x4e6   : > { %v1209_v52 = vpop.f32.mrf.mxu0 }
 0x4e7   : > { %v3488_v54 = vpop.eup %3487  ;;  %3489 = vtanh.f32 %v1212_v51  ;;  %v3118_v58 = vmul.f32 -1.442695, %v1212_v51 }
 0x4e8   : > { %1274 = vrot.lane.b32.xlu1 %v3488_v54, %s4142_s23  ;;  %3491 = vpow2.f32 %v3119_v57 }
 0x4e9   : > { %3493 = vpow2.f32 %v3118_v58 }
 0x4ec   : > { %v1196_v55 = vpop.f32.mrf.mxu3 }
 0x4ed   : > { %v3490_v56 = vpop.eup %3489 }
 0x4ee   : > { %1237 = vrot.lane.b32.xlu0 %v3490_v56, %s4142_s23  ;;  %v3492_v59 = vpop.eup %3491 }
 0x4ef   : > { %v1255_v60 = vadd.f32 1.0, %v3492_v59  ;;  %v3494_v61 = vpop.eup %3493 }
 0x4f0   : > { %v1218_v63 = vadd.f32 1.0, %v3494_v61 }
 0x4f1   : > { %3495 = vrcp.f32 %v1255_v60  ;;  %v1267_v9 = vand.u32 2147483648, %v1255_v60  ;;  %vm1261_vm7 = vweird.f32 %v1255_v60  ;;  %v1265_v11 = vand.u32 2147483647, %v1255_v60 }
 0x4f2   : > { %3497 = vrcp.f32 %v1218_v63  ;;  %v1230_v20 = vand.u32 2147483648, %v1218_v63  ;;  %vm1224_vm12 = vweird.f32 %v1218_v63  ;;  %v1228_v24 = vand.u32 2147483647, %v1218_v63 }
 0x4f3   : > { %v1268_v15 = vor.u32 1.1754944e-38, %v1267_v9  ;;  %vm1266_vm10 = vcmp.eq.f32.partialorder %v1265_v11, 8.507059e+37 }
 0x4f4   : > { %v1231_v26 = vor.u32 1.1754944e-38, %v1230_v20  ;;  %vm1229_vm14 = vcmp.eq.f32.partialorder %v1228_v24, 8.507059e+37 }
 0x4f7   : > { %v3496_v0 = vpop.eup %3495 }
 0x4f8   : > { %v1257_v2 = vmul.f32 %v3496_v0, %v1255_v60  ;;  %v3498_v3 = vpop.eup %3497  ;;  %vm1262_vm5 = vweird.f32 %v3496_v0 }
 0x4f9   : > { %v1220_v5 = vmul.f32 %v3498_v3, %v1218_v63  ;;  %vm1263_vm8 = vmor %vm1261_vm7, %vm1262_vm5  ;;  %vm1225_vm11 = vweird.f32 %v3498_v3 }
 0x4fa   : > { %v1258_v4 = vsub.f32 1.0, %v1257_v2  ;;  %vm1226_vm13 = vmor %vm1224_vm12, %vm1225_vm11 }
 0x4fb   : > { %v1221_v7 = vsub.f32 1.0, %v1220_v5 }
 0x4fc   : > { %v1259_v6 = vmul.f32 %v3496_v0, %v1258_v4 }
 0x4fd   : > { %v1222_v12 = vmul.f32 %v3498_v3, %v1221_v7 }
 0x4fe   : > { %v1260_v8 = vadd.f32 %v3496_v0, %v1259_v6 }
 0x4ff   : > { %v1223_v16 = vadd.f32 %v3498_v3, %v1222_v12 }
 0x500   : > { %v1264_v13 = vsel %vm1263_vm8, %v3496_v0, %v1260_v8 }
 0x501   : > { %v1269_v19 = vsel %vm1266_vm10, %v1268_v15, %v1264_v13  ;;  %v1227_v25 = vsel %vm1226_vm13, %v3498_v3, %v1223_v16 }
 0x502   : > { %v1232_v28 = vsel %vm1229_vm14, %v1231_v26, %v1227_v25  ;;  %v1272_v34 = vmul.f32 %v1269_v19, %v4580_v32 }
 0x503   : > { %v1235_v30 = vmul.f32 %v1232_v28, %v4584_v36 }
 0x55a   : > { %v1275_v17 = vpop.permute.xlu1 %1274 }
 0x55b   : > { %v1277_v22 = vmul.f32 %v1275_v17, %v1269_v19 }
 0x55d   : > { %1279 = vrot.lane.b32.xlu0 %v1277_v22, %s4142_s23 }
 0x560   : > { %v1238_v27 = vpop.permute.xlu0 %1237 }
 0x561   : > { %v1240_v29 = vmul.f32 %v1238_v27, %v1232_v28 }
 0x563   : > { %1242 = vrot.lane.b32.xlu2 %v1240_v29, %s4142_s23 }
 0x5bd   : > { %v1243_v31 = vpop.permute.xlu2 %1242 }
 0x5be   : > { %v4608_v33 = vadd.f32 %v1243_v31, %v1235_v30 }
 0x5c0   : > { %3499 = vtanh.f32 %v4608_v33 }
 0x5c6   : > { %v3500_v35 = vpop.eup %3499 }
 0x5c7   : > { %1248 = vrot.lane.b32.xlu1 %v3500_v35, %s4142_s23 }
 0x5cf   : > { %v1280_v37 = vpop.permute.xlu0 %1279 }
 0x5d0   : > { %v4613_v38 = vadd.f32 %v1280_v37, %v1272_v34 }
 0x5d2   : > { %3501 = vtanh.f32 %v4613_v38 }
 0x5d8   : > { %v3502_v39 = vpop.eup %3501 }
 0x5d9   : > { %1285 = vrot.lane.b32.xlu2 %v3502_v39, %s4142_s23 }
 0x633   : > { %v1286_v40 = vpop.permute.xlu2 %1285 }
 0x634   : > { %v1288_v36 = vmul.f32 %v1286_v40, %v1269_v19 }
 0x636   : > { %1295 = vrot.lane.b32.xlu1 %v1288_v36, %s4143_s2 }
 0x639   : > { %v1249_v41 = vpop.permute.xlu1 %1248 }
 0x63a   : > { %v1251_v42 = vmul.f32 %v1249_v41, %v1232_v28 }
 0x63c   : > { %1290 = vrot.lane.b32.xlu0 %v1251_v42, %s4140_s9 }
 0x6a8   : > { %v1296_v43 = vpop.permute.xlu1 %1295 }
 0x6a9   : > { %1298 = vst.msk [vmem:[#allocation4 + $0x6] sm:$0x1] %vm1178_vm4, %v1296_v43 }
 0x6ae   : > { %v1291_v32 = vpop.permute.xlu0 %1290 }
 0x6af   : > { %1293 = vst.msk [vmem:[#allocation4 + $0x1] sm:$0x1] %vm822_vm2, %v1291_v32  ;;  %v1299_v44 = vsel %vm868_vm6, %v1291_v32, %v1296_v43 }
 0x6b0   : > { %v1300_v45 = vpack.c.bf16 %v1299_v44, %v1299_v44 }
 0x6b2   : > { %3120 = vmatmul.msk.bf16.vlgmr.msra.gmra.mxu1 %vm924_vm9, %v1300_v45  ;;  %3121 = vmatmul.msk.bf16.vlgmr.msrb.gmra.mxu2 %vm924_vm9, %v1300_v45 }
 0x6b3   : > { %1784 = vmatpush.bf16.msra.mxu1 %v4468_v62  ;;  %1797 = vmatpush.bf16.msrb.mxu2 %v4447_v53 }
 0x6b7   : > { %1785 = vmatpush.bf16.msra.mxu1 %v4498_v10  ;;  %1798 = vmatpush.bf16.msrb.mxu2 %v4476_v1 }
 0x6bb   : > { %1786 = vmatpush.bf16.msra.mxu1 %v4519_v18  ;;  %1799 = vmatpush.bf16.msrb.mxu2 %v4506_v14 }
 0x6bf   : > { %1787 = vmatpush.bf16.msra.mxu1 %v4535_v23  ;;  %1800 = vmatpush.bf16.msrb.mxu2 %v4528_v21 }
 0x72f   : > { %v1313_v46 = vpop.f32.mrf.mxu1 }
 0x730   : > { %v1331_v48 = vadd.f32 %v1330_v47, %v1313_v46  ;;  %v1451_v47 = vld [vmem:[#allocation3 + $0xc] ss:$0 sm:$0xff] }
 0x732   : > { %3503 = vtanh.f32 %v1331_v48  ;;  %v3122_v57 = vmul.f32 -1.442695, %v1331_v48 }
 0x735   : > { %v1326_v49 = vpop.f32.mrf.mxu2 }
 0x736   : > { %v1333_v51 = vadd.f32 %v1332_v50, %v1326_v49 }
 0x737   : > { %v1315_v52 = vpop.f32.mrf.mxu1 }
 0x738   : > { %v3504_v54 = vpop.eup %3503  ;;  %3505 = vtanh.f32 %v1333_v51  ;;  %v3123_v63 = vmul.f32 -1.442695, %v1333_v51 }
 0x739   : > { %1356 = vrot.lane.b32.xlu2 %v3504_v54, %s4142_s23  ;;  %3507 = vpow2.f32 %v3122_v57 }
 0x73d   : > { %v1328_v55 = vpop.f32.mrf.mxu2 }
 0x73e   : > { %v3506_v56 = vpop.eup %3505 }
 0x73f   : > { %1393 = vrot.lane.b32.xlu0 %v3506_v56, %s4142_s23  ;;  %v3508_v58 = vpop.eup %3507 }
 0x740   : > { %v1337_v59 = vadd.f32 1.0, %v3508_v58 }
 0x742   : > { %3509 = vrcp.f32 %v1337_v59  ;;  %v1349_v4 = vand.u32 2147483648, %v1337_v59  ;;  %vm1343_vm1 = vweird.f32 %v1337_v59  ;;  %v1347_v6 = vand.u32 2147483647, %v1337_v59 }
 0x743   : > { %3511 = vpow2.f32 %v3123_v63 }
 0x744   : > { %v1350_v9 = vor.u32 1.1754944e-38, %v1349_v4  ;;  %vm1348_vm5 = vcmp.eq.f32.partialorder %v1347_v6, 8.507059e+37 }
 0x748   : > { %v3510_v60 = vpop.eup %3509 }
 0x749   : > { %v1339_v61 = vmul.f32 %v3510_v60, %v1337_v59  ;;  %vm1344_vm15 = vweird.f32 %v3510_v60  ;;  %v3512_v5 = vpop.eup %3511 }
 0x74a   : > { %vm1345_vm3 = vmor %vm1343_vm1, %vm1344_vm15  ;;  %v1374_v8 = vadd.f32 1.0, %v3512_v5 }
 0x74b   : > { %v1340_v0 = vsub.f32 1.0, %v1339_v61 }
 0x74c   : > { %3513 = vrcp.f32 %v1374_v8  ;;  %v1386_v22 = vand.u32 2147483648, %v1374_v8  ;;  %vm1380_vm8 = vweird.f32 %v1374_v8  ;;  %v1384_v24 = vand.u32 2147483647, %v1374_v8 }
 0x74d   : > { %v1341_v2 = vmul.f32 %v3510_v60, %v1340_v0 }
 0x74e   : > { %v1387_v26 = vor.u32 1.1754944e-38, %v1386_v22  ;;  %vm1385_vm11 = vcmp.eq.f32.partialorder %v1384_v24, 8.507059e+37 }
 0x74f   : > { %v1342_v3 = vadd.f32 %v3510_v60, %v1341_v2 }
 0x751   : > { %v1346_v7 = vsel %vm1345_vm3, %v3510_v60, %v1342_v3 }
 0x752   : > { %v1351_v12 = vsel %vm1348_vm5, %v1350_v9, %v1346_v7  ;;  %v3514_v15 = vpop.eup %3513 }
 0x753   : > { %v1376_v16 = vmul.f32 %v3514_v15, %v1374_v8  ;;  %vm1381_vm7 = vweird.f32 %v3514_v15  ;;  %v1354_v30 = vmul.f32 %v1351_v12, %v4608_v33 }
 0x754   : > { %vm1382_vm10 = vmor %vm1380_vm8, %vm1381_vm7 }
 0x755   : > { %v1377_v17 = vsub.f32 1.0, %v1376_v16 }
 0x757   : > { %v1378_v19 = vmul.f32 %v3514_v15, %v1377_v17 }
 0x759   : > { %v1379_v20 = vadd.f32 %v3514_v15, %v1378_v19 }
 0x75b   : > { %v1383_v25 = vsel %vm1382_vm10, %v3514_v15, %v1379_v20 }
 0x75c   : > { %v1388_v28 = vsel %vm1385_vm11, %v1387_v26, %v1383_v25 }
 0x75d   : > { %v1391_v34 = vmul.f32 %v1388_v28, %v4613_v38 }
 0x793   : > { %v1357_v11 = vpop.permute.xlu2 %1356 }
 0x794   : > { %v1359_v13 = vmul.f32 %v1357_v11, %v1351_v12 }
 0x796   : > { %1361 = vrot.lane.b32.xlu1 %v1359_v13, %s4142_s23 }
 0x7b1   : > { %v1394_v27 = vpop.permute.xlu0 %1393 }
 0x7b2   : > { %v1396_v29 = vmul.f32 %v1394_v27, %v1388_v28 }
 0x7b4   : > { %1398 = vrot.lane.b32.xlu2 %v1396_v29, %s4142_s23 }
 0x808   : > { %v1362_v31 = vpop.permute.xlu1 %1361 }
 0x809   : > { %v4637_v35 = vadd.f32 %v1362_v31, %v1354_v30 }
 0x80b   : > { %3515 = vtanh.f32 %v4637_v35 }
 0x80e   : > { %v1399_v37 = vpop.permute.xlu2 %1398 }
 0x80f   : > { %v4641_v39 = vadd.f32 %v1399_v37, %v1391_v34 }
 0x811   : > { %v3516_v40 = vpop.eup %3515  ;;  %3517 = vtanh.f32 %v4641_v39 }
 0x812   : > { %1367 = vrot.lane.b32.xlu0 %v3516_v40, %s4142_s23 }
 0x817   : > { %v3518_v36 = vpop.eup %3517 }
 0x818   : > { %1404 = vrot.lane.b32.xlu1 %v3518_v36, %s4142_s23 }
 0x884   : > { %v1368_v41 = vpop.permute.xlu0 %1367 }
 0x885   : > { %v1370_v33 = vmul.f32 %v1368_v41, %v1351_v12 }
 0x887   : > { %1409 = vrot.lane.b32.xlu2 %v1370_v33, %s4140_s9  ;;  %v1568_v33 = vld [vmem:[#allocation3 + $0x4] ss:$0 sm:$0xff] }
 0x88a   : > { %v1405_v42 = vpop.permute.xlu1 %1404 }
 0x88b   : > { %v1407_v43 = vmul.f32 %v1405_v42, %v1388_v28 }
 0x88d   : > { %1414 = vrot.lane.b32.xlu0 %v1407_v43, %s4143_s2 }
 0x8e1   : > { %v1410_v38 = vpop.permute.xlu2 %1409 }
 0x8e2   : > { %1412 = vst.msk [vmem:[#allocation4 + $0x2] sm:$0x1] %vm822_vm2, %v1410_v38 }
 0x8ff   : > { %v1415_v32 = vpop.permute.xlu0 %1414 }
 0x900   : > { %1417 = vst.msk [vmem:[#allocation4 + $0x5] sm:$0x1] %vm1178_vm4, %v1415_v32  ;;  %v1418_v44 = vsel %vm868_vm6, %v1410_v38, %v1415_v32  ;;  %v1570_v38 = vld [vmem:[#allocation3 + $0xb] ss:$0 sm:$0xff] }
 0x901   : > { %v1419_v45 = vpack.c.bf16 %v1418_v44, %v1418_v44 }
 0x903   : > { %3124 = vmatmul.msk.bf16.vlgmr.msrb.gmra.mxu3 %vm924_vm9, %v1419_v45  ;;  %3125 = vmatmul.msk.bf16.vlgmr.msrb.gmra.mxu0 %vm924_vm9, %v1419_v45 }
 0x904   : > { %1903 = vmatpush.bf16.msrb.mxu3 %v4468_v62  ;;  %1916 = vmatpush.bf16.msrb.mxu0 %v4447_v53  ;;  %v1449_v62 = vld [vmem:[#allocation3 + $0x3] ss:$0 sm:$0xff] }
 0x908   : > { %1904 = vmatpush.bf16.msrb.mxu3 %v4498_v10  ;;  %1917 = vmatpush.bf16.msrb.mxu0 %v4476_v1 }
 0x90c   : > { %1905 = vmatpush.bf16.msrb.mxu3 %v4519_v18  ;;  %1918 = vmatpush.bf16.msrb.mxu0 %v4506_v14 }
 0x910   : > { %1906 = vmatpush.bf16.msrb.mxu3 %v4535_v23  ;;  %1919 = vmatpush.bf16.msrb.mxu0 %v4528_v21 }
 0x980   : > { %v1445_v46 = vpop.f32.mrf.mxu0 }
 0x981   : > { %v1452_v48 = vadd.f32 %v1451_v47, %v1445_v46 }
 0x983   : > { %3519 = vtanh.f32 %v1452_v48  ;;  %v3127_v14 = vmul.f32 -1.442695, %v1452_v48 }
 0x986   : > { %v1432_v49 = vpop.f32.mrf.mxu3 }
 0x987   : > { %v1450_v50 = vadd.f32 %v1449_v62, %v1432_v49 }
 0x988   : > { %v1447_v53 = vpop.f32.mrf.mxu0 }
 0x989   : > { %v3520_v51 = vpop.eup %3519  ;;  %3521 = vtanh.f32 %v1450_v50  ;;  %v3126_v54 = vmul.f32 -1.442695, %v1450_v50 }
 0x98a   : > { %1512 = vrot.lane.b32.xlu2 %v3520_v51, %s4142_s23  ;;  %3523 = vpow2.f32 %v3127_v14 }
 0x98e   : > { %v1434_v1 = vpop.f32.mrf.mxu3 }
 0x98f   : > { %v3522_v10 = vpop.eup %3521 }
 0x990   : > { %1475 = vrot.lane.b32.xlu1 %v3522_v10, %s4142_s23  ;;  %v3524_v18 = vpop.eup %3523 }
 0x991   : > { %v1493_v21 = vadd.f32 1.0, %v3524_v18 }
 0x993   : > { %3525 = vrcp.f32 %v1493_v21  ;;  %v1505_v58 = vand.u32 2147483648, %v1493_v21  ;;  %vm1499_vm13 = vweird.f32 %v1493_v21  ;;  %v1503_v60 = vand.u32 2147483647, %v1493_v21 }
 0x994   : > { %3527 = vpow2.f32 %v3126_v54 }
 0x995   : > { %v1506_v0 = vor.u32 1.1754944e-38, %v1505_v58  ;;  %vm1504_vm15 = vcmp.eq.f32.partialorder %v1503_v60, 8.507059e+37 }
 0x999   : > { %v3526_v23 = vpop.eup %3525 }
 0x99a   : > { %v1495_v52 = vmul.f32 %v3526_v23, %v1493_v21  ;;  %vm1500_vm12 = vweird.f32 %v3526_v23  ;;  %v3528_v59 = vpop.eup %3527 }
 0x99b   : > { %vm1501_vm14 = vmor %vm1499_vm13, %vm1500_vm12  ;;  %v1456_v63 = vadd.f32 1.0, %v3528_v59 }
 0x99c   : > { %v1496_v55 = vsub.f32 1.0, %v1495_v52 }
 0x99d   : > { %3529 = vrcp.f32 %v1456_v63  ;;  %v1468_v11 = vand.u32 2147483648, %v1456_v63  ;;  %vm1462_vm3 = vweird.f32 %v1456_v63  ;;  %v1466_v12 = vand.u32 2147483647, %v1456_v63 }
 0x99e   : > { %v1497_v56 = vmul.f32 %v3526_v23, %v1496_v55 }
 0x99f   : > { %v1469_v15 = vor.u32 1.1754944e-38, %v1468_v11  ;;  %vm1467_vm7 = vcmp.eq.f32.partialorder %v1466_v12, 8.507059e+37 }
 0x9a0   : > { %v1498_v57 = vadd.f32 %v3526_v23, %v1497_v56 }
 0x9a2   : > { %v1502_v61 = vsel %vm1501_vm14, %v3526_v23, %v1498_v57 }
 0x9a3   : > { %v1507_v3 = vsel %vm1504_vm15, %v1506_v0, %v1502_v61  ;;  %v3530_v5 = vpop.eup %3529 }
 0x9a4   : > { %v1458_v6 = vmul.f32 %v3530_v5, %v1456_v63  ;;  %vm1463_vm1 = vweird.f32 %v3530_v5  ;;  %v1510_v20 = vmul.f32 %v1507_v3, %v4641_v39 }
 0x9a5   : > { %vm1464_vm5 = vmor %vm1462_vm3, %vm1463_vm1 }
 0x9a6   : > { %v1459_v7 = vsub.f32 1.0, %v1458_v6 }
 0x9a8   : > { %v1460_v8 = vmul.f32 %v3530_v5, %v1459_v7 }
 0x9aa   : > { %v1461_v9 = vadd.f32 %v3530_v5, %v1460_v8 }
 0x9ac   : > { %v1465_v13 = vsel %vm1464_vm5, %v3530_v5, %v1461_v9 }
 0x9ad   : > { %v1470_v17 = vsel %vm1467_vm7, %v1469_v15, %v1465_v13 }
 0x9ae   : > { %v1473_v26 = vmul.f32 %v1470_v17, %v4637_v35 }
 0x9e4   : > { %v1513_v2 = vpop.permute.xlu2 %1512 }
 0x9e5   : > { %v1515_v4 = vmul.f32 %v1513_v2, %v1507_v3 }
 0x9e7   : > { %1517 = vrot.lane.b32.xlu1 %v1515_v4, %s4142_s23 }
 0xa02   : > { %v1476_v16 = vpop.permute.xlu1 %1475 }
 0xa03   : > { %v1478_v19 = vmul.f32 %v1476_v16, %v1470_v17 }
 0xa05   : > { %1480 = vrot.lane.b32.xlu0 %v1478_v19, %s4142_s23 }
 0xa59   : > { %v1518_v22 = vpop.permute.xlu1 %1517 }
 0xa5a   : > { %v4666_v24 = vadd.f32 %v1518_v22, %v1510_v20 }
 0xa5c   : > { %3531 = vtanh.f32 %v4666_v24 }
 0xa62   : > { %v3532_v25 = vpop.eup %3531 }
 0xa63   : > { %1523 = vrot.lane.b32.xlu0 %v3532_v25, %s4142_s23 }
 0xa77   : > { %v1481_v27 = vpop.permute.xlu0 %1480 }
 0xa78   : > { %v4671_v28 = vadd.f32 %v1481_v27, %v1473_v26 }
 0xa7a   : > { %3533 = vtanh.f32 %v4671_v28 }
 0xa80   : > { %v3534_v29 = vpop.eup %3533 }
 0xa81   : > { %1486 = vrot.lane.b32.xlu2 %v3534_v29, %s4142_s23 }
 0xad5   : > { %v1524_v30 = vpop.permute.xlu0 %1523 }
 0xad6   : > { %v1526_v31 = vmul.f32 %v1524_v30, %v1507_v3 }
 0xad8   : > { %1533 = vrot.lane.b32.xlu2 %v1526_v31, %s4143_s2  ;;  %v1689_v31 = vld [vmem:[#allocation3 + $0xa] ss:$0 sm:$0xff] }
 0xadb   : > { %v1487_v34 = vpop.permute.xlu2 %1486 }
 0xadc   : > { %v1489_v37 = vmul.f32 %v1487_v34, %v1470_v17 }
 0xade   : > { %1528 = vrot.lane.b32.xlu1 %v1489_v37, %s4140_s9 }
 0xb32   : > { %v1534_v39 = vpop.permute.xlu2 %1533 }
 0xb33   : > { %1536 = vst.msk [vmem:[#allocation4 + $0x4] sm:$0x1] %vm1178_vm4, %v1534_v39 }
 0xb50   : > { %v1529_v35 = vpop.permute.xlu1 %1528 }
 0xb51   : > { %1531 = vst.msk [vmem:[#allocation4 + $0x3] sm:$0x1] %vm822_vm2, %v1529_v35  ;;  %v1537_v40 = vsel %vm868_vm6, %v1529_v35, %v1534_v39  ;;  %v1687_v39 = vld [vmem:[#allocation3 + $0x5] ss:$0 sm:$0xff] }
 0xb52   : > { %v1538_v36 = vpack.c.bf16 %v1537_v40, %v1537_v40 }
 0xb54   : > { %3128 = vmatmul.msk.bf16.vlgmr.msrb.gmra.mxu1 %vm924_vm9, %v1538_v36  ;;  %3129 = vmatmul.msk.bf16.vlgmr.msra.gmra.mxu2 %vm924_vm9, %v1538_v36 }
 0xbd1   : > { %v1551_v41 = vpop.f32.mrf.mxu1 }
 0xbd2   : > { %v1569_v42 = vadd.f32 %v1568_v33, %v1551_v41 }
 0xbd4   : > { %3535 = vtanh.f32 %v1569_v42  ;;  %v3130_v48 = vmul.f32 -1.442695, %v1569_v42 }
 0xbd7   : > { %v1564_v43 = vpop.f32.mrf.mxu2 }
 0xbd8   : > { %v1571_v32 = vadd.f32 %v1570_v38, %v1564_v43 }
 0xbd9   : > { %v1553_v44 = vpop.f32.mrf.mxu1 }
 0xbda   : > { %v3536_v45 = vpop.eup %3535  ;;  %3537 = vtanh.f32 %v1571_v32  ;;  %v3131_v49 = vmul.f32 -1.442695, %v1571_v32 }
 0xbdb   : > { %1594 = vrot.lane.b32.xlu0 %v3536_v45, %s4142_s23  ;;  %3539 = vpow2.f32 %v3130_v48 }
 0xbdc   : > { %3541 = vpow2.f32 %v3131_v49 }
 0xbdf   : > { %v1566_v46 = vpop.f32.mrf.mxu2 }
 0xbe0   : > { %v3538_v47 = vpop.eup %3537 }
 0xbe1   : > { %1631 = vrot.lane.b32.xlu1 %v3538_v47, %s4142_s23  ;;  %v3540_v62 = vpop.eup %3539 }
 0xbe2   : > { %v1575_v50 = vadd.f32 1.0, %v3540_v62  ;;  %v3542_v53 = vpop.eup %3541 }
 0xbe3   : > { %v1612_v51 = vadd.f32 1.0, %v3542_v53 }
 0xbe4   : > { %3543 = vrcp.f32 %v1575_v50  ;;  %v1587_v55 = vand.u32 2147483648, %v1575_v50  ;;  %vm1581_vm10 = vweird.f32 %v1575_v50  ;;  %v1585_v56 = vand.u32 2147483647, %v1575_v50 }
 0xbe5   : > { %3545 = vrcp.f32 %v1612_v51  ;;  %v1624_v0 = vand.u32 2147483648, %v1612_v51  ;;  %vm1618_vm14 = vweird.f32 %v1612_v51  ;;  %v1622_v3 = vand.u32 2147483647, %v1612_v51 }
 0xbe6   : > { %v1588_v59 = vor.u32 1.1754944e-38, %v1587_v55  ;;  %vm1586_vm12 = vcmp.eq.f32.partialorder %v1585_v56, 8.507059e+37 }
 0xbe7   : > { %v1625_v5 = vor.u32 1.1754944e-38, %v1624_v0  ;;  %vm1623_vm1 = vcmp.eq.f32.partialorder %v1622_v3, 8.507059e+37 }
 0xbea   : > { %v3544_v1 = vpop.eup %3543 }
 0xbeb   : > { %v1577_v10 = vmul.f32 %v3544_v1, %v1575_v50  ;;  %v3546_v14 = vpop.eup %3545  ;;  %vm1582_vm8 = vweird.f32 %v3544_v1 }
 0xbec   : > { %v1614_v21 = vmul.f32 %v3546_v14, %v1612_v51  ;;  %vm1583_vm11 = vmor %vm1581_vm10, %vm1582_vm8  ;;  %vm1619_vm13 = vweird.f32 %v3546_v14 }
 0xbed   : > { %v1578_v18 = vsub.f32 1.0, %v1577_v10  ;;  %vm1620_vm15 = vmor %vm1618_vm14, %vm1619_vm13 }
 0xbee   : > { %v1615_v52 = vsub.f32 1.0, %v1614_v21 }
 0xbef   : > { %v1579_v23 = vmul.f32 %v3544_v1, %v1578_v18 }
 0xbf0   : > { %v1616_v57 = vmul.f32 %v3546_v14, %v1615_v52 }
 0xbf1   : > { %v1580_v54 = vadd.f32 %v3544_v1, %v1579_v23 }
 0xbf2   : > { %v1617_v60 = vadd.f32 %v3546_v14, %v1616_v57 }
 0xbf3   : > { %v1584_v58 = vsel %vm1583_vm11, %v3544_v1, %v1580_v54 }
 0xbf4   : > { %v1589_v63 = vsel %vm1586_vm12, %v1588_v59, %v1584_v58  ;;  %v1621_v4 = vsel %vm1620_vm15, %v3546_v14, %v1617_v60 }
 0xbf5   : > { %v1626_v7 = vsel %vm1623_vm1, %v1625_v5, %v1621_v4  ;;  %v1592_v9 = vmul.f32 %v1589_v63, %v4671_v28 }
 0xbf6   : > { %v1629_v15 = vmul.f32 %v1626_v7, %v4666_v24 }
 0xc4d   : > { %v1595_v61 = vpop.permute.xlu0 %1594 }
 0xc4e   : > { %v1597_v2 = vmul.f32 %v1595_v61, %v1589_v63 }
 0xc50   : > { %1599 = vrot.lane.b32.xlu2 %v1597_v2, %s4142_s23 }
 0xc53   : > { %v1632_v6 = vpop.permute.xlu1 %1631 }
 0xc54   : > { %v1634_v8 = vmul.f32 %v1632_v6, %v1626_v7 }
 0xc56   : > { %1636 = vrot.lane.b32.xlu0 %v1634_v8, %s4142_s23 }
 0xcaa   : > { %v1600_v11 = vpop.permute.xlu2 %1599 }
 0xcab   : > { %v4687_v12 = vadd.f32 %v1600_v11, %v1592_v9 }
 0xcad   : > { %3547 = vtanh.f32 %v4687_v12 }
 0xcb3   : > { %v3548_v13 = vpop.eup %3547 }
 0xcb4   : > { %1605 = vrot.lane.b32.xlu1 %v3548_v13, %s4142_s23 }
 0xcc8   : > { %v1637_v16 = vpop.permute.xlu0 %1636 }
 0xcc9   : > { %v4692_v17 = vadd.f32 %v1637_v16, %v1629_v15 }
 0xccb   : > { %3549 = vtanh.f32 %v4692_v17 }
 0xcd1   : > { %v3550_v19 = vpop.eup %3549 }
 0xcd2   : > { %1642 = vrot.lane.b32.xlu2 %v3550_v19, %s4142_s23 }
 0xd26   : > { %v1606_v20 = vpop.permute.xlu1 %1605 }
 0xd27   : > { %v1608_v22 = vmul.f32 %v1606_v20, %v1589_v63 }
 0xd29   : > { %1647 = vrot.lane.b32.xlu0 %v1608_v22, %s4140_s9  ;;  %v1806_v22 = vld [vmem:[#allocation3 + $0x6] ss:$0 sm:$0xff] }
 0xd2c   : > { %v1643_v25 = vpop.permute.xlu2 %1642 }
 0xd2d   : > { %v1645_v26 = vmul.f32 %v1643_v25, %v1626_v7 }
 0xd2f   : > { %1652 = vrot.lane.b32.xlu1 %v1645_v26, %s4143_s2 }
 0xd9b   : > { %v1648_v27 = vpop.permute.xlu0 %1647 }
 0xd9c   : > { %1650 = vst.msk [vmem:[#allocation4 + $0x4] sm:$0x1] %vm822_vm2, %v1648_v27 }
 0xda1   : > { %v1653_v24 = vpop.permute.xlu1 %1652 }
 0xda2   : > { %1655 = vst.msk [vmem:[#allocation4 + $0x3] sm:$0x1] %vm1178_vm4, %v1653_v24  ;;  %v1656_v28 = vsel %vm868_vm6, %v1648_v27, %v1653_v24  ;;  %v1808_v27 = vld [vmem:[#allocation3 + $0x9] ss:$0 sm:$0xff] }
 0xda3   : > { %v1657_v29 = vpack.c.bf16 %v1656_v28, %v1656_v28 }
 0xda5   : > { %3132 = vmatmul.msk.bf16.vlgmr.msra.gmra.mxu3 %vm924_vm9, %v1657_v29  ;;  %3133 = vmatmul.msk.bf16.vlgmr.msra.gmra.mxu0 %vm924_vm9, %v1657_v29 }
 0xe22   : > { %v1683_v30 = vpop.f32.mrf.mxu0 }
 0xe23   : > { %v1690_v34 = vadd.f32 %v1689_v31, %v1683_v30 }
 0xe25   : > { %3551 = vtanh.f32 %v1690_v34  ;;  %v3135_v32 = vmul.f32 -1.442695, %v1690_v34 }
 0xe28   : > { %v1670_v37 = vpop.f32.mrf.mxu3 }
 0xe29   : > { %v1688_v35 = vadd.f32 %v1687_v39, %v1670_v37 }
 0xe2a   : > { %v1685_v40 = vpop.f32.mrf.mxu0 }
 0xe2b   : > { %v3552_v36 = vpop.eup %3551  ;;  %3553 = vtanh.f32 %v1688_v35  ;;  %v3134_v42 = vmul.f32 -1.442695, %v1688_v35 }
 0xe2c   : > { %1750 = vrot.lane.b32.xlu0 %v3552_v36, %s4142_s23 }
 0xe2d   : > { %3555 = vpow2.f32 %v3134_v42 }
 0xe30   : > { %v1672_v41 = vpop.f32.mrf.mxu3 }
 0xe31   : > { %v3554_v33 = vpop.eup %3553 }
 0xe32   : > { %1713 = vrot.lane.b32.xlu2 %v3554_v33, %s4142_s23 }
 0xe33   : > { %v3556_v43 = vpop.eup %3555 }
 0xe34   : > { %v1694_v38 = vadd.f32 1.0, %v3556_v43 }
 0xe36   : > { %3557 = vrcp.f32 %v1694_v38  ;;  %v1706_v50 = vand.u32 2147483648, %v1694_v38  ;;  %vm1700_vm5 = vweird.f32 %v1694_v38  ;;  %v1704_v53 = vand.u32 2147483647, %v1694_v38 }
 0xe37   : > { %3559 = vpow2.f32 %v3135_v32 }
 0xe38   : > { %v1707_v10 = vor.u32 1.1754944e-38, %v1706_v50  ;;  %vm1705_vm8 = vcmp.eq.f32.partialorder %v1704_v53, 8.507059e+37 }
 0xe3c   : > { %v3558_v44 = vpop.eup %3557 }
 0xe3d   : > { %v1696_v45 = vmul.f32 %v3558_v44, %v1694_v38  ;;  %v3560_v46 = vpop.eup %3559  ;;  %vm1701_vm3 = vweird.f32 %v3558_v44 }
 0xe3e   : > { %v1731_v48 = vadd.f32 1.0, %v3560_v46  ;;  %vm1702_vm7 = vmor %vm1700_vm5, %vm1701_vm3 }
 0xe3f   : > { %v1697_v47 = vsub.f32 1.0, %v1696_v45 }
 0xe40   : > { %3561 = vrcp.f32 %v1731_v48  ;;  %v1743_v56 = vand.u32 2147483648, %v1731_v48  ;;  %vm1737_vm11 = vweird.f32 %v1731_v48  ;;  %v1741_v57 = vand.u32 2147483647, %v1731_v48 }
 0xe41   : > { %v1698_v49 = vmul.f32 %v3558_v44, %v1697_v47 }
 0xe42   : > { %v1744_v59 = vor.u32 1.1754944e-38, %v1743_v56  ;;  %vm1742_vm13 = vcmp.eq.f32.partialorder %v1741_v57, 8.507059e+37 }
 0xe43   : > { %v1699_v62 = vadd.f32 %v3558_v44, %v1698_v49 }
 0xe45   : > { %v1703_v1 = vsel %vm1702_vm7, %v3558_v44, %v1699_v62 }
 0xe46   : > { %v3562_v51 = vpop.eup %3561  ;;  %v1708_v21 = vsel %vm1705_vm8, %v1707_v10, %v1703_v1 }
 0xe47   : > { %v1733_v14 = vmul.f32 %v3562_v51, %v1731_v48  ;;  %vm1738_vm10 = vweird.f32 %v3562_v51  ;;  %v1711_v4 = vmul.f32 %v1708_v21, %v4687_v12 }
 0xe48   : > { %vm1739_vm12 = vmor %vm1737_vm11, %vm1738_vm10 }
 0xe49   : > { %v1734_v52 = vsub.f32 1.0, %v1733_v14 }
 0xe4b   : > { %v1735_v54 = vmul.f32 %v3562_v51, %v1734_v52 }
 0xe4d   : > { %v1736_v55 = vadd.f32 %v3562_v51, %v1735_v54 }
 0xe4f   : > { %v1740_v58 = vsel %vm1739_vm12, %v3562_v51, %v1736_v55 }
 0xe50   : > { %v1745_v61 = vsel %vm1742_vm13, %v1744_v59, %v1740_v58 }
 0xe51   : > { %v1748_v0 = vmul.f32 %v1745_v61, %v4692_v17 }
 0xe8c   : > { %v1714_v18 = vpop.permute.xlu2 %1713 }
 0xe8d   : > { %v1716_v23 = vmul.f32 %v1714_v18, %v1708_v21 }
 0xe8f   : > { %1718 = vrot.lane.b32.xlu1 %v1716_v23, %s4142_s23 }
 0xe9e   : > { %v1751_v60 = vpop.permute.xlu0 %1750 }
 0xe9f   : > { %v1753_v63 = vmul.f32 %v1751_v60, %v1745_v61 }
 0xea1   : > { %1755 = vrot.lane.b32.xlu2 %v1753_v63, %s4142_s23 }
 0xefb   : > { %v1756_v2 = vpop.permute.xlu2 %1755 }
 0xefc   : > { %v4708_v3 = vadd.f32 %v1756_v2, %v1748_v0 }
 0xefe   : > { %3563 = vtanh.f32 %v4708_v3 }
 0xf01   : > { %v1719_v5 = vpop.permute.xlu1 %1718 }
 0xf02   : > { %v4712_v6 = vadd.f32 %v1719_v5, %v1711_v4 }
 0xf04   : > { %v3564_v7 = vpop.eup %3563  ;;  %3565 = vtanh.f32 %v4712_v6 }
 0xf05   : > { %1761 = vrot.lane.b32.xlu1 %v3564_v7, %s4142_s23 }
 0xf0a   : > { %v3566_v8 = vpop.eup %3565 }
 0xf0b   : > { %1724 = vrot.lane.b32.xlu0 %v3566_v8, %s4142_s23 }
 0xf77   : > { %v1762_v9 = vpop.permute.xlu1 %1761 }
 0xf78   : > { %v1764_v11 = vmul.f32 %v1762_v9, %v1745_v61 }
 0xf7a   : > { %1771 = vrot.lane.b32.xlu0 %v1764_v11, %s4143_s2  ;;  %v1927_v11 = vld [vmem:[#allocation3 + $0x8] ss:$0 sm:$0xff] }
 0xf7d   : > { %v1725_v13 = vpop.permute.xlu0 %1724 }
 0xf7e   : > { %v1727_v15 = vmul.f32 %v1725_v13, %v1708_v21 }
 0xf80   : > { %1766 = vrot.lane.b32.xlu2 %v1727_v15, %s4140_s9 }
 0xfda   : > { %v1767_v12 = vpop.permute.xlu2 %1766 }
 0xfdb   : > { %1769 = vst.msk [vmem:[#allocation4 + $0x5] sm:$0x1] %vm822_vm2, %v1767_v12 }
 0xfec   : > { %v1772_v16 = vpop.permute.xlu0 %1771 }
 0xfed   : > { %1774 = vst.msk [vmem:[#allocation4 + $0x2] sm:$0x1] %vm1178_vm4, %v1772_v16  ;;  %v1775_v17 = vsel %vm868_vm6, %v1767_v12, %v1772_v16  ;;  %v1925_v12 = vld [vmem:[#allocation3 + $0x7] ss:$0 sm:$0xff] }
 0xfee   : > { %v1776_v19 = vpack.c.bf16 %v1775_v17, %v1775_v17 }
 0xff0   : > { %3136 = vmatmul.msk.bf16.vlgmr.msra.gmra.mxu1 %vm924_vm9, %v1776_v19  ;;  %3137 = vmatmul.msk.bf16.vlgmr.msrb.gmra.mxu2 %vm924_vm9, %v1776_v19 }
0x106d   : > { %v1789_v20 = vpop.f32.mrf.mxu1 }
0x106e   : > { %v1807_v25 = vadd.f32 %v1806_v22, %v1789_v20 }
0x1070   : > { %3567 = vtanh.f32 %v1807_v25  ;;  %v3138_v35 = vmul.f32 -1.442695, %v1807_v25 }
0x1073   : > { %v1802_v26 = vpop.f32.mrf.mxu2 }
0x1074   : > { %v1809_v24 = vadd.f32 %v1808_v27, %v1802_v26 }
0x1075   : > { %v1791_v28 = vpop.f32.mrf.mxu1 }
0x1076   : > { %v3568_v29 = vpop.eup %3567  ;;  %3569 = vtanh.f32 %v1809_v24  ;;  %v3139_v34 = vmul.f32 -1.442695, %v1809_v24 }
0x1077   : > { %1832 = vrot.lane.b32.xlu1 %v3568_v29, %s4142_s23 }
0x1078   : > { %3571 = vpow2.f32 %v3139_v34 }
0x107b   : > { %v1804_v30 = vpop.f32.mrf.mxu2 }
0x107c   : > { %v3570_v31 = vpop.eup %3569 }
0x107d   : > { %1869 = vrot.lane.b32.xlu2 %v3570_v31, %s4142_s23 }
0x107e   : > { %v3572_v37 = vpop.eup %3571 }
0x107f   : > { %v1850_v39 = vadd.f32 1.0, %v3572_v37 }
0x1081   : > { %3573 = vrcp.f32 %v1850_v39  ;;  %v1862_v32 = vand.u32 2147483648, %v1850_v39  ;;  %vm1856_vm15 = vweird.f32 %v1850_v39  ;;  %v1860_v44 = vand.u32 2147483647, %v1850_v39 }
0x1082   : > { %3575 = vpow2.f32 %v3138_v35 }
0x1083   : > { %v1863_v47 = vor.u32 1.1754944e-38, %v1862_v32  ;;  %vm1861_vm3 = vcmp.eq.f32.partialorder %v1860_v44, 8.507059e+37 }
0x1087   : > { %v3574_v40 = vpop.eup %3573 }
0x1088   : > { %v1852_v36 = vmul.f32 %v3574_v40, %v1850_v39  ;;  %v3576_v41 = vpop.eup %3575  ;;  %vm1857_vm14 = vweird.f32 %v3574_v40 }
0x1089   : > { %v1813_v42 = vadd.f32 1.0, %v3576_v41  ;;  %vm1858_vm1 = vmor %vm1856_vm15, %vm1857_vm14 }
0x108a   : > { %v1853_v33 = vsub.f32 1.0, %v1852_v36 }
0x108b   : > { %3577 = vrcp.f32 %v1813_v42  ;;  %v1825_v10 = vand.u32 2147483648, %v1813_v42  ;;  %vm1819_vm7 = vweird.f32 %v1813_v42  ;;  %v1823_v14 = vand.u32 2147483647, %v1813_v42 }
0x108c   : > { %v1854_v43 = vmul.f32 %v3574_v40, %v1853_v33 }
0x108d   : > { %v1826_v21 = vor.u32 1.1754944e-38, %v1825_v10  ;;  %vm1824_vm10 = vcmp.eq.f32.partialorder %v1823_v14, 8.507059e+37 }
0x108e   : > { %v1855_v38 = vadd.f32 %v3574_v40, %v1854_v43 }
0x1090   : > { %v1859_v46 = vsel %vm1858_vm1, %v3574_v40, %v1855_v38 }
0x1091   : > { %v3578_v45 = vpop.eup %3577  ;;  %v1864_v62 = vsel %vm1861_vm3, %v1863_v47, %v1859_v46 }
0x1092   : > { %v1815_v48 = vmul.f32 %v3578_v45, %v1813_v42  ;;  %vm1820_vm5 = vweird.f32 %v3578_v45  ;;  %v1867_v55 = vmul.f32 %v1864_v62, %v4708_v3 }
0x1093   : > { %vm1821_vm8 = vmor %vm1819_vm7, %vm1820_vm5 }
0x1094   : > { %v1816_v53 = vsub.f32 1.0, %v1815_v48 }
0x1096   : > { %v1817_v51 = vmul.f32 %v3578_v45, %v1816_v53 }
0x1098   : > { %v1818_v1 = vadd.f32 %v3578_v45, %v1817_v51 }
0x109a   : > { %v1822_v18 = vsel %vm1821_vm8, %v3578_v45, %v1818_v1 }
0x109b   : > { %v1827_v52 = vsel %vm1824_vm10, %v1826_v21, %v1822_v18 }
0x109c   : > { %v1830_v59 = vmul.f32 %v1827_v52, %v4712_v6 }
0x10d7   : > { %v1870_v49 = vpop.permute.xlu2 %1869 }
0x10d8   : > { %v1872_v50 = vmul.f32 %v1870_v49, %v1864_v62 }
0x10da   : > { %1874 = vrot.lane.b32.xlu1 %v1872_v50, %s4142_s23 }
0x10e9   : > { %v1833_v23 = vpop.permute.xlu1 %1832 }
0x10ea   : > { %v1835_v54 = vmul.f32 %v1833_v23, %v1827_v52 }
0x10ec   : > { %1837 = vrot.lane.b32.xlu0 %v1835_v54, %s4142_s23 }
0x114c   : > { %v1875_v56 = vpop.permute.xlu1 %1874 }
0x114d   : > { %v4729_v57 = vadd.f32 %v1875_v56, %v1867_v55 }
0x114f   : > { %3579 = vtanh.f32 %v4729_v57 }
0x1155   : > { %v3580_v58 = vpop.eup %3579 }
0x1156   : > { %1880 = vrot.lane.b32.xlu0 %v3580_v58, %s4142_s23 }
0x115e   : > { %v1838_v60 = vpop.permute.xlu0 %1837 }
0x115f   : > { %v4734_v61 = vadd.f32 %v1838_v60, %v1830_v59  ;;  %v3170_v60 = vld [vmem:[%s4922_s8 + $0x30] sm:$0xf] }
0x1161   : > { %3581 = vtanh.f32 %v4734_v61 }
0x1167   : > { %v3582_v63 = vpop.eup %3581 }
0x1168   : > { %1843 = vrot.lane.b32.xlu2 %v3582_v63, %s4142_s23 }
0x11c2   : > { %v1844_v0 = vpop.permute.xlu2 %1843 }
0x11c3   : > { %v1846_v2 = vmul.f32 %v1844_v0, %v1827_v52  ;;  %v3172_v0 = vld [vmem:[%s4922_s8 + $0x38] sm:$0xf0] }
0x11c5   : > { %1885 = vrot.lane.b32.xlu1 %v1846_v2, %s4140_s9  ;;  %v3162_v2 = vld [vmem:[%s4922_s8 + $0x20] sm:$0xf] }
0x11c8   : > { %v1881_v3 = vpop.permute.xlu0 %1880 }
0x11c9   : > { %v1883_v4 = vmul.f32 %v1881_v3, %v1864_v62  ;;  %v3281_v3 = vld [vmem:[%s4922_s8 + $0x24] sm:$0xf0] }
0x11cb   : > { %1890 = vrot.lane.b32.xlu2 %v1883_v4, %s4143_s2 }
0x1225   : > { %v1891_v5 = vpop.permute.xlu2 %1890 }
0x1226   : > { %1893 = vst.msk [vmem:[#allocation4 + $0x1] sm:$0x1] %vm1178_vm4, %v1891_v5 }
0x1237   : > { %v1886_v6 = vpop.permute.xlu1 %1885 }
0x1238   : > { %1888 = vst.msk [vmem:[#allocation4 + $0x6] sm:$0x1] %vm822_vm2, %v1886_v6  ;;  %v1894_v7 = vsel %vm868_vm6, %v1886_v6, %v1891_v5  ;;  %v3184_v5 = vld [vmem:[#allocation11 + $0x10] sm:$0xf]  ;;  %v3285_v6 = vld [vmem:[#allocation11 + $0x14] sm:$0xf0] }
0x1239   : > { %v1895_v8 = vpack.c.bf16 %v1894_v7, %v1894_v7  ;;  %v3280_v7 = vld [vmem:[%s4922_s8 + $0x24] sm:$0xf] }
0x123b   : > { %3140 = vmatmul.msk.bf16.vlgmr.msrb.gmra.mxu3 %vm924_vm9, %v1895_v8  ;;  %3141 = vmatmul.msk.bf16.vlgmr.msrb.gmra.mxu0 %vm924_vm9, %v1895_v8  ;;  %v3163_v8 = vor.u32 %v3281_v3, %v3162_v2 }
0x12b8   : > { %v1921_v9 = vpop.f32.mrf.mxu0 }
0x12b9   : > { %v1928_v13 = vadd.f32 %v1927_v11, %v1921_v9  ;;  %v3185_v9 = vor.u32 %v3285_v6, %v3184_v5  ;;  %v3164_v11 = vld [vmem:[%s4922_s8 + $0x28] sm:$0xf0] }
0x12bb   : > { %3583 = vtanh.f32 %v1928_v13  ;;  %v3143_v25 = vmul.f32 -1.442695, %v1928_v13  ;;  %v3167_v13 = vor.u32 %v3280_v7, %v3164_v11  ;;  %2125 = vmatpush.bf16.msra.mxu3 %v3185_v9  ;;  %2184 = vmatpush.bf16.msra.mxu0 %v3185_v9 }
0x12be   : > { %v1908_v15 = vpop.f32.mrf.mxu3 }
0x12bf   : > { %v1926_v16 = vadd.f32 %v1925_v12, %v1908_v15  ;;  %v3154_v15 = vld [vmem:[%s4922_s8 + $0x10] sm:$0xf]  ;;  %v3279_v12 = vld [vmem:[%s4922_s8 + $0x14] sm:$0xf0] }
0x12c0   : > { %v1923_v17 = vpop.f32.mrf.mxu0 }
0x12c1   : > { %v3584_v19 = vpop.eup %3583  ;;  %3585 = vtanh.f32 %v1926_v16  ;;  %v3142_v26 = vmul.f32 -1.442695, %v1926_v16  ;;  %v3278_v16 = vld [vmem:[%s4922_s8 + $0x14] sm:$0xf]  ;;  %v3155_v17 = vor.u32 %v3279_v12, %v3154_v15 }
0x12c2   : > { %1988 = vrot.lane.b32.xlu1 %v3584_v19, %s4142_s23  ;;  %3587 = vpow2.f32 %v3143_v25  ;;  %v3156_v19 = vld [vmem:[%s4922_s8 + $0x18] sm:$0xf0] }
0x12c3   : > { %3589 = vpow2.f32 %v3142_v26  ;;  %v3159_v25 = vor.u32 %v3278_v16, %v3156_v19 }
0x12c6   : > { %v1910_v20 = vpop.f32.mrf.mxu3 }
0x12c7   : > { %v3586_v22 = vpop.eup %3585  ;;  %v3180_v20 = vld [vmem:[#allocation11] sm:$0xf] }
0x12c8   : > { %1951 = vrot.lane.b32.xlu0 %v3586_v22, %s4142_s23  ;;  %v3588_v27 = vpop.eup %3587  ;;  %v3284_v22 = vld [vmem:[#allocation11 + $0x4] sm:$0xf0] }
0x12c9   : > { %v1969_v24 = vadd.f32 1.0, %v3588_v27  ;;  %v3590_v28 = vpop.eup %3589  ;;  %v3181_v26 = vor.u32 %v3284_v22, %v3180_v20  ;;  %v3146_v27 = vld [vmem:[%s4922_s8] sm:$0xf] }
0x12ca   : > { %v1932_v29 = vadd.f32 1.0, %v3590_v28  ;;  %v3276_v28 = vld [vmem:[%s4922_s8 + $0x4] sm:$0xf] }
0x12cb   : > { %3591 = vrcp.f32 %v1969_v24  ;;  %v1981_v41 = vand.u32 2147483648, %v1969_v24  ;;  %vm1975_vm12 = vweird.f32 %v1969_v24  ;;  %v1979_v33 = vand.u32 2147483647, %v1969_v24  ;;  %2126 = vmatpush.bf16.msra.mxu3 %v3181_v26  ;;  %2185 = vmatpush.bf16.msra.mxu0 %v3181_v26 }
0x12cc   : > { %3593 = vrcp.f32 %v1932_v29  ;;  %v1944_v46 = vand.u32 2147483648, %v1932_v29  ;;  %vm1938_vm1 = vweird.f32 %v1932_v29  ;;  %v1942_v48 = vand.u32 2147483647, %v1932_v29 }
0x12cd   : > { %v1982_v38 = vor.u32 1.1754944e-38, %v1981_v41  ;;  %vm1980_vm14 = vcmp.eq.f32.partialorder %v1979_v33, 8.507059e+37  ;;  %v2023_v33 = vld [vmem:[#allocation13] sm:$0x3] }
0x12ce   : > { %v1945_v62 = vor.u32 1.1754944e-38, %v1944_v46  ;;  %vm1943_vm5 = vcmp.eq.f32.partialorder %v1942_v48, 8.507059e+37 }
0x12cf   : > { %2361 = vmatpush.bf16.msrb.mxu3 %v3185_v9  ;;  %2420 = vmatpush.bf16.msrb.mxu0 %v3185_v9 }
0x12d1   : > { %v3592_v30 = vpop.eup %3591 }
0x12d2   : > { %v1971_v31 = vmul.f32 %v3592_v30, %v1969_v24  ;;  %v3594_v34 = vpop.eup %3593  ;;  %vm1976_vm11 = vweird.f32 %v3592_v30  ;;  %v3277_v24 = vld [vmem:[%s4922_s8 + $0x4] sm:$0xf0] }
0x12d3   : > { %v1934_v39 = vmul.f32 %v3594_v34, %v1932_v29  ;;  %vm1977_vm13 = vmor %vm1975_vm12, %vm1976_vm11  ;;  %vm1939_vm15 = vweird.f32 %v3594_v34  ;;  %v3148_v29 = vld [vmem:[%s4922_s8 + $0x8] sm:$0xf0]  ;;  %2362 = vmatpush.bf16.msrb.mxu3 %v3181_v26  ;;  %2421 = vmatpush.bf16.msrb.mxu0 %v3181_v26 }
0x12d4   : > { %v1972_v37 = vsub.f32 1.0, %v1971_v31  ;;  %vm1940_vm3 = vmor %vm1938_vm1, %vm1939_vm15  ;;  %v3151_v31 = vor.u32 %v3276_v28, %v3148_v29 }
0x12d5   : > { %v1935_v40 = vsub.f32 1.0, %v1934_v39 }
0x12d6   : > { %v1973_v35 = vmul.f32 %v3592_v30, %v1972_v37 }
0x12d7   : > { %v1936_v42 = vmul.f32 %v3594_v34, %v1935_v40 }
0x12d8   : > { %v1974_v36 = vadd.f32 %v3592_v30, %v1973_v35 }
0x12d9   : > { %v1937_v32 = vadd.f32 %v3594_v34, %v1936_v42  ;;  %v2025_v42 = vperm.slane %v2023_v33, 0 }
0x12da   : > { %v1978_v43 = vsel %vm1977_vm13, %v3592_v30, %v1974_v36  ;;  %v3147_v30 = vor.u32 %v3277_v24, %v3146_v27 }
0x12db   : > { %v1983_v45 = vsel %vm1980_vm14, %v1982_v38, %v1978_v43  ;;  %v1941_v49 = vsel %vm1940_vm3, %v3594_v34, %v1937_v32  ;;  %v4144_v34 = vmov 0   ;;  %v2026_v32 = vperm.slane %v2023_v33, 1 }
0x12dc   : > { %v1946_v53 = vsel %vm1943_vm5, %v1945_v62, %v1941_v49  ;;  %v1986_v21 = vmul.f32 %v1983_v45, %v4729_v57  ;;  %v3283_v57 = vld [vmem:[%s4922_s8 + $0x34] sm:$0xf0]  ;;  %2127 = vmatmul.bf16.vlgmr.msra.gmra.mxu3 %v4144_v34 }
0x12dd   : > { %v1949_v1 = vmul.f32 %v1946_v53, %v4734_v61  ;;  %v3282_v61 = vld [vmem:[%s4922_s8 + $0x34] sm:$0xf]  ;;  %v3171_v63 = vor.u32 %v3283_v57, %v3170_v60 }
0x12de   : > { %v3175_v4 = vor.u32 %v3282_v61, %v3172_v0 }
0x12df   : > { %2076 = vmatpush.bf16.msrb.mxu1 %v3171_v63 }
0x12e0   : > { %2089 = vmatpush.bf16.msra.mxu2 %v3175_v4 }
0x12e3   : > { %2077 = vmatpush.bf16.msrb.mxu1 %v3163_v8 }
0x12e4   : > { %2090 = vmatpush.bf16.msra.mxu2 %v3167_v13 }
0x12e7   : > { %2078 = vmatpush.bf16.msrb.mxu1 %v3155_v17 }
0x12e8   : > { %2091 = vmatpush.bf16.msra.mxu2 %v3159_v25 }
0x12eb   : > { %2079 = vmatpush.bf16.msrb.mxu1 %v3147_v30 }
0x12ec   : > { %2092 = vmatpush.bf16.msra.mxu2 %v3151_v31 }
0x12ef   : > { %2243 = vmatpush.bf16.msra.mxu1 %v3185_v9 }
0x12f0   : > { %2302 = vmatpush.bf16.msrb.mxu2 %v3185_v9 }
0x12f3   : > { %2244 = vmatpush.bf16.msra.mxu1 %v3181_v26 }
0x12f4   : > { %2303 = vmatpush.bf16.msrb.mxu2 %v3181_v26 }
0x1334   : > { %v1989_v44 = vpop.permute.xlu1 %1988 }
0x1335   : > { %v1991_v47 = vmul.f32 %v1989_v44, %v1983_v45 }
0x1337   : > { %1993 = vrot.lane.b32.xlu0 %v1991_v47, %s4142_s23 }
0x133a   : > { %v1952_v50 = vpop.permute.xlu0 %1951 }
0x133b   : > { %v1954_v51 = vmul.f32 %v1952_v50, %v1946_v53 }
0x133d   : > { %1956 = vrot.lane.b32.xlu2 %v1954_v51, %s4142_s23 }
0x135f   : > { %v2128_v36 = vpop.f32.mrf.mxu3 }
0x1367   : > { %v2130_v41 = vpop.f32.mrf.mxu3 }
0x1397   : > { %v1957_v10 = vpop.permute.xlu2 %1956 }
0x1398   : > { %v1959_v14 = vadd.f32 %v1957_v10, %v1949_v1 }
0x139a   : > { %3595 = vtanh.f32 %v1959_v14 }
0x13a0   : > { %v3596_v18 = vpop.eup %3595 }
0x13a1   : > { %1962 = vrot.lane.b32.xlu1 %v3596_v18, %s4142_s23 }
0x13a9   : > { %v1994_v23 = vpop.permute.xlu0 %1993 }
0x13aa   : > { %v1996_v52 = vadd.f32 %v1994_v23, %v1986_v21 }
0x13ac   : > { %3597 = vtanh.f32 %v1996_v52 }
0x13b2   : > { %v3598_v54 = vpop.eup %3597 }
0x13b3   : > { %1999 = vrot.lane.b32.xlu2 %v3598_v54, %s4142_s23 }
0x140d   : > { %v2000_v55 = vpop.permute.xlu2 %1999 }
0x140e   : > { %v2002_v56 = vmul.f32 %v2000_v55, %v1983_v45 }
0x1410   : > { %2009 = vrot.lane.b32.xlu1 %v2002_v56, %s4143_s2 }
0x1413   : > { %v1963_v58 = vpop.permute.xlu1 %1962 }
0x1414   : > { %v1965_v59 = vmul.f32 %v1963_v58, %v1946_v53 }
0x1416   : > { %2004 = vrot.lane.b32.xlu0 %v1965_v59, %s4140_s9 }
0x1482   : > { %v2010_v37 = vpop.permute.xlu1 %2009 }
0x1483   : > { %2012 = vst.msk [vmem:[#allocation4] sm:$0x1] %vm1178_vm4, %v2010_v37 }
0x1488   : > { %v2005_v39 = vpop.permute.xlu0 %2004 }
0x1489   : > { %2007 = vst.msk [vmem:[#allocation4 + $0x7] sm:$0x1] %vm822_vm2, %v2005_v39 }
0x1490   : > { %v2013_v35 = vld [vmem:[#allocation4] sm:$0xff] }
0x1491   : > { %v2014_v40 = vpack.c.bf16 %v2013_v35, %v2013_v35 }
0x1493   : > { %3176 = vmatmul.msk.bf16.vlgmr.msrb.gmra.mxu1 %vm924_vm9, %v2014_v40  ;;  %3177 = vmatmul.msk.bf16.vlgmr.msra.gmra.mxu2 %vm924_vm9, %v2014_v40 }
0x1494   : > { %2479 = vmatpush.bf16.msrb.mxu1 %v3185_v9  ;;  %2538 = vmatpush.bf16.msra.mxu2 %v3185_v9 }
0x1498   : > { %2480 = vmatpush.bf16.msrb.mxu1 %v3181_v26  ;;  %2539 = vmatpush.bf16.msra.mxu2 %v3181_v26 }
0x1510   : > { %v2081_v43 = vpop.f32.mrf.mxu1 }
0x1511   : > { %v2082_v38 = vadd.f32 %v2081_v43, %v2025_v42 }
0x1513   : > { %2098 = vst [vmem:[#allocation3] sm:$0xff] %v2082_v38 }
0x1516   : > { %v2094_v44 = vpop.f32.mrf.mxu2 }
0x1517   : > { %v2095_v45 = vadd.f32 %v2094_v44, %v2026_v32 }
0x1518   : > { %v2083_v46 = vpop.f32.mrf.mxu1 }
0x1519   : > { %2099 = vst [vmem:[#allocation3 + $0x8] sm:$0xff] %v2095_v45 }
0x151a   : > { %v2132_v47 = vld [vmem:[#allocation3] ss:$0 sm:$0xff]  ;;  %v2191_v6 = vld [vmem:[#allocation3 + $0x1] ss:$0 sm:$0xff]  ;;  %v2250_v43 = vld [vmem:[#allocation3 + $0x2] ss:$0 sm:$0xff] }
0x151b   : > { %v2133_v48 = vadd.f32 %v2132_v47, %v2128_v36  ;;  %v2703_v36 = vld [vmem:[#allocation14] sm:$0xf] }
0x151c   : > { %v2712_v41 = vsel %vm799_vm0, %v2703_v36, 0 }
0x151d   : > { %3599 = vtanh.f32 %v2133_v48  ;;  %v3186_v50 = vmul.f32 -1.442695, %v2133_v48 }
0x151e   : > { %v2096_v49 = vpop.f32.mrf.mxu2 }
0x151f   : > { %3601 = vpow2.f32 %v3186_v50 }
0x1523   : > { %v3600_v62 = vpop.eup %3599 }
0x1524   : > { %2156 = vrot.lane.b32.xlu2 %v3600_v62, %s4142_s23 }
0x1525   : > { %v3602_v53 = vpop.eup %3601 }
0x1526   : > { %v2137_v51 = vadd.f32 1.0, %v3602_v53 }
0x1528   : > { %3603 = vrcp.f32 %v2137_v51  ;;  %v2149_v23 = vand.u32 2147483648, %v2137_v51  ;;  %vm2143_vm9 = vweird.f32 %v2137_v51  ;;  %v2147_v52 = vand.u32 2147483647, %v2137_v51 }
0x152a   : > { %v2150_v55 = vor.u32 1.1754944e-38, %v2149_v23  ;;  %vm2148_vm7 = vcmp.eq.f32.partialorder %v2147_v52, 8.507059e+37 }
0x152e   : > { %v3604_v1 = vpop.eup %3603 }
0x152f   : > { %v2139_v10 = vmul.f32 %v3604_v1, %v2137_v51  ;;  %vm2144_vm2 = vweird.f32 %v3604_v1 }
0x1530   : > { %vm2145_vm4 = vmor %vm2143_vm9, %vm2144_vm2 }
0x1531   : > { %v2140_v14 = vsub.f32 1.0, %v2139_v10 }
0x1533   : > { %v2141_v18 = vmul.f32 %v3604_v1, %v2140_v14 }
0x1535   : > { %v2142_v21 = vadd.f32 %v3604_v1, %v2141_v18 }
0x1537   : > { %v2146_v54 = vsel %vm2145_vm4, %v3604_v1, %v2142_v21 }
0x1538   : > { %v2151_v58 = vsel %vm2148_vm7, %v2150_v55, %v2146_v54 }
0x1539   : > { %v2154_v60 = vmul.f32 0.0, %v2151_v58 }
0x157e   : > { %v2157_v56 = vpop.permute.xlu2 %2156 }
0x157f   : > { %v2159_v59 = vmul.f32 %v2157_v56, %v2151_v58 }
0x1581   : > { %2161 = vrot.lane.b32.xlu0 %v2159_v59, %s4142_s23 }
0x15f3   : > { %v2162_v57 = vpop.permute.xlu0 %2161 }
0x15f4   : > { %v2164_v61 = vadd.f32 %v2162_v57, %v2154_v60 }
0x15f6   : > { %3605 = vtanh.f32 %v2164_v61 }
0x15fc   : > { %v3606_v63 = vpop.eup %3605 }
0x15fd   : > { %2167 = vrot.lane.b32.xlu1 %v3606_v63, %s4142_s23  ;;  %v2309_v63 = vld [vmem:[#allocation3 + $0x3] ss:$0 sm:$0xff] }
0x166f   : > { %v2168_v0 = vpop.permute.xlu1 %2167 }
0x1670   : > { %v2170_v2 = vmul.f32 %v2168_v0, %v2151_v58 }
0x1672   : > { %v2171_v3 = vpack.c.bf16 %v2170_v2, %v2170_v2 }
0x1674   : > { %2173 = vrot.lane.b32.xlu2 %v2171_v3, %s4140_s9 }
0x16ce   : > { %v2174_v4 = vpop.permute.xlu2 %2173 }
0x16cf   : > { %3187 = vmatmul.msk.bf16.vlgmr.msra.gmra.mxu0 %vm868_vm6, %v2174_v4 }
0x174c   : > { %v2187_v5 = vpop.f32.mrf.mxu0 }
0x174d   : > { %v2192_v7 = vadd.f32 %v2191_v6, %v2187_v5 }
0x174f   : > { %3607 = vtanh.f32 %v2192_v7  ;;  %v3188_v11 = vmul.f32 -1.442695, %v2192_v7 }
0x1751   : > { %3609 = vpow2.f32 %v3188_v11 }
0x1754   : > { %v2189_v8 = vpop.f32.mrf.mxu0 }
0x1755   : > { %v3608_v9 = vpop.eup %3607 }
0x1756   : > { %2215 = vrot.lane.b32.xlu0 %v3608_v9, %s4142_s23 }
0x1757   : > { %v3610_v13 = vpop.eup %3609 }
0x1758   : > { %v2196_v15 = vadd.f32 1.0, %v3610_v13 }
0x175a   : > { %3611 = vrcp.f32 %v2196_v15  ;;  %v2208_v22 = vand.u32 2147483648, %v2196_v15  ;;  %vm2202_vm10 = vweird.f32 %v2196_v15  ;;  %v2206_v25 = vand.u32 2147483647, %v2196_v15 }
0x175c   : > { %v2209_v27 = vor.u32 1.1754944e-38, %v2208_v22  ;;  %vm2207_vm12 = vcmp.eq.f32.partialorder %v2206_v25, 8.507059e+37 }
0x1760   : > { %v3612_v12 = vpop.eup %3611 }
0x1761   : > { %v2198_v16 = vmul.f32 %v3612_v12, %v2196_v15  ;;  %vm2203_vm8 = vweird.f32 %v3612_v12 }
0x1762   : > { %vm2204_vm11 = vmor %vm2202_vm10, %vm2203_vm8 }
0x1763   : > { %v2199_v17 = vsub.f32 1.0, %v2198_v16 }
0x1765   : > { %v2200_v19 = vmul.f32 %v3612_v12, %v2199_v17 }
0x1767   : > { %v2201_v20 = vadd.f32 %v3612_v12, %v2200_v19 }
0x1769   : > { %v2205_v26 = vsel %vm2204_vm11, %v3612_v12, %v2201_v20 }
0x176a   : > { %v2210_v28 = vsel %vm2207_vm12, %v2209_v27, %v2205_v26 }
0x176b   : > { %v2213_v30 = vmul.f32 %v2210_v28, %v2164_v61 }
0x17c8   : > { %v2216_v24 = vpop.permute.xlu0 %2215 }
0x17c9   : > { %v2218_v29 = vmul.f32 %v2216_v24, %v2210_v28 }
0x17cb   : > { %2220 = vrot.lane.b32.xlu1 %v2218_v29, %s4142_s23 }
0x183d   : > { %v2221_v31 = vpop.permute.xlu1 %2220 }
0x183e   : > { %v2223_v34 = vadd.f32 %v2221_v31, %v2213_v30 }
0x1840   : > { %3613 = vtanh.f32 %v2223_v34 }
0x1846   : > { %v3614_v37 = vpop.eup %3613 }
0x1847   : > { %2226 = vrot.lane.b32.xlu2 %v3614_v37, %s4142_s23  ;;  %v2368_v37 = vld [vmem:[#allocation3 + $0x4] ss:$0 sm:$0xff] }
0x18a1   : > { %v2227_v39 = vpop.permute.xlu2 %2226 }
0x18a2   : > { %v2229_v35 = vmul.f32 %v2227_v39, %v2210_v28 }
0x18a4   : > { %v2230_v40 = vpack.c.bf16 %v2229_v35, %v2229_v35 }
0x18a6   : > { %2232 = vrot.lane.b32.xlu0 %v2230_v40, %s4140_s9 }
0x1918   : > { %v2233_v33 = vpop.permute.xlu0 %2232 }
0x1919   : > { %3189 = vmatmul.msk.bf16.vlgmr.msra.gmra.mxu1 %vm868_vm6, %v2233_v33 }
0x191a   : > { %2721 = vmatpush.bf16.msra.mxu1 %v2712_v41 }
0x1996   : > { %v2246_v42 = vpop.f32.mrf.mxu1 }
0x1997   : > { %v2251_v38 = vadd.f32 %v2250_v43, %v2246_v42 }
0x1999   : > { %3615 = vtanh.f32 %v2251_v38  ;;  %v3190_v45 = vmul.f32 -1.442695, %v2251_v38 }
0x199b   : > { %3617 = vpow2.f32 %v3190_v45 }
0x199e   : > { %v2248_v32 = vpop.f32.mrf.mxu1 }
0x199f   : > { %v3616_v44 = vpop.eup %3615 }
0x19a0   : > { %2274 = vrot.lane.b32.xlu1 %v3616_v44, %s4142_s23 }
0x19a1   : > { %v3618_v46 = vpop.eup %3617 }
0x19a2   : > { %v2255_v47 = vadd.f32 1.0, %v3618_v46 }
0x19a4   : > { %3619 = vrcp.f32 %v2255_v47  ;;  %v2267_v51 = vand.u32 2147483648, %v2255_v47  ;;  %vm2261_vm13 = vweird.f32 %v2255_v47  ;;  %v2265_v1 = vand.u32 2147483647, %v2255_v47 }
0x19a6   : > { %v2268_v14 = vor.u32 1.1754944e-38, %v2267_v51  ;;  %vm2266_vm15 = vcmp.eq.f32.partialorder %v2265_v1, 8.507059e+37 }
0x19aa   : > { %v3620_v48 = vpop.eup %3619 }
0x19ab   : > { %v2257_v49 = vmul.f32 %v3620_v48, %v2255_v47  ;;  %vm2262_vm0 = vweird.f32 %v3620_v48 }
0x19ac   : > { %vm2263_vm14 = vmor %vm2261_vm13, %vm2262_vm0 }
0x19ad   : > { %v2258_v62 = vsub.f32 1.0, %v2257_v49 }
0x19af   : > { %v2259_v50 = vmul.f32 %v3620_v48, %v2258_v62 }
0x19b1   : > { %v2260_v53 = vadd.f32 %v3620_v48, %v2259_v50 }
0x19b3   : > { %v2264_v10 = vsel %vm2263_vm14, %v3620_v48, %v2260_v53 }
0x19b4   : > { %v2269_v21 = vsel %vm2266_vm15, %v2268_v14, %v2264_v10 }
0x19b5   : > { %v2272_v52 = vmul.f32 %v2269_v21, %v2223_v34 }
0x1a12   : > { %v2275_v18 = vpop.permute.xlu1 %2274 }
0x1a13   : > { %v2277_v23 = vmul.f32 %v2275_v18, %v2269_v21 }
0x1a15   : > { %2279 = vrot.lane.b32.xlu2 %v2277_v23, %s4142_s23 }
0x1a6f   : > { %v2280_v54 = vpop.permute.xlu2 %2279 }
0x1a70   : > { %v2282_v55 = vadd.f32 %v2280_v54, %v2272_v52  ;;  %v2427_v54 = vld [vmem:[#allocation3 + $0x5] ss:$0 sm:$0xff] }
0x1a72   : > { %3621 = vtanh.f32 %v2282_v55 }
0x1a78   : > { %v3622_v56 = vpop.eup %3621 }
0x1a79   : > { %2285 = vrot.lane.b32.xlu0 %v3622_v56, %s4142_s23 }
0x1aeb   : > { %v2286_v58 = vpop.permute.xlu0 %2285 }
0x1aec   : > { %v2288_v59 = vmul.f32 %v2286_v58, %v2269_v21 }
0x1aee   : > { %v2289_v60 = vpack.c.bf16 %v2288_v59, %v2288_v59 }
0x1af0   : > { %2291 = vrot.lane.b32.xlu1 %v2289_v60, %s4140_s9 }
0x1b62   : > { %v2292_v57 = vpop.permute.xlu1 %2291 }
0x1b63   : > { %3191 = vmatmul.msk.bf16.vlgmr.msrb.gmra.mxu2 %vm868_vm6, %v2292_v57 }
0x1be6   : > { %v2305_v61 = vpop.f32.mrf.mxu2 }
0x1be7   : > { %v2310_v0 = vadd.f32 %v2309_v63, %v2305_v61 }
0x1be9   : > { %3623 = vtanh.f32 %v2310_v0  ;;  %v3192_v4 = vmul.f32 -1.442695, %v2310_v0 }
0x1beb   : > { %3625 = vpow2.f32 %v3192_v4 }
0x1bee   : > { %v2307_v2 = vpop.f32.mrf.mxu2 }
0x1bef   : > { %v3624_v3 = vpop.eup %3623 }
0x1bf0   : > { %2333 = vrot.lane.b32.xlu2 %v3624_v3, %s4142_s23 }
0x1bf1   : > { %v3626_v5 = vpop.eup %3625 }
0x1bf2   : > { %v2314_v6 = vadd.f32 1.0, %v3626_v5 }
0x1bf4   : > { %3627 = vrcp.f32 %v2314_v6  ;;  %v2326_v15 = vand.u32 2147483648, %v2314_v6  ;;  %vm2320_vm3 = vweird.f32 %v2314_v6  ;;  %v2324_v12 = vand.u32 2147483647, %v2314_v6 }
0x1bf6   : > { %v2327_v17 = vor.u32 1.1754944e-38, %v2326_v15  ;;  %vm2325_vm2 = vcmp.eq.f32.partialorder %v2324_v12, 8.507059e+37 }
0x1bfa   : > { %v3628_v7 = vpop.eup %3627 }
0x1bfb   : > { %v2316_v8 = vmul.f32 %v3628_v7, %v2314_v6  ;;  %vm2321_vm1 = vweird.f32 %v3628_v7 }
0x1bfc   : > { %vm2322_vm5 = vmor %vm2320_vm3, %vm2321_vm1 }
0x1bfd   : > { %v2317_v9 = vsub.f32 1.0, %v2316_v8 }
0x1bff   : > { %v2318_v11 = vmul.f32 %v3628_v7, %v2317_v9 }
0x1c01   : > { %v2319_v13 = vadd.f32 %v3628_v7, %v2318_v11 }
0x1c03   : > { %v2323_v16 = vsel %vm2322_vm5, %v3628_v7, %v2319_v13 }
0x1c04   : > { %v2328_v20 = vsel %vm2325_vm2, %v2327_v17, %v2323_v16 }
0x1c05   : > { %v2331_v25 = vmul.f32 %v2328_v20, %v2282_v55 }
0x1c4a   : > { %v2334_v19 = vpop.permute.xlu2 %2333 }
0x1c4b   : > { %v2336_v22 = vmul.f32 %v2334_v19, %v2328_v20 }
0x1c4d   : > { %2338 = vrot.lane.b32.xlu0 %v2336_v22, %s4142_s23 }
0x1cbf   : > { %v2339_v26 = vpop.permute.xlu0 %2338 }
0x1cc0   : > { %v2341_v27 = vadd.f32 %v2339_v26, %v2331_v25  ;;  %v2486_v26 = vld [vmem:[#allocation3 + $0x6] ss:$0 sm:$0xff] }
0x1cc2   : > { %3629 = vtanh.f32 %v2341_v27 }
0x1cc8   : > { %v3630_v24 = vpop.eup %3629 }
0x1cc9   : > { %2344 = vrot.lane.b32.xlu1 %v3630_v24, %s4142_s23 }
0x1d3b   : > { %v2345_v28 = vpop.permute.xlu1 %2344 }
0x1d3c   : > { %v2347_v29 = vmul.f32 %v2345_v28, %v2328_v20 }
0x1d3e   : > { %v2348_v30 = vpack.c.bf16 %v2347_v29, %v2347_v29 }
0x1d40   : > { %2350 = vrot.lane.b32.xlu2 %v2348_v30, %s4140_s9 }
0x1d9a   : > { %v2351_v31 = vpop.permute.xlu2 %2350 }
0x1d9b   : > { %3193 = vmatmul.msk.bf16.vlgmr.msrb.gmra.mxu3 %vm868_vm6, %v2351_v31 }
0x1e1e   : > { %v2364_v34 = vpop.f32.mrf.mxu3 }
0x1e1f   : > { %v2369_v39 = vadd.f32 %v2368_v37, %v2364_v34 }
0x1e21   : > { %3631 = vtanh.f32 %v2369_v39  ;;  %v3194_v36 = vmul.f32 -1.442695, %v2369_v39 }
0x1e23   : > { %3633 = vpow2.f32 %v3194_v36 }
0x1e26   : > { %v2366_v35 = vpop.f32.mrf.mxu3 }
0x1e27   : > { %v3632_v40 = vpop.eup %3631 }
0x1e28   : > { %2392 = vrot.lane.b32.xlu0 %v3632_v40, %s4142_s23 }
0x1e29   : > { %v3634_v41 = vpop.eup %3633 }
0x1e2a   : > { %v2373_v33 = vadd.f32 1.0, %v3634_v41 }
0x1e2c   : > { %3635 = vrcp.f32 %v2373_v33  ;;  %v2385_v45 = vand.u32 2147483648, %v2373_v33  ;;  %vm2379_vm4 = vweird.f32 %v2373_v33  ;;  %v2383_v46 = vand.u32 2147483647, %v2373_v33 }
0x1e2e   : > { %v2386_v48 = vor.u32 1.1754944e-38, %v2385_v45  ;;  %vm2384_vm8 = vcmp.eq.f32.partialorder %v2383_v46, 8.507059e+37 }
0x1e32   : > { %v3636_v42 = vpop.eup %3635 }
0x1e33   : > { %v2375_v43 = vmul.f32 %v3636_v42, %v2373_v33  ;;  %vm2380_vm9 = vweird.f32 %v3636_v42 }
0x1e34   : > { %vm2381_vm7 = vmor %vm2379_vm4, %vm2380_vm9 }
0x1e35   : > { %v2376_v38 = vsub.f32 1.0, %v2375_v43 }
0x1e37   : > { %v2377_v32 = vmul.f32 %v3636_v42, %v2376_v38 }
0x1e39   : > { %v2378_v44 = vadd.f32 %v3636_v42, %v2377_v32 }
0x1e3b   : > { %v2382_v47 = vsel %vm2381_vm7, %v3636_v42, %v2378_v44  ;;  %v2584_v44 = vld [vmem:[#allocation3 + $0xf] ss:$0 sm:$0xff] }
0x1e3c   : > { %v2387_v62 = vsel %vm2384_vm8, %v2386_v48, %v2382_v47 }
0x1e3d   : > { %v2390_v53 = vmul.f32 %v2387_v62, %v2341_v27 }
0x1e9a   : > { %v2393_v49 = vpop.permute.xlu0 %2392 }
0x1e9b   : > { %v2395_v50 = vmul.f32 %v2393_v49, %v2387_v62 }
0x1e9d   : > { %2397 = vrot.lane.b32.xlu1 %v2395_v50, %s4142_s23 }
0x1f0f   : > { %v2398_v51 = vpop.permute.xlu1 %2397 }
0x1f10   : > { %v2400_v1 = vadd.f32 %v2398_v51, %v2390_v53 }
0x1f12   : > { %3637 = vtanh.f32 %v2400_v1 }
0x1f18   : > { %v3638_v10 = vpop.eup %3637 }
0x1f19   : > { %2403 = vrot.lane.b32.xlu2 %v3638_v10, %s4142_s23 }
0x1f73   : > { %v2404_v14 = vpop.permute.xlu2 %2403 }
0x1f74   : > { %v2406_v18 = vmul.f32 %v2404_v14, %v2387_v62  ;;  %v3201_v62 = vmul.f32 -1.442695, %v2584_v44 }
0x1f76   : > { %v2407_v21 = vpack.c.bf16 %v2406_v18, %v2406_v18 }
0x1f78   : > { %2409 = vrot.lane.b32.xlu0 %v2407_v21, %s4140_s9 }
0x1fea   : > { %v2410_v23 = vpop.permute.xlu0 %2409 }
0x1feb   : > { %3195 = vmatmul.msk.bf16.vlgmr.msrb.gmra.mxu0 %vm868_vm6, %v2410_v23 }
0x2068   : > { %v2423_v52 = vpop.f32.mrf.mxu0 }
0x2069   : > { %v2428_v55 = vadd.f32 %v2427_v54, %v2423_v52 }
0x206b   : > { %3639 = vtanh.f32 %v2428_v55  ;;  %v3196_v59 = vmul.f32 -1.442695, %v2428_v55 }
0x206d   : > { %3641 = vpow2.f32 %v3196_v59 }
0x2070   : > { %v2425_v56 = vpop.f32.mrf.mxu0 }
0x2071   : > { %v3640_v58 = vpop.eup %3639 }
0x2072   : > { %2451 = vrot.lane.b32.xlu1 %v3640_v58, %s4142_s23 }
0x2073   : > { %v3642_v60 = vpop.eup %3641 }
0x2074   : > { %v2432_v57 = vadd.f32 1.0, %v3642_v60 }
0x2076   : > { %3643 = vrcp.f32 %v2432_v57  ;;  %v2444_v4 = vand.u32 2147483648, %v2432_v57  ;;  %vm2438_vm11 = vweird.f32 %v2432_v57  ;;  %v2442_v5 = vand.u32 2147483647, %v2432_v57 }
0x2078   : > { %v2445_v7 = vor.u32 1.1754944e-38, %v2444_v4  ;;  %vm2443_vm0 = vcmp.eq.f32.partialorder %v2442_v5, 8.507059e+37 }
0x207c   : > { %v3644_v61 = vpop.eup %3643 }
0x207d   : > { %v2434_v63 = vmul.f32 %v3644_v61, %v2432_v57  ;;  %vm2439_vm10 = vweird.f32 %v3644_v61 }
0x207e   : > { %vm2440_vm12 = vmor %vm2438_vm11, %vm2439_vm10  ;;  %vm2707_vm11 = vcmask 64512  }
0x207f   : > { %v2435_v0 = vsub.f32 1.0, %v2434_v63 }
0x2081   : > { %v2436_v2 = vmul.f32 %v3644_v61, %v2435_v0  ;;  %v2545_v0 = vld [vmem:[#allocation3 + $0x7] ss:$0 sm:$0xff] }
0x2083   : > { %v2437_v3 = vadd.f32 %v3644_v61, %v2436_v2 }
0x2085   : > { %v2441_v6 = vsel %vm2440_vm12, %v3644_v61, %v2437_v3 }
0x2086   : > { %v2446_v9 = vsel %vm2443_vm0, %v2445_v7, %v2441_v6 }
0x2087   : > { %v2449_v13 = vmul.f32 %v2446_v9, %v2400_v1 }
0x20e4   : > { %v2452_v8 = vpop.permute.xlu1 %2451 }
0x20e5   : > { %v2454_v11 = vmul.f32 %v2452_v8, %v2446_v9 }
0x20e7   : > { %2456 = vrot.lane.b32.xlu2 %v2454_v11, %s4142_s23 }
0x2141   : > { %v2457_v15 = vpop.permute.xlu2 %2456 }
0x2142   : > { %v2459_v12 = vadd.f32 %v2457_v15, %v2449_v13 }
0x2144   : > { %3645 = vtanh.f32 %v2459_v12 }
0x214a   : > { %v3646_v16 = vpop.eup %3645 }
0x214b   : > { %2462 = vrot.lane.b32.xlu0 %v3646_v16, %s4142_s23 }
0x21bd   : > { %v2463_v17 = vpop.permute.xlu0 %2462 }
0x21be   : > { %v2465_v19 = vmul.f32 %v2463_v17, %v2446_v9 }
0x21c0   : > { %v2466_v20 = vpack.c.bf16 %v2465_v19, %v2465_v19 }
0x21c2   : > { %2468 = vrot.lane.b32.xlu1 %v2466_v20, %s4140_s9 }
0x2234   : > { %v2469_v22 = vpop.permute.xlu1 %2468 }
0x2235   : > { %3197 = vmatmul.msk.bf16.vlgmr.msrb.gmra.mxu1 %vm868_vm6, %v2469_v22 }
0x22b2   : > { %v2482_v25 = vpop.f32.mrf.mxu1 }
0x22b3   : > { %v2487_v27 = vadd.f32 %v2486_v26, %v2482_v25 }
0x22b5   : > { %3647 = vtanh.f32 %v2487_v27  ;;  %v3198_v29 = vmul.f32 -1.442695, %v2487_v27 }
0x22b7   : > { %3649 = vpow2.f32 %v3198_v29 }
0x22ba   : > { %v2484_v24 = vpop.f32.mrf.mxu1 }
0x22bb   : > { %v3648_v28 = vpop.eup %3647 }
0x22bc   : > { %2510 = vrot.lane.b32.xlu2 %v3648_v28, %s4142_s23 }
0x22bd   : > { %v3650_v30 = vpop.eup %3649 }
0x22be   : > { %v2491_v31 = vadd.f32 1.0, %v3650_v30 }
0x22c0   : > { %3651 = vrcp.f32 %v2491_v31  ;;  %v2503_v36 = vand.u32 2147483648, %v2491_v31  ;;  %vm2497_vm14 = vweird.f32 %v2491_v31  ;;  %v2501_v41 = vand.u32 2147483647, %v2491_v31 }
0x22c1   : > { %3653 = vtanh.f32 %v2584_v44  ;;  %v3287_v44 = vld [vmem:[#allocation17 + $0x8] sm:$0xff] }
0x22c2   : > { %v2504_v42 = vor.u32 1.1754944e-38, %v2503_v36  ;;  %vm2502_vm1 = vcmp.eq.f32.partialorder %v2501_v41, 8.507059e+37  ;;  %2687 = vmatpush.bf16.msra.mxu0 %v3287_v44 }
0x22c6   : > { %v3652_v34 = vpop.eup %3651 }
0x22c7   : > { %v2493_v37 = vmul.f32 %v3652_v34, %v2491_v31  ;;  %vm2498_vm13 = vweird.f32 %v3652_v34  ;;  %v3654_v45 = vpop.eup %3653 }
0x22c8   : > { %vm2499_vm15 = vmor %vm2497_vm14, %vm2498_vm13 }
0x22c9   : > { %v2494_v39 = vsub.f32 1.0, %v2493_v37  ;;  %v3288_v37 = vld [vmem:[#allocation17 + $0x10] sm:$0xff] }
0x22cb   : > { %v2495_v35 = vmul.f32 %v3652_v34, %v2494_v39 }
0x22cd   : > { %v2496_v40 = vadd.f32 %v3652_v34, %v2495_v35 }
0x22cf   : > { %v2500_v33 = vsel %vm2499_vm15, %v3652_v34, %v2496_v40  ;;  %v3289_v34 = vld [vmem:[#allocation17 + $0x18] sm:$0xff] }
0x22d0   : > { %v2505_v38 = vsel %vm2502_vm1, %v2504_v42, %v2500_v33  ;;  %2656 = vmatpush.bf16.msra.mxu3 %v3289_v34  ;;  %v2701_v33 = vld [vmem:[%s4402_s3 + $0x7] sm:$0x1] }
0x22d1   : > { %v2508_v46 = vmul.f32 %v2505_v38, %v2459_v12  ;;  %v2702_v42 = vpack.c.bf16 %v2701_v33, %v2701_v33 }
0x22d4   : > { %2657 = vmatpush.bf16.msra.mxu3 %v3288_v37 }
0x2316   : > { %v2511_v43 = vpop.permute.xlu2 %2510 }
0x2317   : > { %v2513_v32 = vmul.f32 %v2511_v43, %v2505_v38 }
0x2319   : > { %2515 = vrot.lane.b32.xlu0 %v2513_v32, %s4142_s23 }
0x2321   : > { %2607 = vrot.lane.b32.xlu0 %v3654_v45, %s4142_s23  ;;  %v3286_v45 = vld [vmem:[#allocation17] sm:$0xff] }
0x2322   : > { %2688 = vmatpush.bf16.msra.mxu0 %v3286_v45 }
0x238b   : > { %v2516_v47 = vpop.permute.xlu0 %2515 }
0x238c   : > { %v4841_v48 = vadd.f32 %v2516_v47, %v2508_v46 }
0x238e   : > { %3655 = vtanh.f32 %v4841_v48 }
0x238f   : > { %3657 = vpow2.f32 %v3201_v62  ;;  %v3296_v62 = vld [vmem:[%s4972_s27 + $0x30] sm:$0xff] }
0x2393   : > { %v2608_v59 = vpop.permute.xlu0 %2607 }
0x2394   : > { %v3656_v49 = vpop.eup %3655 }
0x2395   : > { %2521 = vrot.lane.b32.xlu1 %v3656_v49, %s4142_s23  ;;  %v3658_v50 = vpop.eup %3657  ;;  %v3297_v49 = vld [vmem:[%s4971_s20 + $0x38] sm:$0xff] }
0x2396   : > { %v2588_v53 = vadd.f32 1.0, %v3658_v50  ;;  %2796 = vmatpush.bf16.msrb.mxu2 %v3297_v49  ;;  %v3295_v50 = vld [vmem:[%s4972_s27 + $0x28] sm:$0xff] }
0x2398   : > { %3659 = vrcp.f32 %v2588_v53  ;;  %v2600_v54 = vand.u32 2147483648, %v2588_v53  ;;  %vm2594_vm5 = vweird.f32 %v2588_v53  ;;  %v2598_v55 = vand.u32 2147483647, %v2588_v53 }
0x239a   : > { %v2601_v58 = vor.u32 1.1754944e-38, %v2600_v54  ;;  %vm2599_vm9 = vcmp.eq.f32.partialorder %v2598_v55, 8.507059e+37  ;;  %2797 = vmatpush.bf16.msrb.mxu2 %v3296_v62  ;;  %v2694_v54 = vld [vmem:[#allocation19] sm:$0x1] }
0x239e   : > { %v3660_v51 = vpop.eup %3659  ;;  %2798 = vmatpush.bf16.msrb.mxu2 %v3295_v50 }
0x239f   : > { %v2590_v1 = vmul.f32 %v3660_v51, %v2588_v53  ;;  %vm2595_vm3 = vweird.f32 %v3660_v51  ;;  %v3294_v53 = vld [vmem:[%s4972_s27 + $0x20] sm:$0xff] }
0x23a0   : > { %vm2596_vm2 = vmor %vm2594_vm5, %vm2595_vm3 }
0x23a1   : > { %v2591_v10 = vsub.f32 1.0, %v2590_v1  ;;  %v3293_v1 = vld [vmem:[%s4972_s27 + $0x18] sm:$0xff] }
0x23a2   : > { %2799 = vmatpush.bf16.msrb.mxu2 %v3294_v53 }
0x23a3   : > { %v2592_v14 = vmul.f32 %v3660_v51, %v2591_v10 }
0x23a5   : > { %v2593_v23 = vadd.f32 %v3660_v51, %v2592_v14  ;;  %v3292_v14 = vld [vmem:[%s4972_s27 + $0x10] sm:$0xff] }
0x23a6   : > { %2800 = vmatpush.bf16.msrb.mxu2 %v3293_v1 }
0x23a7   : > { %v2597_v56 = vsel %vm2596_vm2, %v3660_v51, %v2593_v23  ;;  %v3290_v23 = vld [vmem:[%s4972_s27] sm:$0xff] }
0x23a8   : > { %v2602_v60 = vsel %vm2599_vm9, %v2601_v58, %v2597_v56  ;;  %v2697_v58 = vld [vmem:[#allocation20] sm:$0x1] }
0x23a9   : > { %v2610_v57 = vmul.f32 %v2608_v59, %v2602_v60  ;;  %v2605_v4 = vmul.f32 0.0, %v2602_v60 }
0x23aa   : > { %2801 = vmatpush.bf16.msrb.mxu2 %v3292_v14 }
0x2407   : > { %v2522_v18 = vpop.permute.xlu1 %2521 }
0x2408   : > { %v2524_v21 = vmul.f32 %v2522_v18, %v2505_v38  ;;  %v3291_v18 = vld [vmem:[%s4972_s27 + $0x8] sm:$0xff] }
0x2409   : > { %2802 = vmatpush.bf16.msrb.mxu2 %v3291_v18 }
0x240a   : > { %v2525_v52 = vpack.c.bf16 %v2524_v21, %v2524_v21 }
0x240c   : > { %2527 = vrot.lane.b32.xlu2 %v2525_v52, %s4140_s9 }
0x240d   : > { %2803 = vmatpush.bf16.msrb.mxu2 %v3290_v23 }
0x2414   : > { %2612 = vrot.lane.b32.xlu2 %v2610_v57, %s4142_s23 }
0x2466   : > { %v2528_v61 = vpop.permute.xlu2 %2527 }
0x2467   : > { %3199 = vmatmul.msk.bf16.vlgmr.msra.gmra.mxu2 %vm868_vm6, %v2528_v61 }
0x246e   : > { %v2613_v3 = vpop.permute.xlu2 %2612 }
0x246f   : > { %v2615_v5 = vadd.f32 %v2613_v3, %v2605_v4 }
0x24ea   : > { %v2541_v63 = vpop.f32.mrf.mxu2 }
0x24eb   : > { %v2546_v2 = vadd.f32 %v2545_v0, %v2541_v63  ;;  %v2728_v0 = vld [vmem:[#allocation16] sm:$0x1] }
0x24ed   : > { %3661 = vtanh.f32 %v2546_v2  ;;  %v3200_v9 = vmul.f32 -1.442695, %v2546_v2 }
0x24ee   : > { %3663 = vtanh.f32 %v2615_v5  ;;  %v2747_v5 = vld [vmem:[#allocation23] sm:$0x1] }
0x24ef   : > { %3665 = vpow2.f32 %v3200_v9 }
0x24f2   : > { %v2543_v6 = vpop.f32.mrf.mxu2 }
0x24f3   : > { %v3662_v7 = vpop.eup %3661 }
0x24f4   : > { %2569 = vrot.lane.b32.xlu1 %v3662_v7, %s4142_s23  ;;  %v3664_v8 = vpop.eup %3663 }
0x24f5   : > { %v3666_v11 = vpop.eup %3665 }
0x24f6   : > { %v2550_v13 = vadd.f32 1.0, %v3666_v11 }
0x24f8   : > { %3667 = vrcp.f32 %v2550_v13  ;;  %v2562_v20 = vand.u32 2147483648, %v2550_v13  ;;  %vm2556_vm7 = vweird.f32 %v2550_v13  ;;  %v2560_v22 = vand.u32 2147483647, %v2550_v13 }
0x24fa   : > { %v2563_v26 = vor.u32 1.1754944e-38, %v2562_v20  ;;  %vm2561_vm10 = vcmp.eq.f32.partialorder %v2560_v22, 8.507059e+37 }
0x24fc   : > { %2618 = vrot.lane.b32.xlu1 %v3664_v8, %s4142_s23 }
0x24fe   : > { %v3668_v15 = vpop.eup %3667 }
0x24ff   : > { %v2552_v12 = vmul.f32 %v3668_v15, %v2550_v13  ;;  %vm2557_vm4 = vweird.f32 %v3668_v15 }
0x2500   : > { %vm2558_vm8 = vmor %vm2556_vm7, %vm2557_vm4 }
0x2501   : > { %v2553_v16 = vsub.f32 1.0, %v2552_v12 }
0x2503   : > { %v2554_v17 = vmul.f32 %v3668_v15, %v2553_v16 }
0x2505   : > { %v2555_v19 = vadd.f32 %v3668_v15, %v2554_v17 }
0x2507   : > { %v2559_v25 = vsel %vm2558_vm8, %v3668_v15, %v2555_v19 }
0x2508   : > { %v2564_v24 = vsel %vm2561_vm10, %v2563_v26, %v2559_v25 }
0x2509   : > { %v2567_v39 = vmul.f32 %v2564_v24, %v4841_v48 }
0x2566   : > { %v2570_v27 = vpop.permute.xlu1 %2569 }
0x2567   : > { %v2572_v28 = vmul.f32 %v2570_v27, %v2564_v24 }
0x2569   : > { %2574 = vrot.lane.b32.xlu0 %v2572_v28, %s4142_s23 }
0x256e   : > { %v2619_v29 = vpop.permute.xlu1 %2618 }
0x256f   : > { %v2621_v30 = vmul.f32 %v2619_v29, %v2602_v60  ;;  %v2699_v60 = vld [vmem:[#allocation22] sm:$0x1] }
0x2571   : > { %v2627_v31 = vpack.c.bf16 %v2621_v30, %v2621_v30 }
0x2573   : > { %2633 = vrot.lane.b32.xlu0 %v2627_v31, %s4140_s9 }
0x25db   : > { %v2575_v35 = vpop.permute.xlu0 %2574 }
0x25dc   : > { %v2577_v40 = vadd.f32 %v2575_v35, %v2567_v39 }
0x25de   : > { %3669 = vtanh.f32 %v2577_v40 }
0x25e4   : > { %v3670_v36 = vpop.eup %3669 }
0x25e5   : > { %2580 = vrot.lane.b32.xlu2 %v3670_v36, %s4142_s23  ;;  %v2634_v41 = vpop.permute.xlu0 %2633  ;;  %s4973_s23 = sld [smem:[#allocation35_spill]] }
0x25e6   : > { %3210 = vmatmul.msk.bf16.vlgmr.msra.gmra.mxu3 %vm868_vm6, %v2634_v41 }
0x25eb   : > { %s774_s28 = sand.u32 1, %s4973_s23  }
0x25ec   : > { %s775_s0 = scalar_lea.vmem [#allocation25], %s774_s28  ;;  %s2812_s25 = scalar_lea.sflag [#allocation7], %s774_s28 }
0x25ed   : > { %2705 = vrot.lane.b32.xlu2 %v2702_v42, %s4145_s21  ;;  %s2822_s11 = sshll.u32 %s775_s0, 4  ;;  %s2823_s11 = int_to_ptr.vmem [resolvable:$true] %s2822_s11 }
0x263f   : > { %v2581_v43 = vpop.permute.xlu2 %2580 }
0x2640   : > { %v2583_v38 = vmul.f32 %v2581_v43, %v2564_v24 }
0x2642   : > { %v2622_v32 = vpack.c.bf16 %v2583_v38, %v2583_v38 }
0x2644   : > { %2664 = vrot.lane.b32.xlu1 %v2622_v32, %s4140_s9  ;;  %s2820_s9 = scalar_lea.hbm %s4974_s29, %s4267_s1 }
0x2645   : > { %s2824_s17 = sshll.u32 %s2820_s9, 4  ;;  %s2825_s17 = int_to_ptr.hbm [resolvable:$true] %s2824_s17 }
0x2646   : > { %s4045_s30 = sshra.s32 %s2825_s17, 4  ;;  %s4046_s30 = int_to_ptr.hbm [resolvable:$true] %s4045_s30 }
0x2647   : > { %v2706_v48 = vpop.permute.xlu2 %2705  ;;  %s4047_s22 = scalar_lea.hbm %s4046_s30, 1  ;;  %p4052_p3 = scmp.lt.s32.totalorder %s4046_s30, %s4974_s29 }
0x2648   : > { %3220 = vmatmul.msk.bf16.vlgmr.msra.gmra.mxu1 %vm2707_vm11, %v2706_v48  ;;  %p4048_p0 = scmp.ne.s32.totalorder %s4046_s30, %s4047_s22  ;;  %p4053_p4 = scmp.lt.s32.totalorder %s4051_s19, %s4047_s22 }
0x264a   : > { %p4049_p1 = pnand %p4048_p0, %p4284_p5  ;;  %p4054_p7 = por %p4053_p4, %p4052_p3 }
0x264c   : > { %p4050_p2 = pneg %p4049_p1 }
0x264e   : > { %p4055_p8 = pnand %p4054_p7, %p4050_p2 }
0x2669   : > { %v2659_v46 = vpop.f32.mrf.mxu3 }
0x2671   : > { %v2661_v47 = vpop.f32.mrf.mxu3 }
0x26b6   : > { %v2665_v51 = vpop.permute.xlu1 %2664 }
0x26b7   : > { %3219 = vmatmul.msk.bf16.vlgmr.msra.gmra.mxu0 %vm868_vm6, %v2665_v51  ;;  %vm2809_vm6 = vcmask 24576  }
0x26c5   : > { %v2723_v10 = vpop.f32.mrf.mxu1 }
0x26cd   : > { %v2725_v21 = vpop.f32.mrf.mxu1 }
0x2734   : > { %v2690_v52 = vpop.f32.mrf.mxu0 }
0x2735   : > { %v2691_v55 = vadd.f32 %v2690_v52, %v2659_v46 }
0x2737   : > { %v2695_v56 = vadd.f32 %v2694_v54, %v2691_v55 }
0x2739   : > { %v2696_v59 = vmax.f32 %v2695_v56, 0.0 }
0x273b   : > { %v2698_v57 = vmul.f32 %v2697_v58, %v2696_v59 }
0x273c   : > { %v2692_v61 = vpop.f32.mrf.mxu0 }
0x273d   : > { %v2700_v63 = vadd.f32 %v2699_v60, %v2698_v57 }
0x273f   : > { %v2727_v2 = vadd.f32 %v2723_v10, %v2700_v63 }
0x2741   : > { %v2729_v3 = vadd.f32 %v2728_v0, %v2727_v2 }
0x2743   : > { %v2730_v4 = vpack.c.bf16 %v2729_v3, %v2729_v3 }
0x2745   : > { %2804 = vmatmul.bf16.vlgmr.msrb.gmra.mxu2 %v2730_v4 }
0x27c8   : > { %v2805_v6 = vpop.f32.mrf.mxu2 }
0x27c9   : > { %v2806_v7 = vadd.f32 %v2805_v6, %v2747_v5 }
0x27cb   : > { %2810 = vst.msk [vmem:[%s775_s0] sm:$0x1] %vm2809_vm6, %v2806_v7 }
0x27cc   : > { %4058 = shalt.err (!%p4055_p8)
}
0x27cd   : > { %3346 = dma.vmem_to_hbm [thread:$0]  (%p4284_p5), %s2823_s11, 16, %s2825_s17, %s2812_s25  }
0x27d0   : > { %v2807_v8 = vpop.f32.mrf.mxu2 }
0x27d1 PF: > { %s4976_s23 = sld [smem:[#allocation37_spill]] }
0x27d2   : > { %s4977_s28 = sld [smem:[#allocation34_spill]] }
0x27d7   : > { %p3413_p9 = scmp.ge.s32.totalorder %s4976_s23, 2 }
0x27d8   : > { %s2836_s3 = sand.u32 1, %s4977_s28  }
0x27d9   : > { %p3386_p10 = pnand %p3413_p9, %p4288_p6  ;;  %s2837_s9 = scalar_lea.sflag [#allocation7], %s2836_s3 }
0x27db   : > { %p3387_p11 = pneg %p3386_p10 }
0x27dd   : > { %4104 = dma.done.wait (%p3387_p11), %s2837_s9, 16  }
0x27de   : > { %4106 = vsyncadd (%p3387_p11), %s2837_s9, 4294967280  ;;  %s4979_s21 = sld [smem:[#allocation38_spill]] }
0x27df   : > { %s4980_s0 = sld [smem:[#allocation35_spill]] }
0x27e0   : > { %s4981_s30 = sld [smem:[#allocation36_spill]] }
0x27e1   : > { %s4982_s20 = sld [smem:[#allocation39_spill]] }
0x27e4   : > { %p36_p12 = scmp.ge.s32.totalorder %s4979_s21, 4  }
0x27e6   :  { %38 = sbr.rel (!%p36_p12) target bundleno = 19 (0x13), region = 180 }
0x27eb   :  { %2842 = vsyncpa [#allocation6], 1 }
0x27ec   :  { %2844 = vsyncpa [#allocation6 + $0x1], 1 }
0x27ed   :  { %2845 = vsyncpa [#allocation9], 1 }
0x27ee   :  { %2846 = vsyncpa [#allocation12], 1 }
0x27ef   :  { %2847 = vsyncpa [#allocation15], 1 }
0x27f0   :  { %2848 = vsyncpa [#allocation18], 1 }
0x27f1   :  { %2849 = vsyncpa [#allocation21], 1 }
0x27f2   :  { %2850 = vsyncpa [#allocation24], 1 }
0x27f3   :  { %2851 = vsyncpa [#allocation7], 1 }
0x27f4   :  { %2853 = vsyncpa [#allocation7 + $0x1], 1 }

</bundles_post_ra>
